<compile_context>
chip_gen: v7x
topology: tpu7x:2x2x1
jax: 0.10.0
libtpu: 0.0.40
codegen_flags: <defaults>
</compile_context>

<pallas_src>
import jax
import jax.numpy as jnp
from jax.experimental import pallas as pl
from jax.experimental.pallas import tpu as pltpu


def _sigmoid(t):
    # exp on the EUP + approximate reciprocal (also EUP) keeps the divide off
    # the VALU path.
    return pl.reciprocal(1.0 + jnp.exp(-t), approx=True)


def _reflect_pad_hw(t):
    """PyTorch ReflectionPad2d((1,1,1,1)) on a (H, W, C) value."""
    t = jnp.concatenate([t[1:2], t, t[-2:-1]], axis=0)          # pad H
    t = jnp.concatenate([t[:, 1:2], t, t[:, -2:-1]], axis=1)    # pad W
    return t


def _conv3x3_relu(x_hwc, w_ref):
    """ReflectionPad(1) + 3x3 VALID conv (bias-free) + ReLU via one im2col
    matmul.  x_hwc: (H, W, C) f32 value; w_ref: (9*C, Cout) bf16 ref.
    Returns (H*W, Cout) f32."""
    H, W, C = x_hwc.shape
    xpad = _reflect_pad_hw(x_hwc)                                # (H+2, W+2, C)
    cols = []
    for dy in range(3):
        for dx in range(3):
            cols.append(xpad[dy:dy + H, dx:dx + W, :].reshape(H * W, C))
    # (H*W, 9*C): tap-major, channel-minor — matches w.reshape(9*C, Cout).
    patches = jnp.concatenate(cols, axis=1).astype(jnp.bfloat16)
    acc = jnp.dot(patches, w_ref[...], preferred_element_type=jnp.float32)
    return jnp.maximum(acc, 0.0)                                 # (H*W, Cout)


def _se_resblock_kernel(x_ref, w1_ref, w2_ref, dw_ref, mw_ref, fc1_ref,
                        fc2_ref, out_ref):
    H, W, C = x_ref.shape
    Hp, Wp = H + 2, W + 2
    Ho = (Hp - 5) // 4 + 1
    Wo = (Wp - 5) // 4 + 1

    x = x_ref[...].astype(jnp.float32)                           # (H, W, C)

    # --- Padding_Conv 1 and 2 (stay VMEM-resident) -------------------------
    y1_flat = _conv3x3_relu(x, w1_ref)                           # (H*W, C)
    y2_flat = _conv3x3_relu(y1_flat.reshape(H, W, C), w2_ref)    # (H*W, C)
    y2 = y2_flat.reshape(H, W, C)

    # --- SELayer: depthwise 5x5 / stride 4 -> ReLU -> sigmoid mask -> mean --
    ypad = _reflect_pad_hw(y2)                                   # (Hp, Wp, C)
    dw = dw_ref[...].astype(jnp.float32)                         # (5, 5, C)
    rows = []
    for oy in range(Ho):
        band = ypad[4 * oy:4 * oy + 5]                           # (5, Wp, C)
        for ox in range(Wo):
            win = band[:, 4 * ox:4 * ox + 5, :]                  # (5, 5, C)
            t = jnp.sum(win * dw, axis=0)                        # (5, C)
            rows.append(jnp.sum(t, axis=0, keepdims=True))       # (1, C)
    feat = jnp.concatenate(rows, axis=0)                         # (Ho*Wo, C)
    feat = jnp.maximum(feat, 0.0)                                # ReLU (once)
    feat = feat * _sigmoid(feat * mw_ref[...])                   # mask (once)
    mean = jnp.mean(feat, axis=0, keepdims=True)                 # (1, C)

    # --- Channel-wise 2-layer MLP (no bias) + sigmoid gate ------------------
    h = jnp.maximum(jnp.dot(mean, fc1_ref[...].astype(jnp.float32),
                            preferred_element_type=jnp.float32), 0.0)
    wgt = _sigmoid(jnp.dot(h, fc2_ref[...].astype(jnp.float32),
                           preferred_element_type=jnp.float32))  # (1, C)

    # --- Gate * conv2-output + residual -------------------------------------
    out = y2_flat * wgt + x.reshape(H * W, C)                    # (H*W, C)
    out_ref[...] = out.reshape(H, W, C).astype(out_ref.dtype)


@jax.jit
def se_resblock_forward(x, params):
    """x: (B, H, W, C) NHWC.  params = (w1, w2, dw, maskw, fc1, fc2):
    w1/w2 (3,3,C,C) HWIO, dw (5,5,C), maskw (C,), fc1 (C,hid), fc2 (hid,C)."""
    w1, w2, dw, maskw, fc1, fc2 = params
    B, H, W, C = x.shape
    hid = fc1.shape[-1]

    w1f = w1.reshape(9 * C, C).astype(jnp.bfloat16)   # im2col weight layouts
    w2f = w2.reshape(9 * C, C).astype(jnp.bfloat16)
    dwf = dw.astype(jnp.float32)
    mwf = maskw.reshape(1, C).astype(jnp.float32)

    return pl.pallas_call(
        _se_resblock_kernel,
        out_shape=jax.ShapeDtypeStruct((B, H, W, C), x.dtype),
        grid=(B,),
        in_specs=[
            pl.BlockSpec((None, H, W, C), lambda b: (b, 0, 0, 0)),
            pl.BlockSpec((9 * C, C), lambda b: (0, 0)),
            pl.BlockSpec((9 * C, C), lambda b: (0, 0)),
            pl.BlockSpec((5, 5, C), lambda b: (0, 0, 0)),
            pl.BlockSpec((1, C), lambda b: (0, 0)),
            pl.BlockSpec((C, hid), lambda b: (0, 0)),
            pl.BlockSpec((hid, C), lambda b: (0, 0)),
        ],
        out_specs=pl.BlockSpec((None, H, W, C), lambda b: (b, 0, 0, 0)),
        compiler_params=pltpu.CompilerParams(
            dimension_semantics=("parallel",)),   # batch across v7x cores
    )(x, w1f, w2f, dwf, mwf, fc1, fc2)


# ----------------------------------------------------------------------------
# Pure-JAX reference (same math; convs also fed in bf16 so only associativity
# and the approx-reciprocal sigmoid differ from the Pallas path).
# ----------------------------------------------------------------------------
def ref_forward(x, params):
    w1, w2, dw, maskw, fc1, fc2 = params
    C = x.shape[-1]

    def rpad(t):
        return jnp.pad(t, ((0, 0), (1, 1), (1, 1), (0, 0)), mode="reflect")

    def pconv(t, w):
        y = jax.lax.conv_general_dilated(
            rpad(t).astype(jnp.bfloat16), w.astype(jnp.bfloat16), (1, 1),
            "VALID", dimension_numbers=("NHWC", "HWIO", "NHWC"),
            preferred_element_type=jnp.float32)
        return jnp.maximum(y, 0.0)

    y = pconv(x, w1)
    y = pconv(y, w2)
    feat = jax.lax.conv_general_dilated(
        rpad(y), dw.reshape(5, 5, 1, C), (4, 4), "VALID",
        dimension_numbers=("NHWC", "HWIO", "NHWC"), feature_group_count=C)
    feat = jnp.maximum(feat, 0.0)
    feat = feat * jax.nn.sigmoid(feat * maskw)
    mean = jnp.mean(feat, axis=(1, 2))                          # (B, C)
    h = jnp.maximum(mean @ fc1, 0.0)
    wgt = jax.nn.sigmoid(h @ fc2)                               # (B, C)
    return y * wgt[:, None, None, :] + x


if __name__ == "__main__":
    # SE_ResBlock(in_c=16, channels=16, kernel_size=3, reduction=4)
    # (in_c must equal channels for the residual add, as in the PyTorch module.)
    B, C, H, W = 2, 16, 16, 16
    reduction = 4
    hid = C // reduction

    key = jax.random.PRNGKey(0)
    ks = jax.random.split(key, 7)
    x_nchw = jax.random.normal(ks[0], (B, C, H, W), jnp.float32)
    w1 = jax.random.normal(ks[1], (3, 3, C, C), jnp.float32) * 0.1
    w2 = jax.random.normal(ks[2], (3, 3, C, C), jnp.float32) * 0.1
    dw = jax.random.normal(ks[3], (5, 5, C), jnp.float32) * 0.1
    maskw = jax.random.normal(ks[4], (C,), jnp.float32) * 0.1
    fc1 = jax.random.normal(ks[5], (C, hid), jnp.float32) * 0.1
    fc2 = jax.random.normal(ks[6], (hid, C), jnp.float32) * 0.1
    params = (w1, w2, dw, maskw, fc1, fc2)

    x = jnp.transpose(x_nchw, (0, 2, 3, 1))   # NCHW -> NHWC kernel layout

    out = jax.block_until_ready(se_resblock_forward(x, params))
    ref = ref_forward(x, params)

    assert out.shape == (B, H, W, C)
    if not jnp.allclose(out, ref, atol=2e-2, rtol=2e-2):
        err = float(jnp.max(jnp.abs(out - ref)))
        raise AssertionError(f"Pallas output mismatch, max abs err = {err}")

    print("KERNEL_OK")
</pallas_src>

<mosaic_0001>
module attributes {stable_mosaic.version = 11 : i64} {
  func.func @_se_resblock_kernel(%arg0: i32, %arg1: memref<1x16x16x16xf32, #tpu.memory_space<vmem>>, %arg2: memref<144x16xbf16, #tpu.memory_space<vmem>>, %arg3: memref<144x16xbf16, #tpu.memory_space<vmem>>, %arg4: memref<5x5x16xf32, #tpu.memory_space<vmem>>, %arg5: memref<1x16xf32, #tpu.memory_space<vmem>>, %arg6: memref<16x4xf32, #tpu.memory_space<vmem>>, %arg7: memref<4x16xf32, #tpu.memory_space<vmem>>, %arg8: memref<1x16x16x16xf32, #tpu.memory_space<vmem>>) attributes {dimension_semantics = [#tpu.dimension_semantics<parallel>], iteration_bounds = array<i64: 2>, scalar_prefetch = 0 : i64, scratch_operands = 0 : i64, tpu.core_type = #tpu.core_type<tc>, window_params = [{transform_indices = @transform_0, window_bounds = array<i64: 1, 16, 16, 16>}, {pipeline_mode = #tpu.pipeline_mode<synchronous>, transform_indices = @transform_1, window_bounds = array<i64: 144, 16>}, {pipeline_mode = #tpu.pipeline_mode<synchronous>, transform_indices = @transform_2, window_bounds = array<i64: 144, 16>}, {pipeline_mode = #tpu.pipeline_mode<synchronous>, transform_indices = @transform_3, window_bounds = array<i64: 5, 5, 16>}, {pipeline_mode = #tpu.pipeline_mode<synchronous>, transform_indices = @transform_4, window_bounds = array<i64: 1, 16>}, {pipeline_mode = #tpu.pipeline_mode<synchronous>, transform_indices = @transform_5, window_bounds = array<i64: 16, 4>}, {pipeline_mode = #tpu.pipeline_mode<synchronous>, transform_indices = @transform_6, window_bounds = array<i64: 4, 16>}, {transform_indices = @transform_7, window_bounds = array<i64: 1, 16, 16, 16>}]} {
    %c0 = arith.constant 0 : index
    %c0_0 = arith.constant 0 : index
    %c0_1 = arith.constant 0 : index
    %c0_2 = arith.constant 0 : index
    %0 = vector.load %arg1[%c0, %c0_0, %c0_1, %c0_2] : memref<1x16x16x16xf32, #tpu.memory_space<vmem>>, vector<1x16x16x16xf32>
    %1 = vector.shape_cast %0 : vector<1x16x16x16xf32> to vector<16x16x16xf32>
    %2 = vector.extract_strided_slice %1 {offsets = [1, 0, 0], sizes = [1, 16, 16], strides = [1, 1, 1]} : vector<16x16x16xf32> to vector<1x16x16xf32>
    %3 = vector.extract_strided_slice %1 {offsets = [14, 0, 0], sizes = [1, 16, 16], strides = [1, 1, 1]} : vector<16x16x16xf32> to vector<1x16x16xf32>
    %4 = tpu.concatenate %2, %1, %3 in 0 : vector<1x16x16xf32>, vector<16x16x16xf32>, vector<1x16x16xf32> -> vector<18x16x16xf32>
    %5 = vector.extract_strided_slice %4 {offsets = [0, 1, 0], sizes = [18, 1, 16], strides = [1, 1, 1]} : vector<18x16x16xf32> to vector<18x1x16xf32>
    %6 = vector.extract_strided_slice %4 {offsets = [0, 14, 0], sizes = [18, 1, 16], strides = [1, 1, 1]} : vector<18x16x16xf32> to vector<18x1x16xf32>
    %7 = tpu.concatenate %5, %4, %6 in 1 : vector<18x1x16xf32>, vector<18x16x16xf32>, vector<18x1x16xf32> -> vector<18x18x16xf32>
    %8 = vector.extract_strided_slice %7 {offsets = [0, 0, 0], sizes = [16, 16, 16], strides = [1, 1, 1]} : vector<18x18x16xf32> to vector<16x16x16xf32>
    %9 = vector.shape_cast %8 : vector<16x16x16xf32> to vector<256x16xf32>
    %10 = vector.extract_strided_slice %7 {offsets = [0, 1, 0], sizes = [16, 16, 16], strides = [1, 1, 1]} : vector<18x18x16xf32> to vector<16x16x16xf32>
    %11 = vector.shape_cast %10 : vector<16x16x16xf32> to vector<256x16xf32>
    %12 = vector.extract_strided_slice %7 {offsets = [0, 2, 0], sizes = [16, 16, 16], strides = [1, 1, 1]} : vector<18x18x16xf32> to vector<16x16x16xf32>
    %13 = vector.shape_cast %12 : vector<16x16x16xf32> to vector<256x16xf32>
    %14 = vector.extract_strided_slice %7 {offsets = [1, 0, 0], sizes = [16, 16, 16], strides = [1, 1, 1]} : vector<18x18x16xf32> to vector<16x16x16xf32>
    %15 = vector.shape_cast %14 : vector<16x16x16xf32> to vector<256x16xf32>
    %16 = vector.extract_strided_slice %7 {offsets = [1, 1, 0], sizes = [16, 16, 16], strides = [1, 1, 1]} : vector<18x18x16xf32> to vector<16x16x16xf32>
    %17 = vector.shape_cast %16 : vector<16x16x16xf32> to vector<256x16xf32>
    %18 = vector.extract_strided_slice %7 {offsets = [1, 2, 0], sizes = [16, 16, 16], strides = [1, 1, 1]} : vector<18x18x16xf32> to vector<16x16x16xf32>
    %19 = vector.shape_cast %18 : vector<16x16x16xf32> to vector<256x16xf32>
    %20 = vector.extract_strided_slice %7 {offsets = [2, 0, 0], sizes = [16, 16, 16], strides = [1, 1, 1]} : vector<18x18x16xf32> to vector<16x16x16xf32>
    %21 = vector.shape_cast %20 : vector<16x16x16xf32> to vector<256x16xf32>
    %22 = vector.extract_strided_slice %7 {offsets = [2, 1, 0], sizes = [16, 16, 16], strides = [1, 1, 1]} : vector<18x18x16xf32> to vector<16x16x16xf32>
    %23 = vector.shape_cast %22 : vector<16x16x16xf32> to vector<256x16xf32>
    %24 = vector.extract_strided_slice %7 {offsets = [2, 2, 0], sizes = [16, 16, 16], strides = [1, 1, 1]} : vector<18x18x16xf32> to vector<16x16x16xf32>
    %25 = vector.shape_cast %24 : vector<16x16x16xf32> to vector<256x16xf32>
    %26 = tpu.concatenate %9, %11, %13, %15, %17, %19, %21, %23, %25 in 1 : vector<256x16xf32>, vector<256x16xf32>, vector<256x16xf32>, vector<256x16xf32>, vector<256x16xf32>, vector<256x16xf32>, vector<256x16xf32>, vector<256x16xf32>, vector<256x16xf32> -> vector<256x144xf32>
    %27 = arith.truncf %26 : vector<256x144xf32> to vector<256x144xbf16>
    %c0_3 = arith.constant 0 : index
    %c0_4 = arith.constant 0 : index
    %28 = vector.load %arg2[%c0_3, %c0_4] : memref<144x16xbf16, #tpu.memory_space<vmem>>, vector<144x16xbf16>
    %cst = arith.constant dense<0.000000e+00> : vector<256x16xf32>
    %29 = tpu.matmul %27, %28, %cst {dimension_numbers = #tpu.dot_dimension_numbers<[1], [0], [0], [1], [0, 0, 1, 1], [], []>} : vector<256x144xbf16>, vector<144x16xbf16>, vector<256x16xf32> -> vector<256x16xf32>
    %cst_5 = arith.constant 0.000000e+00 : f32
    %30 = vector.broadcast %cst_5 : f32 to vector<256x16xf32>
    %31 = arith.maximumf %29, %30 : vector<256x16xf32>
    %32 = vector.shape_cast %31 : vector<256x16xf32> to vector<16x16x16xf32>
    %33 = vector.extract_strided_slice %32 {offsets = [1, 0, 0], sizes = [1, 16, 16], strides = [1, 1, 1]} : vector<16x16x16xf32> to vector<1x16x16xf32>
    %34 = vector.extract_strided_slice %32 {offsets = [14, 0, 0], sizes = [1, 16, 16], strides = [1, 1, 1]} : vector<16x16x16xf32> to vector<1x16x16xf32>
    %35 = tpu.concatenate %33, %32, %34 in 0 : vector<1x16x16xf32>, vector<16x16x16xf32>, vector<1x16x16xf32> -> vector<18x16x16xf32>
    %36 = vector.extract_strided_slice %35 {offsets = [0, 1, 0], sizes = [18, 1, 16], strides = [1, 1, 1]} : vector<18x16x16xf32> to vector<18x1x16xf32>
    %37 = vector.extract_strided_slice %35 {offsets = [0, 14, 0], sizes = [18, 1, 16], strides = [1, 1, 1]} : vector<18x16x16xf32> to vector<18x1x16xf32>
    %38 = tpu.concatenate %36, %35, %37 in 1 : vector<18x1x16xf32>, vector<18x16x16xf32>, vector<18x1x16xf32> -> vector<18x18x16xf32>
    %39 = vector.extract_strided_slice %38 {offsets = [0, 0, 0], sizes = [16, 16, 16], strides = [1, 1, 1]} : vector<18x18x16xf32> to vector<16x16x16xf32>
    %40 = vector.shape_cast %39 : vector<16x16x16xf32> to vector<256x16xf32>
    %41 = vector.extract_strided_slice %38 {offsets = [0, 1, 0], sizes = [16, 16, 16], strides = [1, 1, 1]} : vector<18x18x16xf32> to vector<16x16x16xf32>
    %42 = vector.shape_cast %41 : vector<16x16x16xf32> to vector<256x16xf32>
    %43 = vector.extract_strided_slice %38 {offsets = [0, 2, 0], sizes = [16, 16, 16], strides = [1, 1, 1]} : vector<18x18x16xf32> to vector<16x16x16xf32>
    %44 = vector.shape_cast %43 : vector<16x16x16xf32> to vector<256x16xf32>
    %45 = vector.extract_strided_slice %38 {offsets = [1, 0, 0], sizes = [16, 16, 16], strides = [1, 1, 1]} : vector<18x18x16xf32> to vector<16x16x16xf32>
    %46 = vector.shape_cast %45 : vector<16x16x16xf32> to vector<256x16xf32>
    %47 = vector.extract_strided_slice %38 {offsets = [1, 1, 0], sizes = [16, 16, 16], strides = [1, 1, 1]} : vector<18x18x16xf32> to vector<16x16x16xf32>
    %48 = vector.shape_cast %47 : vector<16x16x16xf32> to vector<256x16xf32>
    %49 = vector.extract_strided_slice %38 {offsets = [1, 2, 0], sizes = [16, 16, 16], strides = [1, 1, 1]} : vector<18x18x16xf32> to vector<16x16x16xf32>
    %50 = vector.shape_cast %49 : vector<16x16x16xf32> to vector<256x16xf32>
    %51 = vector.extract_strided_slice %38 {offsets = [2, 0, 0], sizes = [16, 16, 16], strides = [1, 1, 1]} : vector<18x18x16xf32> to vector<16x16x16xf32>
    %52 = vector.shape_cast %51 : vector<16x16x16xf32> to vector<256x16xf32>
    %53 = vector.extract_strided_slice %38 {offsets = [2, 1, 0], sizes = [16, 16, 16], strides = [1, 1, 1]} : vector<18x18x16xf32> to vector<16x16x16xf32>
    %54 = vector.shape_cast %53 : vector<16x16x16xf32> to vector<256x16xf32>
    %55 = vector.extract_strided_slice %38 {offsets = [2, 2, 0], sizes = [16, 16, 16], strides = [1, 1, 1]} : vector<18x18x16xf32> to vector<16x16x16xf32>
    %56 = vector.shape_cast %55 : vector<16x16x16xf32> to vector<256x16xf32>
    %57 = tpu.concatenate %40, %42, %44, %46, %48, %50, %52, %54, %56 in 1 : vector<256x16xf32>, vector<256x16xf32>, vector<256x16xf32>, vector<256x16xf32>, vector<256x16xf32>, vector<256x16xf32>, vector<256x16xf32>, vector<256x16xf32>, vector<256x16xf32> -> vector<256x144xf32>
    %58 = arith.truncf %57 : vector<256x144xf32> to vector<256x144xbf16>
    %c0_6 = arith.constant 0 : index
    %c0_7 = arith.constant 0 : index
    %59 = vector.load %arg3[%c0_6, %c0_7] : memref<144x16xbf16, #tpu.memory_space<vmem>>, vector<144x16xbf16>
    %cst_8 = arith.constant dense<0.000000e+00> : vector<256x16xf32>
    %60 = tpu.matmul %58, %59, %cst_8 {dimension_numbers = #tpu.dot_dimension_numbers<[1], [0], [0], [1], [0, 0, 1, 1], [], []>} : vector<256x144xbf16>, vector<144x16xbf16>, vector<256x16xf32> -> vector<256x16xf32>
    %cst_9 = arith.constant 0.000000e+00 : f32
    %61 = vector.broadcast %cst_9 : f32 to vector<256x16xf32>
    %62 = arith.maximumf %60, %61 : vector<256x16xf32>
    %63 = vector.shape_cast %62 : vector<256x16xf32> to vector<16x16x16xf32>
    %64 = vector.extract_strided_slice %63 {offsets = [1, 0, 0], sizes = [1, 16, 16], strides = [1, 1, 1]} : vector<16x16x16xf32> to vector<1x16x16xf32>
    %65 = vector.extract_strided_slice %63 {offsets = [14, 0, 0], sizes = [1, 16, 16], strides = [1, 1, 1]} : vector<16x16x16xf32> to vector<1x16x16xf32>
    %66 = tpu.concatenate %64, %63, %65 in 0 : vector<1x16x16xf32>, vector<16x16x16xf32>, vector<1x16x16xf32> -> vector<18x16x16xf32>
    %67 = vector.extract_strided_slice %66 {offsets = [0, 1, 0], sizes = [18, 1, 16], strides = [1, 1, 1]} : vector<18x16x16xf32> to vector<18x1x16xf32>
    %68 = vector.extract_strided_slice %66 {offsets = [0, 14, 0], sizes = [18, 1, 16], strides = [1, 1, 1]} : vector<18x16x16xf32> to vector<18x1x16xf32>
    %69 = tpu.concatenate %67, %66, %68 in 1 : vector<18x1x16xf32>, vector<18x16x16xf32>, vector<18x1x16xf32> -> vector<18x18x16xf32>
    %c0_10 = arith.constant 0 : index
    %c0_11 = arith.constant 0 : index
    %c0_12 = arith.constant 0 : index
    %70 = vector.load %arg4[%c0_10, %c0_11, %c0_12] : memref<5x5x16xf32, #tpu.memory_space<vmem>>, vector<5x5x16xf32>
    %71 = vector.extract_strided_slice %69 {offsets = [0, 0, 0], sizes = [5, 18, 16], strides = [1, 1, 1]} : vector<18x18x16xf32> to vector<5x18x16xf32>
    %72 = vector.extract_strided_slice %71 {offsets = [0, 0, 0], sizes = [5, 5, 16], strides = [1, 1, 1]} : vector<5x18x16xf32> to vector<5x5x16xf32>
    %73 = arith.mulf %72, %70 : vector<5x5x16xf32>
    %cst_13 = arith.constant dense<0.000000e+00> : vector<5x16xf32>
    %74 = vector.multi_reduction <add>, %73, %cst_13 [0] : vector<5x5x16xf32> to vector<5x16xf32>
    %cst_14 = arith.constant dense<0.000000e+00> : vector<16xf32>
    %75 = vector.multi_reduction <add>, %74, %cst_14 [0] : vector<5x16xf32> to vector<16xf32>
    %76 = vector.shape_cast %75 : vector<16xf32> to vector<1x16xf32>
    %77 = vector.extract_strided_slice %71 {offsets = [0, 4, 0], sizes = [5, 5, 16], strides = [1, 1, 1]} : vector<5x18x16xf32> to vector<5x5x16xf32>
    %78 = arith.mulf %77, %70 : vector<5x5x16xf32>
    %cst_15 = arith.constant dense<0.000000e+00> : vector<5x16xf32>
    %79 = vector.multi_reduction <add>, %78, %cst_15 [0] : vector<5x5x16xf32> to vector<5x16xf32>
    %cst_16 = arith.constant dense<0.000000e+00> : vector<16xf32>
    %80 = vector.multi_reduction <add>, %79, %cst_16 [0] : vector<5x16xf32> to vector<16xf32>
    %81 = vector.shape_cast %80 : vector<16xf32> to vector<1x16xf32>
    %82 = vector.extract_strided_slice %71 {offsets = [0, 8, 0], sizes = [5, 5, 16], strides = [1, 1, 1]} : vector<5x18x16xf32> to vector<5x5x16xf32>
    %83 = arith.mulf %82, %70 : vector<5x5x16xf32>
    %cst_17 = arith.constant dense<0.000000e+00> : vector<5x16xf32>
    %84 = vector.multi_reduction <add>, %83, %cst_17 [0] : vector<5x5x16xf32> to vector<5x16xf32>
    %cst_18 = arith.constant dense<0.000000e+00> : vector<16xf32>
    %85 = vector.multi_reduction <add>, %84, %cst_18 [0] : vector<5x16xf32> to vector<16xf32>
    %86 = vector.shape_cast %85 : vector<16xf32> to vector<1x16xf32>
    %87 = vector.extract_strided_slice %71 {offsets = [0, 12, 0], sizes = [5, 5, 16], strides = [1, 1, 1]} : vector<5x18x16xf32> to vector<5x5x16xf32>
    %88 = arith.mulf %87, %70 : vector<5x5x16xf32>
    %cst_19 = arith.constant dense<0.000000e+00> : vector<5x16xf32>
    %89 = vector.multi_reduction <add>, %88, %cst_19 [0] : vector<5x5x16xf32> to vector<5x16xf32>
    %cst_20 = arith.constant dense<0.000000e+00> : vector<16xf32>
    %90 = vector.multi_reduction <add>, %89, %cst_20 [0] : vector<5x16xf32> to vector<16xf32>
    %91 = vector.shape_cast %90 : vector<16xf32> to vector<1x16xf32>
    %92 = vector.extract_strided_slice %69 {offsets = [4, 0, 0], sizes = [5, 18, 16], strides = [1, 1, 1]} : vector<18x18x16xf32> to vector<5x18x16xf32>
    %93 = vector.extract_strided_slice %92 {offsets = [0, 0, 0], sizes = [5, 5, 16], strides = [1, 1, 1]} : vector<5x18x16xf32> to vector<5x5x16xf32>
    %94 = arith.mulf %93, %70 : vector<5x5x16xf32>
    %cst_21 = arith.constant dense<0.000000e+00> : vector<5x16xf32>
    %95 = vector.multi_reduction <add>, %94, %cst_21 [0] : vector<5x5x16xf32> to vector<5x16xf32>
    %cst_22 = arith.constant dense<0.000000e+00> : vector<16xf32>
    %96 = vector.multi_reduction <add>, %95, %cst_22 [0] : vector<5x16xf32> to vector<16xf32>
    %97 = vector.shape_cast %96 : vector<16xf32> to vector<1x16xf32>
    %98 = vector.extract_strided_slice %92 {offsets = [0, 4, 0], sizes = [5, 5, 16], strides = [1, 1, 1]} : vector<5x18x16xf32> to vector<5x5x16xf32>
    %99 = arith.mulf %98, %70 : vector<5x5x16xf32>
    %cst_23 = arith.constant dense<0.000000e+00> : vector<5x16xf32>
    %100 = vector.multi_reduction <add>, %99, %cst_23 [0] : vector<5x5x16xf32> to vector<5x16xf32>
    %cst_24 = arith.constant dense<0.000000e+00> : vector<16xf32>
    %101 = vector.multi_reduction <add>, %100, %cst_24 [0] : vector<5x16xf32> to vector<16xf32>
    %102 = vector.shape_cast %101 : vector<16xf32> to vector<1x16xf32>
    %103 = vector.extract_strided_slice %92 {offsets = [0, 8, 0], sizes = [5, 5, 16], strides = [1, 1, 1]} : vector<5x18x16xf32> to vector<5x5x16xf32>
    %104 = arith.mulf %103, %70 : vector<5x5x16xf32>
    %cst_25 = arith.constant dense<0.000000e+00> : vector<5x16xf32>
    %105 = vector.multi_reduction <add>, %104, %cst_25 [0] : vector<5x5x16xf32> to vector<5x16xf32>
    %cst_26 = arith.constant dense<0.000000e+00> : vector<16xf32>
    %106 = vector.multi_reduction <add>, %105, %cst_26 [0] : vector<5x16xf32> to vector<16xf32>
    %107 = vector.shape_cast %106 : vector<16xf32> to vector<1x16xf32>
    %108 = vector.extract_strided_slice %92 {offsets = [0, 12, 0], sizes = [5, 5, 16], strides = [1, 1, 1]} : vector<5x18x16xf32> to vector<5x5x16xf32>
    %109 = arith.mulf %108, %70 : vector<5x5x16xf32>
    %cst_27 = arith.constant dense<0.000000e+00> : vector<5x16xf32>
    %110 = vector.multi_reduction <add>, %109, %cst_27 [0] : vector<5x5x16xf32> to vector<5x16xf32>
    %cst_28 = arith.constant dense<0.000000e+00> : vector<16xf32>
    %111 = vector.multi_reduction <add>, %110, %cst_28 [0] : vector<5x16xf32> to vector<16xf32>
    %112 = vector.shape_cast %111 : vector<16xf32> to vector<1x16xf32>
    %113 = vector.extract_strided_slice %69 {offsets = [8, 0, 0], sizes = [5, 18, 16], strides = [1, 1, 1]} : vector<18x18x16xf32> to vector<5x18x16xf32>
    %114 = vector.extract_strided_slice %113 {offsets = [0, 0, 0], sizes = [5, 5, 16], strides = [1, 1, 1]} : vector<5x18x16xf32> to vector<5x5x16xf32>
    %115 = arith.mulf %114, %70 : vector<5x5x16xf32>
    %cst_29 = arith.constant dense<0.000000e+00> : vector<5x16xf32>
    %116 = vector.multi_reduction <add>, %115, %cst_29 [0] : vector<5x5x16xf32> to vector<5x16xf32>
    %cst_30 = arith.constant dense<0.000000e+00> : vector<16xf32>
    %117 = vector.multi_reduction <add>, %116, %cst_30 [0] : vector<5x16xf32> to vector<16xf32>
    %118 = vector.shape_cast %117 : vector<16xf32> to vector<1x16xf32>
    %119 = vector.extract_strided_slice %113 {offsets = [0, 4, 0], sizes = [5, 5, 16], strides = [1, 1, 1]} : vector<5x18x16xf32> to vector<5x5x16xf32>
    %120 = arith.mulf %119, %70 : vector<5x5x16xf32>
    %cst_31 = arith.constant dense<0.000000e+00> : vector<5x16xf32>
    %121 = vector.multi_reduction <add>, %120, %cst_31 [0] : vector<5x5x16xf32> to vector<5x16xf32>
    %cst_32 = arith.constant dense<0.000000e+00> : vector<16xf32>
    %122 = vector.multi_reduction <add>, %121, %cst_32 [0] : vector<5x16xf32> to vector<16xf32>
    %123 = vector.shape_cast %122 : vector<16xf32> to vector<1x16xf32>
    %124 = vector.extract_strided_slice %113 {offsets = [0, 8, 0], sizes = [5, 5, 16], strides = [1, 1, 1]} : vector<5x18x16xf32> to vector<5x5x16xf32>
    %125 = arith.mulf %124, %70 : vector<5x5x16xf32>
    %cst_33 = arith.constant dense<0.000000e+00> : vector<5x16xf32>
    %126 = vector.multi_reduction <add>, %125, %cst_33 [0] : vector<5x5x16xf32> to vector<5x16xf32>
    %cst_34 = arith.constant dense<0.000000e+00> : vector<16xf32>
    %127 = vector.multi_reduction <add>, %126, %cst_34 [0] : vector<5x16xf32> to vector<16xf32>
    %128 = vector.shape_cast %127 : vector<16xf32> to vector<1x16xf32>
    %129 = vector.extract_strided_slice %113 {offsets = [0, 12, 0], sizes = [5, 5, 16], strides = [1, 1, 1]} : vector<5x18x16xf32> to vector<5x5x16xf32>
    %130 = arith.mulf %129, %70 : vector<5x5x16xf32>
    %cst_35 = arith.constant dense<0.000000e+00> : vector<5x16xf32>
    %131 = vector.multi_reduction <add>, %130, %cst_35 [0] : vector<5x5x16xf32> to vector<5x16xf32>
    %cst_36 = arith.constant dense<0.000000e+00> : vector<16xf32>
    %132 = vector.multi_reduction <add>, %131, %cst_36 [0] : vector<5x16xf32> to vector<16xf32>
    %133 = vector.shape_cast %132 : vector<16xf32> to vector<1x16xf32>
    %134 = vector.extract_strided_slice %69 {offsets = [12, 0, 0], sizes = [5, 18, 16], strides = [1, 1, 1]} : vector<18x18x16xf32> to vector<5x18x16xf32>
    %135 = vector.extract_strided_slice %134 {offsets = [0, 0, 0], sizes = [5, 5, 16], strides = [1, 1, 1]} : vector<5x18x16xf32> to vector<5x5x16xf32>
    %136 = arith.mulf %135, %70 : vector<5x5x16xf32>
    %cst_37 = arith.constant dense<0.000000e+00> : vector<5x16xf32>
    %137 = vector.multi_reduction <add>, %136, %cst_37 [0] : vector<5x5x16xf32> to vector<5x16xf32>
    %cst_38 = arith.constant dense<0.000000e+00> : vector<16xf32>
    %138 = vector.multi_reduction <add>, %137, %cst_38 [0] : vector<5x16xf32> to vector<16xf32>
    %139 = vector.shape_cast %138 : vector<16xf32> to vector<1x16xf32>
    %140 = vector.extract_strided_slice %134 {offsets = [0, 4, 0], sizes = [5, 5, 16], strides = [1, 1, 1]} : vector<5x18x16xf32> to vector<5x5x16xf32>
    %141 = arith.mulf %140, %70 : vector<5x5x16xf32>
    %cst_39 = arith.constant dense<0.000000e+00> : vector<5x16xf32>
    %142 = vector.multi_reduction <add>, %141, %cst_39 [0] : vector<5x5x16xf32> to vector<5x16xf32>
    %cst_40 = arith.constant dense<0.000000e+00> : vector<16xf32>
    %143 = vector.multi_reduction <add>, %142, %cst_40 [0] : vector<5x16xf32> to vector<16xf32>
    %144 = vector.shape_cast %143 : vector<16xf32> to vector<1x16xf32>
    %145 = vector.extract_strided_slice %134 {offsets = [0, 8, 0], sizes = [5, 5, 16], strides = [1, 1, 1]} : vector<5x18x16xf32> to vector<5x5x16xf32>
    %146 = arith.mulf %145, %70 : vector<5x5x16xf32>
    %cst_41 = arith.constant dense<0.000000e+00> : vector<5x16xf32>
    %147 = vector.multi_reduction <add>, %146, %cst_41 [0] : vector<5x5x16xf32> to vector<5x16xf32>
    %cst_42 = arith.constant dense<0.000000e+00> : vector<16xf32>
    %148 = vector.multi_reduction <add>, %147, %cst_42 [0] : vector<5x16xf32> to vector<16xf32>
    %149 = vector.shape_cast %148 : vector<16xf32> to vector<1x16xf32>
    %150 = vector.extract_strided_slice %134 {offsets = [0, 12, 0], sizes = [5, 5, 16], strides = [1, 1, 1]} : vector<5x18x16xf32> to vector<5x5x16xf32>
    %151 = arith.mulf %150, %70 : vector<5x5x16xf32>
    %cst_43 = arith.constant dense<0.000000e+00> : vector<5x16xf32>
    %152 = vector.multi_reduction <add>, %151, %cst_43 [0] : vector<5x5x16xf32> to vector<5x16xf32>
    %cst_44 = arith.constant dense<0.000000e+00> : vector<16xf32>
    %153 = vector.multi_reduction <add>, %152, %cst_44 [0] : vector<5x16xf32> to vector<16xf32>
    %154 = vector.shape_cast %153 : vector<16xf32> to vector<1x16xf32>
    %155 = tpu.concatenate %76, %81, %86, %91, %97, %102, %107, %112, %118, %123, %128, %133, %139, %144, %149, %154 in 0 : vector<1x16xf32>, vector<1x16xf32>, vector<1x16xf32>, vector<1x16xf32>, vector<1x16xf32>, vector<1x16xf32>, vector<1x16xf32>, vector<1x16xf32>, vector<1x16xf32>, vector<1x16xf32>, vector<1x16xf32>, vector<1x16xf32>, vector<1x16xf32>, vector<1x16xf32>, vector<1x16xf32>, vector<1x16xf32> -> vector<16x16xf32>
    %cst_45 = arith.constant 0.000000e+00 : f32
    %156 = vector.broadcast %cst_45 : f32 to vector<16x16xf32>
    %157 = arith.maximumf %155, %156 : vector<16x16xf32>
    %c0_46 = arith.constant 0 : index
    %c0_47 = arith.constant 0 : index
    %158 = vector.load %arg5[%c0_46, %c0_47] : memref<1x16xf32, #tpu.memory_space<vmem>>, vector<1x16xf32>
    %159 = vector.broadcast %158 : vector<1x16xf32> to vector<16x16xf32>
    %160 = arith.mulf %157, %159 : vector<16x16xf32>
    %cst_48 = arith.constant 0.000000e+00 : f32
    %161 = vector.broadcast %cst_48 : f32 to vector<16x16xf32>
    %162 = arith.subf %161, %160 : vector<16x16xf32>
    %163 = math.exp %162 : vector<16x16xf32>
    %cst_49 = arith.constant 1.000000e+00 : f32
    %164 = vector.broadcast %cst_49 : f32 to vector<16x16xf32>
    %165 = arith.addf %164, %163 : vector<16x16xf32>
    %166 = tpu.reciprocal %165 {approx = true} : vector<16x16xf32> -> vector<16x16xf32>
    %167 = arith.mulf %157, %166 : vector<16x16xf32>
    %cst_50 = arith.constant dense<0.000000e+00> : vector<16xf32>
    %168 = vector.multi_reduction <add>, %167, %cst_50 [0] : vector<16x16xf32> to vector<16xf32>
    %169 = vector.shape_cast %168 : vector<16xf32> to vector<1x16xf32>
    %cst_51 = arith.constant 1.600000e+01 : f32
    %170 = vector.broadcast %cst_51 : f32 to vector<1x16xf32>
    %171 = arith.divf %169, %170 : vector<1x16xf32>
    %c0_52 = arith.constant 0 : index
    %c0_53 = arith.constant 0 : index
    %172 = vector.load %arg6[%c0_52, %c0_53] : memref<16x4xf32, #tpu.memory_space<vmem>>, vector<16x4xf32>
    %cst_54 = arith.constant dense<0.000000e+00> : vector<1x4xf32>
    %173 = tpu.matmul %171, %172, %cst_54 {dimension_numbers = #tpu.dot_dimension_numbers<[1], [0], [0], [1], [0, 0, 1, 1], [], []>} : vector<1x16xf32>, vector<16x4xf32>, vector<1x4xf32> -> vector<1x4xf32>
    %cst_55 = arith.constant 0.000000e+00 : f32
    %174 = vector.broadcast %cst_55 : f32 to vector<1x4xf32>
    %175 = arith.maximumf %173, %174 : vector<1x4xf32>
    %c0_56 = arith.constant 0 : index
    %c0_57 = arith.constant 0 : index
    %176 = vector.load %arg7[%c0_56, %c0_57] : memref<4x16xf32, #tpu.memory_space<vmem>>, vector<4x16xf32>
    %cst_58 = arith.constant dense<0.000000e+00> : vector<1x16xf32>
    %177 = tpu.matmul %175, %176, %cst_58 {dimension_numbers = #tpu.dot_dimension_numbers<[1], [0], [0], [1], [0, 0, 1, 1], [], []>} : vector<1x4xf32>, vector<4x16xf32>, vector<1x16xf32> -> vector<1x16xf32>
    %cst_59 = arith.constant 0.000000e+00 : f32
    %178 = vector.broadcast %cst_59 : f32 to vector<1x16xf32>
    %179 = arith.subf %178, %177 : vector<1x16xf32>
    %180 = math.exp %179 : vector<1x16xf32>
    %cst_60 = arith.constant 1.000000e+00 : f32
    %181 = vector.broadcast %cst_60 : f32 to vector<1x16xf32>
    %182 = arith.addf %181, %180 : vector<1x16xf32>
    %183 = tpu.reciprocal %182 {approx = true} : vector<1x16xf32> -> vector<1x16xf32>
    %184 = vector.broadcast %183 : vector<1x16xf32> to vector<256x16xf32>
    %185 = arith.mulf %62, %184 : vector<256x16xf32>
    %186 = vector.shape_cast %1 : vector<16x16x16xf32> to vector<256x16xf32>
    %187 = arith.addf %185, %186 : vector<256x16xf32>
    %188 = vector.shape_cast %187 : vector<256x16xf32> to vector<16x16x16xf32>
    %c0_61 = arith.constant 0 : index
    %c0_62 = arith.constant 0 : index
    %c0_63 = arith.constant 0 : index
    %c0_64 = arith.constant 0 : index
    %189 = vector.load %arg8[%c0_61, %c0_62, %c0_63, %c0_64] : memref<1x16x16x16xf32, #tpu.memory_space<vmem>>, vector<1x16x16x16xf32>
    %190 = vector.shape_cast %189 : vector<1x16x16x16xf32> to vector<16x16x16xf32>
    %191 = vector.shape_cast %188 : vector<16x16x16xf32> to vector<1x16x16x16xf32>
    tpu.vector_store %arg8[%c0_61, %c0_62, %c0_63, %c0_64], %191 {strides = array<i32>} : memref<1x16x16x16xf32, #tpu.memory_space<vmem>>, vector<1x16x16x16xf32>,
    return
  }
  func.func @transform_0(%arg0: i32) -> (i32, i32, i32, i32) {
    %c0_i32 = arith.constant 0 : i32
    %c0_i32_0 = arith.constant 0 : i32
    %c0_i32_1 = arith.constant 0 : i32
    %c0_i32_2 = arith.constant 0 : i32
    return %arg0, %c0_i32, %c0_i32_0, %c0_i32_1 : i32, i32, i32, i32
  }
  func.func @transform_1(%arg0: i32) -> (i32, i32) {
    %c0_i32 = arith.constant 0 : i32
    %c0_i32_0 = arith.constant 0 : i32
    %c0_i32_1 = arith.constant 0 : i32
    return %c0_i32, %c0_i32_0 : i32, i32
  }
  func.func @transform_2(%arg0: i32) -> (i32, i32) {
    %c0_i32 = arith.constant 0 : i32
    %c0_i32_0 = arith.constant 0 : i32
    %c0_i32_1 = arith.constant 0 : i32
    return %c0_i32, %c0_i32_0 : i32, i32
  }
  func.func @transform_3(%arg0: i32) -> (i32, i32, i32) {
    %c0_i32 = arith.constant 0 : i32
    %c0_i32_0 = arith.constant 0 : i32
    %c0_i32_1 = arith.constant 0 : i32
    %c0_i32_2 = arith.constant 0 : i32
    return %c0_i32, %c0_i32_0, %c0_i32_1 : i32, i32, i32
  }
  func.func @transform_4(%arg0: i32) -> (i32, i32) {
    %c0_i32 = arith.constant 0 : i32
    %c0_i32_0 = arith.constant 0 : i32
    %c0_i32_1 = arith.constant 0 : i32
    return %c0_i32, %c0_i32_0 : i32, i32
  }
  func.func @transform_5(%arg0: i32) -> (i32, i32) {
    %c0_i32 = arith.constant 0 : i32
    %c0_i32_0 = arith.constant 0 : i32
    %c0_i32_1 = arith.constant 0 : i32
    return %c0_i32, %c0_i32_0 : i32, i32
  }
  func.func @transform_6(%arg0: i32) -> (i32, i32) {
    %c0_i32 = arith.constant 0 : i32
    %c0_i32_0 = arith.constant 0 : i32
    %c0_i32_1 = arith.constant 0 : i32
    return %c0_i32, %c0_i32_0 : i32, i32
  }
  func.func @transform_7(%arg0: i32) -> (i32, i32, i32, i32) {
    %c0_i32 = arith.constant 0 : i32
    %c0_i32_0 = arith.constant 0 : i32
    %c0_i32_1 = arith.constant 0 : i32
    %c0_i32_2 = arith.constant 0 : i32
    return %arg0, %c0_i32, %c0_i32_0, %c0_i32_1 : i32, i32, i32, i32
  }
}

</mosaic_0001>

<bundles_post_ra>
// kernel: se_resblock_forward.1
= control target key start
LH: loop header
LB: loop body
LE: loop exit
PB: predicated region body
PF: predicated region fallthrough
CT: control target
= control target key end

     0   :  { %12 = vsyncpa [#allocation3], 0  ;;  %s9081_s0 = inlined_call_operand.hbm [shape: f32[2,16,16,16], index: 0, kind: input, shape index: {}]   ;;  %s9082_s1 = inlined_call_operand.vmem [shape: bf16[144,16], index: 1, kind: input, shape index: {}]   ;;  %s9083_s2 = inlined_call_operand.vmem [shape: bf16[144,16], index: 2, kind: input, shape index: {}]   ;;  %s9084_s3 = inlined_call_operand.vmem [shape: f32[5,5,16], index: 3, kind: input, shape index: {}]   ;;  %s9085_s4 = inlined_call_operand.vmem [shape: f32[1,16], index: 4, kind: input, shape index: {}]   ;;  %s9086_s5 = inlined_call_operand.vmem [shape: f32[16,4], index: 5, kind: input, shape index: {}]   ;;  %s9087_s6 = inlined_call_operand.vmem [shape: f32[4,16], index: 6, kind: input, shape index: {}]   ;;  %s9088_s7 = inlined_call_operand.hbm [shape: f32[2,16,16,16], index: 7, kind: output, shape index: {}]  }
   0x1   :  { %14 = vsyncpa [#allocation3 + $0x1], 0 }
   0x2   :  { %15 = vsyncpa [#allocation4], 0 }
   0x3   :  { %17 = vsyncpa [#allocation4 + $0x1], 0  ;;  %s6221_s24 = smov 0   ;;  %s6223_s25 = smov 0  }
   0x4   :  { %s6225_s26 = smov 0   ;;  %s6227_s27 = smov 0  }
   0x5 LB: > { %s6242_s28 = sadd.s32 4294967295, %s6162_s27   ;;  %s4769_s29 = sadd.s32 4294967294, %s6162_s27   ;;  %s6162_s27 = sphi %s6227_s27, %s9216_s27   ;;  %s6158_s26 = sphi %s6225_s26, %s9215_s26   ;;  %s6154_s25 = sphi %s6223_s25, %s9214_s25   ;;  %s6150_s24 = sphi %s6221_s24, %s9213_s24  }
   0x6   : > { %s6246_s30 = sadd.s32 1, %s6162_s27   ;;  %s30_s8 = sadd.s32 1, %s6158_s26 }
   0x7   : > { %s27_s9 = ssub.s32 %s6162_s27, %s6246_s30  ;;  %p37_p0 = scmp.ne.s32.totalorder %s6158_s26, %s6154_s25 }
   0x8   : > { %p28_p1 = scmp.eq.s32.totalorder %s27_s9, 0  ;;  %p38_p2 = scmp.eq.s32.totalorder %s6162_s27, 0 }
   0x9   : > { %p43_p3 = scmp.ne.s32.totalorder %s6154_s25, %s6150_s24  ;;  %p44_p4 = scmp.eq.s32.totalorder %s6242_s28, 0 }
   0xa   : > { %s6258_s10 = scalar_select %p28_p1, %s6158_s26, %s30_s8  }
   0xb   : > { %p6260_p5 = por %p38_p2, %p37_p0  ;;  %p6264_p6 = por %p44_p4, %p43_p3 }
   0xc   : > { %p193_p7 = scmp.eq.s32.totalorder %s6242_s28, 1  ;;  %p199_p8 = scmp.eq.s32.totalorder %s4769_s29, 1 }
   0xd   : > { %p4871_p10 = scmp.lt.s32.totalorder %s6162_s27, 2  ;;  %s237_s15 = sand.u32 1, %s6158_s26  }
   0xe   : > { %p6271_p11 = por %p193_p7, %p37_p0  ;;  %p6275_p12 = por %p199_p8, %p43_p3 }
   0xf   : > { %s4837_s16 = sshll.u32 %s6162_s27, 12  ;;  %s4772_s17 = sshll.u32 %s237_s15, 8 }
  0x10   : > { %s9125_s13 = scalar_select %p6271_p11, 1, 0 }
  0x11   : > { %s9126_s14 = scalar_select %p6275_p12, 1, 0 }
  0x12   : > { %s6284_s20 = scalar_lea.hbm %s9081_s0, %s4837_s16  ;;  %s241_s21 = scalar_lea.vmem [#allocation2], %s4772_s17 }
  0x13   : > { %s248_s22 = sshll.u32 %s241_s21, 4  ;;  %p6288_p13 = pnand %p4871_p10, %p6260_p5  ;;  %s6292_s22 = int_to_ptr.vmem [resolvable:$true] %s248_s22 }
  0x14   : > { %s6294_s29 = scalar_lea.sflag [#allocation3], %s237_s15  ;;  %s6066_s8 = scalar_lea.hbm %s6284_s20, 4096 }
  0x15   : > { %p6067_p0 = scmp.ne.s32.totalorder %s6284_s20, %s6066_s8  ;;  %p6068_p1 = pneg %p6288_p13 }
  0x16   : > { %s6071_s16 = scalar_lea.hbm %s9081_s0, 8192  ;;  %p6072_p4 = scmp.lt.u32.totalorder %s6284_s20, %s9081_s0 }
  0x17   : > { %p6069_p2 = pnand %p6068_p1, %p6067_p0  ;;  %p6073_p5 = scmp.lt.u32.totalorder %s6071_s16, %s6066_s8 }
  0x18   : > { %p6075_p8 = scmp.lt.u32.totalorder %s6066_s8, %s6284_s20 }
  0x19   : > { %p6070_p3 = pneg %p6069_p2  ;;  %p6074_p7 = por %p6073_p5, %p6072_p4 }
  0x1b   : > { %p6076_p10 = por %p6075_p8, %p6074_p7 }
  0x1d   : > { %p6077_p9 = pnand %p6076_p10, %p6070_p3 }
  0x1f   : > { %6080 = shalt.err (!%p6077_p9)
}
  0x20   : > { %s6081_s15 = scalar_lea.vmem %s6292_s22, 4096  ;;  %s6164_s19 = smov [#allocation2]  }
  0x21   : > { %p6082_p0 = scmp.ne.s32.totalorder %s6292_s22, %s6081_s15  ;;  %s6086_s21 = sshll.u32 %s6164_s19, 4  ;;  %s6087_s21 = int_to_ptr.vmem [resolvable:$false] %s6086_s21 }
  0x22   : > { %s6088_s9 = scalar_lea.vmem %s6087_s21, 8192  ;;  %p6089_p11 = scmp.lt.s32.totalorder %s6292_s22, %s6087_s21 }
  0x23   : > { %p6084_p2 = pnand %p6082_p0, %p6068_p1  ;;  %p6090_p4 = scmp.lt.s32.totalorder %s6088_s9, %s6081_s15 }
  0x25   : > { %p6085_p12 = pneg %p6084_p2  ;;  %p6091_p5 = por %p6090_p4, %p6089_p11 }
  0x27   : > { %p6092_p7 = pnand %p6091_p5, %p6085_p12 }
  0x29   : > { %6095 = shalt.err (!%p6092_p7)
}
  0x2a   : > { %s6165_s8 = smov 128   ;;  %s6166_s11 = smov 8  }
  0x2b   : > { %4866 = dma.hbm_to_vmem [thread:$0]  (!%p6288_p13), %s6284_s20, 4096, %s6292_s22, %s6294_s29, %s6165_s8, %s6165_s8, %s6166_s11  }
  0x2c   : > { %p4775_p9 = scmp.ge.s32.totalorder %s6162_s27, 1  ;;  %p256_p1 = scmp.lt.s32.totalorder %s6162_s27, 3 }
  0x2e   : > { %p257_p3 = pnand %p4775_p9, %p256_p1 }
  0x30   : > { %260 = sbr.rel (%p257_p3) target bundleno = 1556 (0x614), region = 48 }
  0x37   : > { %s6325_s16 = sand.u32 1, %s6154_s25  }
  0x38   : > { %s9098_s17 = sshll.u32 %s6325_s16, 8  ;;  %s263_s18 = scalar_lea.sflag [#allocation3], %s6325_s16 }
  0x39   : > { %s6331_s15 = scalar_lea.vmem [#allocation2], %s9098_s17 }
  0x3a   : > { %6141 = dma.done.wait (%p6264_p6), %s263_s18, 4096  }
  0x3b   : > { %6143 = vsyncadd (%p6264_p6), %s263_s18, 4294963200  ;;  %v9090_v0 = vmov 0   ;;  %v298_v1 = vld [vmem:[%s6331_s15] sm:$0xff]  ;;  %v299_v2 = vld [vmem:[%s6331_s15 + $0x8] sm:$0xff]  ;;  %vm394_vm0 = vcmask 1040384   ;;  %vm584_vm1 = vcmask 1046528  }
  0x3c   : > { %1801 = vmatprep.subr.bf16.mxu0 %v9090_v0  ;;  %3455 = vmatprep.subr.bf16.mxu1 %v9090_v0  ;;  %v300_v3 = vld [vmem:[%s6331_s15 + $0x10] sm:$0xff]  ;;  %v347_v4 = vrot.slane %v298_v1, 1  ;;  %v398_v5 = vrot.slane %v298_v1, 7  ;;  %v399_v6 = vrot.slane %v299_v2, 7  ;;  %v491_v7 = vrot.slane %v299_v2, 5  ;;  %v301_v8 = vld [vmem:[%s6331_s15 + $0x18] sm:$0xff] }
  0x3d   : > { %v346_v9 = vrot.slane %v300_v3, 1  ;;  %v395_v10 = vrot.slane %v300_v3, 7  ;;  %v396_v11 = vrot.slane %v301_v8, 7  ;;  %v490_v12 = vrot.slane %v301_v8, 5  ;;  %s6168_s12 = smov 48   ;;  %v302_v32 = vld [vmem:[%s6331_s15 + $0x20] sm:$0xff] }
  0x3e   : > { %v6344_v13 = vsel %vm394_vm0, %v398_v5, %v399_v6  ;;  %v6347_v14 = vsel %vm394_vm0, %v347_v4, %v398_v5  ;;  %vm660_vm2 = vcmask 1045504   ;;  %v539_v15 = vsel %vm394_vm0, %v399_v6, %v491_v7  ;;  %v6000_v33 = vld [vmem:[%s9082_s1] sm:$0xff]   ;;  %v303_v38 = vld [vmem:[%s6331_s15 + $0x28] sm:$0xff]  ;;  %s6169_s19 = smov 16   ;;  %s6170_s21 = smov 96   ;;  %v6002_v52 = vld [vmem:[%s9082_s1 + $0x10] sm:$0xff]  }
  0x3f   : > { %v4920_v16 = vpack.i.bf16 %v6344_v13, %v6347_v14  ;;  %v6353_v17 = vsel %vm394_vm0, %v395_v10, %v396_v11  ;;  %v6356_v18 = vsel %vm394_vm0, %v346_v9, %v395_v10  ;;  %v538_v19 = vsel %vm394_vm0, %v396_v11, %v490_v12  ;;  %1802 = vmatpush1.bf16.msra.mxu0 %v6000_v33  ;;  %v6001_v42 = vld [vmem:[%s9082_s1 + $0x8] sm:$0xff]   ;;  %s6171_s11 = smov 32   ;;  %s6172_s18 = smov 64   ;;  %v6003_v57 = vld [vmem:[%s9082_s1 + $0x18] sm:$0xff]   ;;  %v6004_v61 = vld [vmem:[%s9082_s1 + $0x20] sm:$0xff]  }
  0x40   : > { %v585_v20 = vrot.slane %v6356_v18, 1  ;;  %v586_v21 = vrot.slane %v6353_v17, 1  ;;  %v588_v22 = vrot.slane %v538_v19, 1  ;;  %v664_v23 = vrot.slane %v538_v19, 2  ;;  %1803 = vmatprep.subr.bf16.mxu0 %v9090_v0  ;;  %s6173_s23 = smov 80   ;;  %s9099_s8 = smov 112  }
  0x41   : > { %4921 = vrot.lane.b32.xlu1 %v4920_v16, %s6168_s12  ;;  %v4925_v24 = vpack.i.bf16 %v6353_v17, %v6356_v18  ;;  %v661_v25 = vrot.slane %v6356_v18, 2  ;;  %v662_v26 = vrot.slane %v6353_v17, 2  ;;  %v590_v27 = vrot.slane %v6347_v14, 1  ;;  %v304_v62 = vld [vmem:[%s6331_s15 + $0x30] sm:$0xff]  ;;  %v305_v2 = vld [vmem:[%s6331_s15 + $0x38] sm:$0xff]  ;;  %v6005_v3 = vld [vmem:[%s9082_s1 + $0x28] sm:$0xff]  }
  0x42   : > { %v587_v28 = vsel %vm584_vm1, %v585_v20, %v586_v21  ;;  %v589_v29 = vsel %vm584_vm1, %v586_v21, %v588_v22  ;;  %v591_v30 = vrot.slane %v6344_v13, 1  ;;  %v593_v31 = vrot.slane %v539_v15, 1  ;;  %v6006_v9 = vld [vmem:[%s9082_s1 + $0x30] sm:$0xff]   ;;  %v306_v21 = vld [vmem:[%s6331_s15 + $0x40] sm:$0xff]  ;;  %v307_v22 = vld [vmem:[%s6331_s15 + $0x48] sm:$0xff]  ;;  %s9150_s20 = smov 112  }
  0x43   : > { %v6374_v34 = vpack.i.bf16 %v589_v29, %v587_v28  ;;  %v6377_v35 = vsel %vm660_vm2, %v661_v25, %v662_v26  ;;  %v6380_v36 = vsel %vm660_vm2, %v662_v26, %v664_v23  ;;  %v666_v37 = vrot.slane %v6347_v14, 2  ;;  %1804 = vmatpush1.bf16.msra.mxu0 %v6001_v42  ;;  %v6007_v23 = vld [vmem:[%s9082_s1 + $0x38] sm:$0xff]   ;;  %p9210_p11 = scmp.ne.s32.totalorder %s9125_s13, 0  ;;  %s6178_s29 = smov [#allocation5]  }
  0x44   : > { %v592_v39 = vsel %vm584_vm1, %v590_v27, %v591_v30  ;;  %v594_v40 = vsel %vm584_vm1, %v591_v30, %v593_v31  ;;  %v667_v41 = vrot.slane %v6344_v13, 2  ;;  %v4935_v43 = vpack.i.bf16 %v6380_v36, %v6377_v35  ;;  %1805 = vmatprep.subr.bf16.mxu0 %v9090_v0  ;;  %s6100_s9 = sshll.u32 %s6178_s29, 4  ;;  %s6101_s9 = int_to_ptr.vmem [resolvable:$false] %s6100_s9 }
  0x45   : > { %4931 = vrot.lane.b32.xlu0 %v6374_v34, %s6169_s19  ;;  %4926 = vrot.lane.b32.xlu1 %v4925_v24, %s6170_s21  ;;  %v4940_v44 = vpack.i.bf16 %v594_v40, %v592_v39  ;;  %v669_v45 = vrot.slane %v539_v15, 2  ;;  %v348_v47 = vrot.slane %v302_v32, 1  ;;  %v401_v49 = vrot.slane %v302_v32, 7 }
  0x46   : > { %v668_v46 = vsel %vm660_vm2, %v666_v37, %v667_v41  ;;  %v402_v50 = vrot.slane %v303_v38, 7  ;;  %v492_v51 = vrot.slane %v303_v38, 5  ;;  %v349_v5 = vrot.slane %v304_v62, 1 }
  0x47   : > { %v670_v48 = vsel %vm660_vm2, %v667_v41, %v669_v45  ;;  %v6408_v55 = vsel %vm394_vm0, %v348_v47, %v401_v49  ;;  %1806 = vmatpush1.bf16.msra.mxu0 %v6002_v52  ;;  %v404_v6 = vrot.slane %v304_v62, 7  ;;  %v405_v7 = vrot.slane %v305_v2, 7 }
  0x48   : > { %v4945_v53 = vpack.i.bf16 %v670_v48, %v668_v46  ;;  %v6405_v54 = vsel %vm394_vm0, %v401_v49, %v402_v50  ;;  %v540_v56 = vsel %vm394_vm0, %v402_v50, %v492_v51  ;;  %v595_v58 = vrot.slane %v6408_v55, 1  ;;  %1807 = vmatprep.subr.bf16.mxu0 %v9090_v0 }
  0x49   : > { %4936 = vrot.lane.b32.xlu0 %v4935_v43, %s6171_s11  ;;  %4941 = vrot.lane.b32.xlu1 %v4940_v44, %s6172_s18  ;;  %v596_v59 = vrot.slane %v6405_v54, 1  ;;  %v598_v60 = vrot.slane %v540_v56, 1  ;;  %v493_v8 = vrot.slane %v305_v2, 5  ;;  %v4980_v10 = vpack.i.bf16 %v6405_v54, %v6408_v55 }
  0x4a   : > { %v671_v11 = vrot.slane %v6408_v55, 2  ;;  %v672_v12 = vrot.slane %v6405_v54, 2  ;;  %v674_v15 = vrot.slane %v540_v56, 2  ;;  %v6447_v16 = vsel %vm394_vm0, %v404_v6, %v405_v7 }
  0x4b   : > { %1808 = vmatpush1.bf16.msra.mxu0 %v6003_v57  ;;  %v597_v63 = vsel %vm584_vm1, %v595_v58, %v596_v59  ;;  %v599_v1 = vsel %vm584_vm1, %v596_v59, %v598_v60  ;;  %v6450_v19 = vsel %vm394_vm0, %v349_v5, %v404_v6  ;;  %v541_v20 = vsel %vm394_vm0, %v405_v7, %v493_v8  ;;  %v308_v58 = vld [vmem:[%s6331_s15 + $0x50] sm:$0xff]  ;;  %v309_v59 = vld [vmem:[%s6331_s15 + $0x58] sm:$0xff] }
  0x4c   : > { %1809 = vmatprep.subr.bf16.mxu0 %v9090_v0  ;;  %v4985_v4 = vpack.i.bf16 %v599_v1, %v597_v63  ;;  %v5005_v25 = vpack.i.bf16 %v6447_v16, %v6450_v19  ;;  %v6467_v26 = vsel %vm660_vm2, %v672_v12, %v674_v15  ;;  %v600_v27 = vrot.slane %v6450_v19, 1 }
  0x4d   : > { %4946 = vrot.lane.b32.xlu0 %v4945_v53, %s6173_s23  ;;  %4956 = vrot.lane.b32.xlu1 %v4940_v44, %s6169_s19  ;;  %v601_v28 = vrot.slane %v6447_v16, 1  ;;  %v603_v29 = vrot.slane %v541_v20, 1  ;;  %v350_v30 = vrot.slane %v306_v21, 1  ;;  %v407_v31 = vrot.slane %v306_v21, 7 }
  0x4e   : > { %v408_v32 = vrot.slane %v307_v22, 7  ;;  %v494_v33 = vrot.slane %v307_v22, 5  ;;  %v676_v38 = vrot.slane %v6450_v19, 2  ;;  %v677_v39 = vrot.slane %v6447_v16, 2 }
  0x4f   : > { %1810 = vmatpush1.bf16.msra.mxu0 %v6004_v61  ;;  %v602_v40 = vsel %vm584_vm1, %v600_v27, %v601_v28  ;;  %v604_v41 = vsel %vm584_vm1, %v601_v28, %v603_v29  ;;  %v679_v42 = vrot.slane %v541_v20, 2  ;;  %v6488_v44 = vsel %vm394_vm0, %v350_v30, %v407_v31 }
  0x50   : > { %1811 = vmatprep.subr.bf16.mxu0 %v9090_v0  ;;  %v542_v45 = vsel %vm394_vm0, %v408_v32, %v494_v33  ;;  %v5010_v46 = vpack.i.bf16 %v604_v41, %v602_v40  ;;  %v6494_v47 = vsel %vm660_vm2, %v676_v38, %v677_v39  ;;  %v605_v49 = vrot.slane %v6488_v44, 1 }
  0x51   : > { %4951 = vrot.lane.b32.xlu0 %v6374_v34, %s9099_s8  ;;  %4966 = vrot.lane.b32.xlu1 %v4925_v24, %s6168_s12  ;;  %v6462_v24 = vsel %vm660_vm2, %v671_v11, %v672_v12  ;;  %v6497_v48 = vsel %vm660_vm2, %v677_v39, %v679_v42  ;;  %v608_v51 = vrot.slane %v542_v45, 1  ;;  %v351_v61 = vrot.slane %v308_v58, 1 }
  0x52   : > { %v5000_v37 = vpack.i.bf16 %v6467_v26, %v6462_v24  ;;  %v5035_v52 = vpack.i.bf16 %v6497_v48, %v6494_v47  ;;  %v410_v62 = vrot.slane %v308_v58, 7  ;;  %v411_v63 = vrot.slane %v309_v59, 7  ;;  %v313_v58 = vld [vmem:[%s6331_s15 + $0x78] sm:$0xff] }
  0x53   : > { %1812 = vmatpush1.bf16.msra.mxu0 %v6005_v3  ;;  %v495_v1 = vrot.slane %v309_v59, 5  ;;  %v681_v2 = vrot.slane %v6488_v44, 2  ;;  %v1654_v7 = vpack.c.bf16 %v6380_v36, %v6377_v35  ;;  %vm1426_vm3 = vcmask 130048  }
  0x54   : > { %1813 = vmatprep.subr.bf16.mxu0 %v9090_v0  ;;  %v6520_v5 = vsel %vm394_vm0, %v410_v62, %v411_v63  ;;  %v6523_v6 = vsel %vm394_vm0, %v351_v61, %v410_v62  ;;  %vm1457_vm4 = vcmask 261120   ;;  %vm1488_vm5 = vcmask 392192  }
  0x55   : > { %4961 = vrot.lane.b32.xlu0 %v4945_v53, %s6171_s11  ;;  %4976 = vrot.lane.b32.xlu1 %v4935_v43, %s6173_s23  ;;  %v6485_v43 = vsel %vm394_vm0, %v407_v31, %v408_v32  ;;  %v543_v8 = vsel %vm394_vm0, %v411_v63, %v495_v1  ;;  %v5075_v12 = vpack.i.bf16 %v6520_v5, %v6523_v6  ;;  %v610_v35 = vrot.slane %v6523_v6, 1 }
  0x56   : > { %v606_v50 = vrot.slane %v6485_v43, 1  ;;  %v5040_v60 = vpack.i.bf16 %v6485_v43, %v6488_v44  ;;  %v682_v3 = vrot.slane %v6485_v43, 2  ;;  %4787 = vmatprep.mubr.msk.bf16.mxu0 %vm1426_vm3, %v1654_v7  ;;  %v611_v36 = vrot.slane %v6520_v5, 1 }
  0x57   : > { %1814 = vmatpush1.bf16.msra.mxu0 %v6006_v9  ;;  %v310_v9 = vld [vmem:[%s6331_s15 + $0x60] sm:$0xff]  ;;  %v613_v20 = vrot.slane %v543_v8, 1  ;;  %v686_v29 = vrot.slane %v6523_v6, 2  ;;  %v687_v30 = vrot.slane %v6520_v5, 2  ;;  %v689_v31 = vrot.slane %v543_v8, 2 }
  0x58   : > { %1815 = vmatprep.subr.bf16.mxu0 %v9090_v0  ;;  %v607_v53 = vsel %vm584_vm1, %v605_v49, %v606_v50  ;;  %v609_v56 = vsel %vm584_vm1, %v606_v50, %v608_v51  ;;  %v6534_v11 = vsel %vm660_vm2, %v681_v2, %v682_v3  ;;  %v352_v21 = vrot.slane %v310_v9, 1 }
  0x59   : > { %4971 = vrot.lane.b32.xlu0 %v6374_v34, %s6172_s18  ;;  %4986 = vrot.lane.b32.xlu1 %v4985_v4, %s9099_s8  ;;  %v6008_v34 = vld [vmem:[%s9082_s1 + $0x40] sm:$0xff]   ;;  %v5045_v57 = vpack.i.bf16 %v609_v56, %v607_v53  ;;  %v413_v22 = vrot.slane %v310_v9, 7  ;;  %v612_v32 = vsel %vm584_vm1, %v610_v35, %v611_v36  ;;  %v614_v33 = vsel %vm584_vm1, %v611_v36, %v613_v20  ;;  %v315_v20 = vld [vmem:[%s6331_s15 + $0x88] sm:$0xff] }
  0x5a   : > { %v5080_v39 = vpack.i.bf16 %v614_v33, %v612_v32  ;;  %v6563_v40 = vsel %vm660_vm2, %v686_v29, %v687_v30  ;;  %v6566_v41 = vsel %vm660_vm2, %v687_v30, %v689_v31  ;;  %v417_v2 = vrot.slane %v313_v58, 7 }
  0x5b   : > { %1816 = vmatpush1.bf16.msra.mxu0 %v6007_v23  ;;  %v5105_v50 = vpack.i.bf16 %v6566_v41, %v6563_v40  ;;  %v420_v33 = vrot.slane %v315_v20, 7  ;;  %vm1521_vm6 = vcmask 523264   ;;  %vm1554_vm7 = vcmask 654336  }
  0x5c   : > { %1817 = vmatprep.subr.bf16.mxu0 %v9090_v0  ;;  %vm1587_vm8 = vcmask 785408   ;;  %vm1620_vm9 = vcmask 916480   ;;  %vm3882_vm10 = vcmask 126976   ;;  %vm3924_vm11 = vcmask 130052  }
  0x5d   : > { %4981 = vrot.lane.b32.xlu0 %v4980_v10, %s6170_s21  ;;  %4996 = vrot.lane.b32.xlu1 %v4985_v4, %s6172_s18  ;;  %vm3934_vm12 = vcmask 122880   ;;  %vm3946_vm13 = vcmask 1043456   ;;  %vm6176_vm14 = vmmov 0   ;;  %vm4373_vm15 = vcmask 1041408  }
  0x5f   : > { %1818 = vmatpush1.bf16.msra.mxu0 %v6008_v34 }
  0x61   : > { %4991 = vrot.lane.b32.xlu0 %v4980_v10, %s6168_s12  ;;  %5006 = vrot.lane.b32.xlu1 %v5005_v25, %s6170_s21  ;;  %v311_v10 = vld [vmem:[%s6331_s15 + $0x68] sm:$0xff] }
  0x62   : > { %v414_v23 = vrot.slane %v311_v10, 7 }
  0x64   : > { %v6554_v34 = vsel %vm394_vm0, %v413_v22, %v414_v23 }
  0x65   : > { %5001 = vrot.lane.b32.xlu0 %v5000_v37, %s6173_s23  ;;  %5016 = vrot.lane.b32.xlu1 %v4985_v4, %s6169_s19  ;;  %v684_v4 = vrot.slane %v542_v45, 2  ;;  %v616_v45 = vrot.slane %v6554_v34, 1  ;;  %v692_v61 = vrot.slane %v6554_v34, 2 }
  0x67   : > { %v6539_v15 = vsel %vm660_vm2, %v682_v3, %v684_v4  ;;  %v497_v3 = vrot.slane %v313_v58, 5 }
  0x68   : > { %v5070_v28 = vpack.i.bf16 %v6539_v15, %v6534_v11 }
  0x69   : > { %5011 = vrot.lane.b32.xlu0 %v5010_v46, %s9099_s8  ;;  %5026 = vrot.lane.b32.xlu1 %v5005_v25, %s6168_s12  ;;  %v496_v25 = vrot.slane %v311_v10, 5  ;;  %v314_v10 = vld [vmem:[%s6331_s15 + $0x80] sm:$0xff]  ;;  %v545_v35 = vsel %vm394_vm0, %v417_v2, %v497_v3 }
  0x6a   : > { %v699_v31 = vrot.slane %v545_v35, 2  ;;  %v419_v32 = vrot.slane %v314_v10, 7 }
  0x6b   : > { %v544_v38 = vsel %vm394_vm0, %v414_v23, %v496_v25 }
  0x6c   : > { %v694_v62 = vrot.slane %v544_v38, 2 }
  0x6d   : > { %5021 = vrot.lane.b32.xlu0 %v5000_v37, %s6171_s11  ;;  %5036 = vrot.lane.b32.xlu1 %v5035_v52, %s6173_s23  ;;  %v6557_v37 = vsel %vm394_vm0, %v352_v21, %v413_v22  ;;  %v354_v22 = vrot.slane %v314_v10, 1 }
  0x6e   : > { %v615_v42 = vrot.slane %v6557_v37, 1  ;;  %v5110_v59 = vpack.i.bf16 %v6554_v34, %v6557_v37  ;;  %v6598_v8 = vsel %vm660_vm2, %v692_v61, %v694_v62 }
  0x70   : > { %v617_v51 = vsel %vm584_vm1, %v615_v42, %v616_v45 }
  0x71   : > { %5031 = vrot.lane.b32.xlu0 %v5010_v46, %s6172_s18  ;;  %5046 = vrot.lane.b32.xlu1 %v5045_v57, %s9099_s8 }
  0x75   : > { %5041 = vrot.lane.b32.xlu0 %v5040_v60, %s6170_s21  ;;  %5056 = vrot.lane.b32.xlu1 %v5035_v52, %s6171_s11 }
  0x79   : > { %5051 = vrot.lane.b32.xlu0 %v5010_v46, %s6169_s19  ;;  %5066 = vrot.lane.b32.xlu1 %v5045_v57, %s6172_s18  ;;  %v618_v46 = vrot.slane %v544_v38, 1  ;;  %v498_v38 = vrot.slane %v315_v20, 5 }
  0x7b   : > { %v619_v52 = vsel %vm584_vm1, %v616_v45, %v618_v46 }
  0x7c   : > { %v5115_v56 = vpack.i.bf16 %v619_v52, %v617_v51  ;;  %v6632_v51 = vsel %vm394_vm0, %v419_v32, %v420_v33  ;;  %v6635_v52 = vsel %vm394_vm0, %v354_v22, %v419_v32 }
  0x7d   : > { %5061 = vrot.lane.b32.xlu0 %v5040_v60, %s6168_s12  ;;  %5076 = vrot.lane.b32.xlu1 %v5075_v12, %s6170_s21  ;;  %v691_v60 = vrot.slane %v6557_v37, 2  ;;  %v5180_v32 = vpack.i.bf16 %v6632_v51, %v6635_v52 }
  0x7f   : > { %v6595_v7 = vsel %vm660_vm2, %v691_v60, %v692_v61  ;;  %v625_v60 = vrot.slane %v6635_v52, 1  ;;  %v626_v61 = vrot.slane %v6632_v51, 1 }
  0x81   : > { %5071 = vrot.lane.b32.xlu0 %v5070_v28, %s6173_s23  ;;  %5086 = vrot.lane.b32.xlu1 %v5045_v57, %s6169_s19  ;;  %v312_v57 = vld [vmem:[%s6331_s15 + $0x70] sm:$0xff] }
  0x82   : > { %v353_v63 = vrot.slane %v312_v57, 1  ;;  %v416_v1 = vrot.slane %v312_v57, 7  ;;  %v546_v57 = vsel %vm394_vm0, %v420_v33, %v498_v38 }
  0x83   : > { %v628_v62 = vrot.slane %v546_v57, 1 }
  0x84   : > { %v6601_v9 = vsel %vm394_vm0, %v353_v63, %v416_v1  ;;  %v701_v63 = vrot.slane %v6635_v52, 2 }
  0x85   : > { %5081 = vrot.lane.b32.xlu0 %v5080_v39, %s9099_s8  ;;  %5096 = vrot.lane.b32.xlu1 %v5075_v12, %s6168_s12  ;;  %v6605_v12 = vsel %vm394_vm0, %v416_v1, %v417_v2  ;;  %v620_v21 = vrot.slane %v6601_v9, 1  ;;  %v696_v29 = vrot.slane %v6601_v9, 2  ;;  %v702_v1 = vrot.slane %v6632_v51, 2 }
  0x86   : > { %v5145_v23 = vpack.i.bf16 %v6605_v12, %v6601_v9  ;;  %v621_v25 = vrot.slane %v6605_v12, 1  ;;  %v697_v30 = vrot.slane %v6605_v12, 2  ;;  %v704_v2 = vrot.slane %v546_v57, 2 }
  0x87   : > { %v629_v10 = vsel %vm584_vm1, %v626_v61, %v628_v62 }
  0x88   : > { %v622_v42 = vsel %vm584_vm1, %v620_v21, %v621_v25  ;;  %v6626_v46 = vsel %vm660_vm2, %v696_v29, %v697_v30  ;;  %v6656_v20 = vsel %vm660_vm2, %v702_v1, %v704_v2 }
  0x89   : > { %5091 = vrot.lane.b32.xlu0 %v5070_v28, %s6171_s11  ;;  %5106 = vrot.lane.b32.xlu1 %v5105_v50, %s6173_s23  ;;  %v623_v28 = vrot.slane %v545_v35, 1  ;;  %v6653_v35 = vsel %vm660_vm2, %v701_v63, %v702_v1 }
  0x8b   : > { %v624_v45 = vsel %vm584_vm1, %v621_v25, %v623_v28  ;;  %v317_v25 = vld [vmem:[%s6331_s15 + $0x98] sm:$0xff] }
  0x8d   : > { %5101 = vrot.lane.b32.xlu0 %v5080_v39, %s6172_s18  ;;  %5116 = vrot.lane.b32.xlu1 %v5115_v56, %s9099_s8 }
  0x91   : > { %5111 = vrot.lane.b32.xlu0 %v5110_v59, %s6170_s21  ;;  %5126 = vrot.lane.b32.xlu1 %v5105_v50, %s6171_s11  ;;  %v6629_v50 = vsel %vm660_vm2, %v697_v30, %v699_v31  ;;  %v423_v30 = vrot.slane %v317_v25, 7  ;;  %v499_v31 = vrot.slane %v317_v25, 5 }
  0x92   : > { %v5175_v3 = vpack.i.bf16 %v6629_v50, %v6626_v46 }
  0x95   : > { %5121 = vrot.lane.b32.xlu0 %v5080_v39, %s6169_s19  ;;  %5136 = vrot.lane.b32.xlu1 %v5115_v56, %s6172_s18  ;;  %v5140_v39 = vpack.i.bf16 %v6598_v8, %v6595_v7 }
  0x99   : > { %5131 = vrot.lane.b32.xlu0 %v5110_v59, %s6168_s12  ;;  %5146 = vrot.lane.b32.xlu1 %v5145_v23, %s6170_s21  ;;  %v5150_v59 = vpack.i.bf16 %v624_v45, %v622_v42 }
  0x9d   : > { %5141 = vrot.lane.b32.xlu0 %v5140_v39, %s6173_s23  ;;  %5156 = vrot.lane.b32.xlu1 %v5115_v56, %s6169_s19  ;;  %v627_v56 = vsel %vm584_vm1, %v625_v60, %v626_v61  ;;  %v318_v60 = vld [vmem:[%s6331_s15 + $0xa0] sm:$0xff]  ;;  %v319_v61 = vld [vmem:[%s6331_s15 + $0xa8] sm:$0xff] }
  0x9e   : > { %v5185_v22 = vpack.i.bf16 %v629_v10, %v627_v56  ;;  %v356_v62 = vrot.slane %v318_v60, 1  ;;  %v425_v63 = vrot.slane %v318_v60, 7  ;;  %v426_v1 = vrot.slane %v319_v61, 7 }
  0x9f   : > { %v500_v2 = vrot.slane %v319_v61, 5 }
  0xa1   : > { %5151 = vrot.lane.b32.xlu0 %v5150_v59, %s9099_s8  ;;  %5166 = vrot.lane.b32.xlu1 %v5145_v23, %s6168_s12  ;;  %v316_v23 = vld [vmem:[%s6331_s15 + $0x90] sm:$0xff] }
  0xa2   : > { %v355_v28 = vrot.slane %v316_v23, 1  ;;  %v422_v29 = vrot.slane %v316_v23, 7 }
  0xa4   : > { %v6669_v33 = vsel %vm394_vm0, %v422_v29, %v423_v30  ;;  %v6672_v38 = vsel %vm394_vm0, %v355_v28, %v422_v29 }
  0xa5   : > { %5161 = vrot.lane.b32.xlu0 %v5140_v39, %s6171_s11  ;;  %5176 = vrot.lane.b32.xlu1 %v5175_v3, %s6173_s23  ;;  %9128 = vst [vmem:[#allocation8_spill] sm:$0xff] %v6669_v33  ;;  %9129 = vst [vmem:[#allocation9_spill] sm:$0xff] %v6672_v38  ;;  %v547_v39 = vsel %vm394_vm0, %v423_v30, %v499_v31  ;;  %v706_v42 = vrot.slane %v6672_v38, 2  ;;  %v707_v45 = vrot.slane %v6669_v33, 2  ;;  %v630_v23 = vrot.slane %v6672_v38, 1 }
  0xa6   : > { %v709_v57 = vrot.slane %v547_v39, 2  ;;  %v5215_v56 = vpack.i.bf16 %v6669_v33, %v6672_v38  ;;  %v631_v25 = vrot.slane %v6669_v33, 1  ;;  %v633_v28 = vrot.slane %v547_v39, 1 }
  0xa7   : > { %v6696_v30 = vsel %vm394_vm0, %v425_v63, %v426_v1  ;;  %v6699_v31 = vsel %vm394_vm0, %v356_v62, %v425_v63 }
  0xa8   : > { %v6689_v10 = vsel %vm660_vm2, %v707_v45, %v709_v57  ;;  %9130 = vst [vmem:[#allocation10_spill] sm:$0xff] %v6696_v30  ;;  %9131 = vst [vmem:[#allocation11_spill] sm:$0xff] %v6699_v31  ;;  %v632_v39 = vsel %vm584_vm1, %v630_v23, %v631_v25  ;;  %v634_v57 = vsel %vm584_vm1, %v631_v25, %v633_v28  ;;  %v635_v0 = vrot.slane %v6699_v31, 1 }
  0xa9   : > { %5171 = vrot.lane.b32.xlu0 %v5150_v59, %s6172_s18  ;;  %5186 = vrot.lane.b32.xlu1 %v5185_v22, %s9099_s8  ;;  %v636_v62 = vrot.slane %v6696_v30, 1  ;;  %v711_v23 = vrot.slane %v6699_v31, 2  ;;  %v712_v25 = vrot.slane %v6696_v30, 2 }
  0xad   : > { %5181 = vrot.lane.b32.xlu0 %v5180_v32, %s6170_s21  ;;  %5196 = vrot.lane.b32.xlu1 %v5175_v3, %s6171_s11  ;;  %v6686_v3 = vsel %vm660_vm2, %v706_v42, %v707_v45  ;;  %v548_v42 = vsel %vm394_vm0, %v426_v1, %v500_v2  ;;  %v5210_v45 = vpack.i.bf16 %v6656_v20, %v6653_v35 }
  0xae   : > { %v638_v63 = vrot.slane %v548_v42, 1  ;;  %v6713_v2 = vpack.i.bf16 %v634_v57, %v632_v39  ;;  %v714_v28 = vrot.slane %v548_v42, 2  ;;  %v6720_v58 = vpack.i.bf16 %v6689_v10, %v6686_v3 }
  0xb0   : > { %v639_v36 = vsel %vm584_vm1, %v636_v62, %v638_v63 }
  0xb1   : > { %5191 = vrot.lane.b32.xlu0 %v5150_v59, %s6169_s19  ;;  %5206 = vrot.lane.b32.xlu1 %v5185_v22, %s6172_s18 }
  0xb3   : > { %v4922_v59 = vpop.permute.xlu1 %4921 }
  0xb4   : > { %v4924_v53 = vunpack.i.h.bf16 %v4922_v59  ;;  %v4923_v49 = vunpack.i.l.bf16 %v4922_v59 }
  0xb5   : > { %5201 = vrot.lane.b32.xlu0 %v5180_v32, %s6168_s12  ;;  %5216 = vrot.lane.b32.xlu1 %v5215_v56, %s6170_s21 }
  0xb7   : > { %v4932_v60 = vpop.permute.xlu0 %4931  ;;  %v6708_v61 = vpop.permute.xlu1 %4926 }
  0xb8   : > { %v4934_v32 = vunpack.i.h.bf16 %v4932_v60  ;;  %v4933_v1 = vunpack.i.l.bf16 %v4932_v60  ;;  %v637_v60 = vsel %vm584_vm1, %v635_v0, %v636_v62 }
  0xb9   : > { %5211 = vrot.lane.b32.xlu0 %v5210_v45, %s6173_s23  ;;  %5226 = vrot.lane.b32.xlu1 %v5185_v22, %s6169_s19 }
  0xba   : > { %v1428_v27 = vsel %vm1426_vm3, %v6353_v17, %v4934_v32  ;;  %v1427_v42 = vsel %vm1426_vm3, %v6356_v18, %v4933_v1  ;;  %v6741_v17 = vsel %vm660_vm2, %v712_v25, %v714_v28 }
  0xbb   : > { %v4937_v29 = vpop.permute.xlu0 %4936  ;;  %v4942_v21 = vpop.permute.xlu1 %4941 }
  0xbc   : > { %v4939_v39 = vunpack.i.h.bf16 %v4937_v29  ;;  %v4938_v57 = vunpack.i.l.bf16 %v4937_v29  ;;  %v4944_v4 = vunpack.i.h.bf16 %v4942_v21  ;;  %v4943_v22 = vunpack.i.l.bf16 %v4942_v21 }
  0xbd   : > { %5221 = vrot.lane.b32.xlu0 %v6713_v2, %s9099_s8  ;;  %5236 = vrot.lane.b32.xlu1 %v5215_v56, %s6168_s12  ;;  %v6738_v21 = vsel %vm660_vm2, %v711_v23, %v712_v25  ;;  %v320_v25 = vld [vmem:[%s6331_s15 + $0xb0] sm:$0xff] }
  0xbe   : > { %v6732_v0 = vsel %vm1457_vm4, %v1427_v42, %v4938_v57  ;;  %v6735_v29 = vsel %vm1457_vm4, %v1428_v27, %v4939_v39  ;;  %v4928_v57 = vunpack.i.l.bf16 %v6708_v61 }
  0xbf   : > { %v1489_v18 = vsel %vm1488_vm5, %v6732_v0, %v4923_v49  ;;  %v1490_v59 = vsel %vm1488_vm5, %v6735_v29, %v4924_v53  ;;  %v4947_v56 = vpop.permute.xlu0 %4946  ;;  %v4957_v62 = vpop.permute.xlu1 %4956  ;;  %v6755_v49 = vpack.i.bf16 %v639_v36, %v637_v60  ;;  %v321_v53 = vld [vmem:[%s6331_s15 + $0xb8] sm:$0xff] }
  0xc0   : > { %v1523_v63 = vsel %vm1521_vm6, %v1490_v59, %v4944_v4  ;;  %v1522_v32 = vsel %vm1521_vm6, %v1489_v18, %v4943_v22  ;;  %v4949_v1 = vunpack.i.h.bf16 %v4947_v56  ;;  %v4948_v23 = vunpack.i.l.bf16 %v4947_v56 }
  0xc1   : > { %5231 = vrot.lane.b32.xlu0 %v5210_v45, %s6171_s11  ;;  %5246 = vrot.lane.b32.xlu1 %v6720_v58, %s6173_s23  ;;  %v4929_v4 = vunpack.i.h.bf16 %v6708_v61  ;;  %v6764_v45 = vpack.i.bf16 %v6696_v30, %v6699_v31  ;;  %v357_v18 = vrot.slane %v320_v25, 1  ;;  %v428_v59 = vrot.slane %v320_v25, 7 }
  0xc2   : > { %v1555_v28 = vsel %vm1554_vm7, %v1522_v32, %v4948_v23  ;;  %v1556_v39 = vsel %vm1554_vm7, %v1523_v63, %v4949_v1  ;;  %v429_v56 = vrot.slane %v321_v53, 7  ;;  %v4959_v32 = vunpack.i.h.bf16 %v4957_v62 }
  0xc3   : > { %v4952_v22 = vpop.permute.xlu0 %4951  ;;  %v4967_v42 = vpop.permute.xlu1 %4966  ;;  %v4958_v23 = vunpack.i.l.bf16 %v4957_v62  ;;  %v1588_v63 = vsel %vm1587_vm8, %v1555_v28, %v4928_v57  ;;  %v1589_v61 = vsel %vm1587_vm8, %v1556_v39, %v4929_v4  ;;  %v501_v30 = vrot.slane %v321_v53, 5 }
  0xc4   : > { %v4954_v36 = vunpack.i.h.bf16 %v4952_v22  ;;  %v4953_v60 = vunpack.i.l.bf16 %v4952_v22  ;;  %v6775_v33 = vsel %vm394_vm0, %v428_v59, %v429_v56  ;;  %v6778_v28 = vsel %vm394_vm0, %v357_v18, %v428_v59  ;;  %v322_v59 = vld [vmem:[%s6331_s15 + $0xc0] sm:$0xff] }
  0xc5   : > { %5241 = vrot.lane.b32.xlu0 %v6713_v2, %s6172_s18  ;;  %5256 = vrot.lane.b32.xlu1 %v6755_v49, %s9099_s8  ;;  %9132 = vst [vmem:[#allocation12_spill] sm:$0xff] %v6775_v33  ;;  %9133 = vst [vmem:[#allocation13_spill] sm:$0xff] %v6778_v28  ;;  %v1430_v39 = vsel %vm1426_vm3, %v6344_v13, %v4959_v32  ;;  %v1429_v4 = vsel %vm1426_vm3, %v6347_v14, %v4958_v23  ;;  %v4969_v57 = vunpack.i.h.bf16 %v4967_v42 }
  0xc6   : > { %v1621_v1 = vsel %vm1620_vm9, %v1588_v63, %v4953_v60  ;;  %v1622_v27 = vsel %vm1620_vm9, %v1589_v61, %v4954_v36  ;;  %v4968_v36 = vunpack.i.l.bf16 %v4967_v42  ;;  %v9134_v13 = vpack.c.bf16 %v6467_v26, %v6462_v24  ;;  %v323_v26 = vld [vmem:[%s6331_s15 + $0xc8] sm:$0xff] }
  0xc7   : > { %v4962_v31 = vpop.permute.xlu0 %4961  ;;  %v1653_v22 = vpack.c.bf16 %v1622_v27, %v1621_v1  ;;  %v4977_v25 = vpop.permute.xlu1 %4976  ;;  %v6796_v42 = vpack.i.bf16 %v6741_v17, %v6738_v21  ;;  %v549_v18 = vsel %vm394_vm0, %v429_v56, %v501_v30  ;;  %v641_v60 = vrot.slane %v6775_v33, 1 }
  0xc8   : > { %v4964_v38 = vunpack.i.h.bf16 %v4962_v31  ;;  %v4963_v62 = vunpack.i.l.bf16 %v4962_v31  ;;  %v640_v24 = vrot.slane %v6778_v28, 1  ;;  %v4979_v61 = vunpack.i.h.bf16 %v4977_v25 }
  0xc9   : > { %5251 = vrot.lane.b32.xlu0 %v6764_v45, %s6170_s21  ;;  %1834 = vmatmul.mubr.bf16.vlgmr.msra.gmra.mrb[0].mxu0 %v1653_v22  ;;  %v4978_v1 = vunpack.i.l.bf16 %v4977_v25  ;;  %v643_v22 = vrot.slane %v549_v18, 1 }
  0xca   : > { %v1460_v31 = vsel %vm1457_vm4, %v1429_v4, %v4963_v62  ;;  %v1461_v27 = vsel %vm1457_vm4, %v1430_v39, %v4964_v38  ;;  %5266 = vrot.lane.b32.xlu1 %v6720_v58, %s6171_s11  ;;  %4788 = vmatprep.mubr.msk.bf16.mxu0 %vm1426_vm3, %v9134_v13  ;;  %v6803_v58 = vpack.i.bf16 %v6775_v33, %v6778_v28  ;;  %v358_v62 = vrot.slane %v322_v59, 1 }
  0xcb   : > { %v4972_v14 = vpop.permute.xlu0 %4971  ;;  %v4987_v53 = vpop.permute.xlu1 %4986  ;;  %v1491_v23 = vsel %vm1488_vm5, %v1460_v31, %v4968_v36  ;;  %v1492_v63 = vsel %vm1488_vm5, %v1461_v27, %v4969_v57  ;;  %v431_v31 = vrot.slane %v322_v59, 7  ;;  %v432_v57 = vrot.slane %v323_v26, 7 }
  0xcc   : > { %v4974_v38 = vunpack.i.h.bf16 %v4972_v14  ;;  %v4973_v32 = vunpack.i.l.bf16 %v4972_v14  ;;  %v4989_v4 = vunpack.i.h.bf16 %v4987_v53  ;;  %v4988_v13 = vunpack.i.l.bf16 %v4987_v53 }
  0xcd   : > { %5261 = vrot.lane.b32.xlu0 %v6713_v2, %s6169_s19  ;;  %v716_v14 = vrot.slane %v6778_v28, 2  ;;  %v502_v2 = vrot.slane %v323_v26, 5  ;;  %v644_v26 = vsel %vm584_vm1, %v641_v60, %v643_v22 }
  0xce   : > { %v1524_v30 = vsel %vm1521_vm6, %v1491_v23, %v4973_v32  ;;  %v1525_v56 = vsel %vm1521_vm6, %v1492_v63, %v4974_v38  ;;  %5276 = vrot.lane.b32.xlu1 %v6755_v49, %s6172_s18  ;;  %v642_v23 = vsel %vm584_vm1, %v640_v24, %v641_v60  ;;  %v717_v63 = vrot.slane %v6775_v33, 2 }
  0xcf   : > { %v4982_v39 = vpop.permute.xlu0 %4981  ;;  %v4997_v36 = vpop.permute.xlu1 %4996  ;;  %v1557_v32 = vsel %vm1554_vm7, %v1524_v30, %v4978_v1  ;;  %v1558_v38 = vsel %vm1554_vm7, %v1525_v56, %v4979_v61  ;;  %v6830_v24 = vsel %vm394_vm0, %v431_v31, %v432_v57  ;;  %v6833_v56 = vsel %vm394_vm0, %v358_v62, %v431_v31 }
  0xd0   : > { %v4984_v27 = vunpack.i.h.bf16 %v4982_v39  ;;  %v4983_v25 = vunpack.i.l.bf16 %v4982_v39  ;;  %v719_v39 = vrot.slane %v549_v18, 2  ;;  %v4999_v60 = vunpack.i.h.bf16 %v4997_v36 }
  0xd1   : > { %5271 = vrot.lane.b32.xlu0 %v6764_v45, %s6168_s12  ;;  %v4998_v18 = vunpack.i.l.bf16 %v4997_v36  ;;  %v6840_v22 = vpack.i.bf16 %v644_v26, %v642_v23 }
  0xd2   : > { %5286 = vrot.lane.b32.xlu1 %v6803_v58, %s6170_s21  ;;  %v1590_v53 = vsel %vm1587_vm8, %v1557_v32, %v4983_v25  ;;  %v1591_v59 = vsel %vm1587_vm8, %v1558_v38, %v4984_v27  ;;  %v6836_v27 = vsel %vm394_vm0, %v432_v57, %v502_v2  ;;  %v9135_v57 = vpack.c.bf16 %v6497_v48, %v6494_v47 }
  0xd3   : > { %v4992_v1 = vpop.permute.xlu0 %4991  ;;  %v1623_v61 = vsel %vm1620_vm9, %v1590_v53, %v4988_v13  ;;  %v1624_v30 = vsel %vm1620_vm9, %v1591_v59, %v4989_v4  ;;  %v5007_v45 = vpop.permute.xlu1 %5006  ;;  %v6849_v13 = vsel %vm660_vm2, %v716_v14, %v717_v63  ;;  %v6856_v2 = vsel %vm660_vm2, %v717_v63, %v719_v39 }
  0xd4   : > { %v4994_v28 = vunpack.i.h.bf16 %v4992_v1  ;;  %v4993_v33 = vunpack.i.l.bf16 %v4992_v1  ;;  %v1655_v25 = vpack.c.bf16 %v1624_v30, %v1623_v61  ;;  %v5009_v38 = vunpack.i.h.bf16 %v5007_v45 }
  0xd5   : > { %5281 = vrot.lane.b32.xlu0 %v6796_v42, %s6173_s23  ;;  %v5008_v47 = vunpack.i.l.bf16 %v5007_v45  ;;  %v5315_v63 = vpack.i.bf16 %v6856_v2, %v6849_v13 }
  0xd6   : > { %v1494_v4 = vsel %vm1488_vm5, %v6735_v29, %v4994_v28  ;;  %v1493_v62 = vsel %vm1488_vm5, %v6732_v0, %v4993_v33  ;;  %1842 = vmatmul.mubr.bf16.gmra.mrb[4].mxu0 %v1655_v25  ;;  %5296 = vrot.lane.b32.xlu1 %v6755_v49, %s6169_s19  ;;  %v645_v29 = vrot.slane %v6833_v56, 1  ;;  %v646_v33 = vrot.slane %v6830_v24, 1  ;;  %v324_v25 = vld [vmem:[%s6331_s15 + $0xd0] sm:$0xff] }
  0xd7   : > { %v5002_v31 = vpop.permute.xlu0 %5001  ;;  %v5017_v36 = vpop.permute.xlu1 %5016  ;;  %4789 = vmatprep.mubr.msk.bf16.mxu0 %vm1426_vm3, %v9135_v57  ;;  %v648_v0 = vrot.slane %v6836_v27, 1  ;;  %v1527_v14 = vsel %vm1521_vm6, %v1494_v4, %v4999_v60  ;;  %v1526_v32 = vsel %vm1521_vm6, %v1493_v62, %v4998_v18  ;;  %v325_v18 = vld [vmem:[%s6331_s15 + $0xd8] sm:$0xff] }
  0xd8   : > { %v5004_v49 = vunpack.i.h.bf16 %v5002_v31  ;;  %v5003_v28 = vunpack.i.l.bf16 %v5002_v31  ;;  %v5019_v59 = vunpack.i.h.bf16 %v5017_v36  ;;  %v5018_v26 = vunpack.i.l.bf16 %v5017_v36 }
  0xd9   : > { %5291 = vrot.lane.b32.xlu0 %v6840_v22, %s9099_s8  ;;  %v647_v1 = vsel %vm584_vm1, %v645_v29, %v646_v33  ;;  %v649_v61 = vsel %vm584_vm1, %v646_v33, %v648_v0  ;;  %v359_v0 = vrot.slane %v324_v25, 1 }
  0xda   : > { %v1559_v48 = vsel %vm1554_vm7, %v1526_v32, %v5003_v28  ;;  %v1560_v23 = vsel %vm1554_vm7, %v1527_v14, %v5004_v49  ;;  %5306 = vrot.lane.b32.xlu1 %v6803_v58, %s6168_s12  ;;  %v6882_v31 = vpack.i.bf16 %v649_v61, %v647_v1  ;;  %v1432_v36 = vsel %vm1426_vm3, %v6405_v54, %v5019_v59 }
  0xdb   : > { %v5012_v53 = vpop.permute.xlu0 %5011  ;;  %v5027_v39 = vpop.permute.xlu1 %5026  ;;  %v1592_v60 = vsel %vm1587_vm8, %v1559_v48, %v5008_v47  ;;  %v1593_v58 = vsel %vm1587_vm8, %v1560_v23, %v5009_v38  ;;  %v1431_v57 = vsel %vm1426_vm3, %v6408_v55, %v5018_v26  ;;  %v434_v14 = vrot.slane %v324_v25, 7 }
  0xdc   : > { %v5014_v30 = vunpack.i.h.bf16 %v5012_v53  ;;  %v5013_v45 = vunpack.i.l.bf16 %v5012_v53  ;;  %v435_v32 = vrot.slane %v325_v18, 7  ;;  %v5029_v38 = vunpack.i.h.bf16 %v5027_v39 }
  0xdd   : > { %5301 = vrot.lane.b32.xlu0 %v6796_v42, %s6171_s11  ;;  %v5028_v47 = vunpack.i.l.bf16 %v5027_v39  ;;  %v5320_v54 = vpack.i.bf16 %v6830_v24, %v6833_v56  ;;  %v721_v48 = vrot.slane %v6833_v56, 2  ;;  %v9136_v53 = vpack.c.bf16 %v6539_v15, %v6534_v11 }
  0xde   : > { %v1625_v4 = vsel %vm1620_vm9, %v1592_v60, %v5013_v45  ;;  %v1626_v62 = vsel %vm1620_vm9, %v1593_v58, %v5014_v30  ;;  %5316 = vrot.lane.b32.xlu1 %v5315_v63, %s6173_s23  ;;  %v722_v59 = vrot.slane %v6830_v24, 2  ;;  %v503_v26 = vrot.slane %v325_v18, 5 }
  0xdf   : > { %v5022_v42 = vpop.permute.xlu0 %5021  ;;  %v1657_v29 = vpack.c.bf16 %v1626_v62, %v1625_v4  ;;  %v5037_v33 = vpop.permute.xlu1 %5036  ;;  %v724_v61 = vrot.slane %v6836_v27, 2  ;;  %v6904_v25 = vsel %vm394_vm0, %v434_v14, %v435_v32  ;;  %v6907_v60 = vsel %vm394_vm0, %v359_v0, %v434_v14  ;;  %v327_v14 = vld [vmem:[%s6331_s15 + $0xe8] sm:$0xff] }
  0xe0   : > { %v5024_v49 = vunpack.i.h.bf16 %v5022_v42  ;;  %v5023_v28 = vunpack.i.l.bf16 %v5022_v42  ;;  %v5039_v58 = vunpack.i.h.bf16 %v5037_v33  ;;  %v5038_v18 = vunpack.i.l.bf16 %v5037_v33 }
  0xe1   : > { %5311 = vrot.lane.b32.xlu0 %v6840_v22, %s6172_s18  ;;  %1850 = vmatmul.mubr.bf16.gmra.mrb[8].mxu0 %v1657_v29  ;;  %v6916_v62 = vsel %vm660_vm2, %v721_v48, %v722_v59  ;;  %v6923_v33 = vsel %vm660_vm2, %v722_v59, %v724_v61 }
  0xe2   : > { %v1462_v55 = vsel %vm1457_vm4, %v1431_v57, %v5023_v28  ;;  %v1463_v23 = vsel %vm1457_vm4, %v1432_v36, %v5024_v49  ;;  %5326 = vrot.lane.b32.xlu1 %v6882_v31, %s9099_s8  ;;  %4790 = vmatprep.mubr.msk.bf16.mxu0 %vm1426_vm3, %v9136_v53  ;;  %v6919_v36 = vsel %vm394_vm0, %v435_v32, %v503_v26  ;;  %v326_v57 = vld [vmem:[%s6331_s15 + $0xe0] sm:$0xff]  ;;  %v651_v32 = vrot.slane %v6904_v25, 1 }
  0xe3   : > { %v5032_v39 = vpop.permute.xlu0 %5031  ;;  %v5047_v1 = vpop.permute.xlu1 %5046  ;;  %v1495_v11 = vsel %vm1488_vm5, %v1462_v55, %v5028_v47  ;;  %v1496_v15 = vsel %vm1488_vm5, %v1463_v23, %v5029_v38  ;;  %v6927_v28 = vpack.i.bf16 %v6904_v25, %v6907_v60  ;;  %v650_v47 = vrot.slane %v6907_v60, 1 }
  0xe4   : > { %v5034_v30 = vunpack.i.h.bf16 %v5032_v39  ;;  %v5033_v45 = vunpack.i.l.bf16 %v5032_v39  ;;  %v5049_v29 = vunpack.i.h.bf16 %v5047_v1  ;;  %v5048_v0 = vunpack.i.l.bf16 %v5047_v1 }
  0xe5   : > { %5321 = vrot.lane.b32.xlu0 %v5320_v54, %s6170_s21  ;;  %v653_v23 = vrot.slane %v6919_v36, 1  ;;  %v360_v53 = vrot.slane %v326_v57, 1  ;;  %v437_v39 = vrot.slane %v326_v57, 7  ;;  %v438_v1 = vrot.slane %v327_v14, 7 }
  0xe6   : > { %v1528_v4 = vsel %vm1521_vm6, %v1495_v11, %v5033_v45  ;;  %v1529_v27 = vsel %vm1521_vm6, %v1496_v15, %v5034_v30  ;;  %5336 = vrot.lane.b32.xlu1 %v5315_v63, %s6171_s11  ;;  %v652_v57 = vsel %vm584_vm1, %v650_v47, %v651_v32 }
  0xe7   : > { %v5042_v42 = vpop.permute.xlu0 %5041  ;;  %v5057_v49 = vpop.permute.xlu1 %5056  ;;  %v1561_v48 = vsel %vm1554_vm7, %v1528_v4, %v5038_v18  ;;  %v1562_v55 = vsel %vm1554_vm7, %v1529_v27, %v5039_v58  ;;  %v504_v27 = vrot.slane %v327_v14, 5 }
  0xe8   : > { %v5044_v63 = vunpack.i.h.bf16 %v5042_v42  ;;  %v5043_v38 = vunpack.i.l.bf16 %v5042_v42  ;;  %v5059_v30 = vunpack.i.h.bf16 %v5057_v49  ;;  %v5058_v45 = vunpack.i.l.bf16 %v5057_v49 }
  0xe9   : > { %5331 = vrot.lane.b32.xlu0 %v6840_v22, %s6169_s19  ;;  %v5350_v42 = vpack.i.bf16 %v6923_v33, %v6916_v62 }
  0xea   : > { %5346 = vrot.lane.b32.xlu1 %v6882_v31, %s6172_s18  ;;  %v1594_v59 = vsel %vm1587_vm8, %v1561_v48, %v5043_v38  ;;  %v1595_v26 = vsel %vm1587_vm8, %v1562_v55, %v5044_v63  ;;  %v654_v63 = vsel %vm584_vm1, %v651_v32, %v653_v23  ;;  %v6964_v48 = vsel %vm394_vm0, %v437_v39, %v438_v1 }
  0xeb   : > { %v5052_v61 = vpop.permute.xlu0 %5051  ;;  %v1627_v11 = vsel %vm1620_vm9, %v1594_v59, %v5048_v0  ;;  %v1628_v15 = vsel %vm1620_vm9, %v1595_v26, %v5049_v29  ;;  %v5067_v22 = vpop.permute.xlu1 %5066  ;;  %v726_v0 = vrot.slane %v6907_v60, 2  ;;  %v6967_v59 = vsel %vm394_vm0, %v360_v53, %v437_v39 }
  0xec   : > { %v5054_v58 = vunpack.i.h.bf16 %v5052_v61  ;;  %v5053_v18 = vunpack.i.l.bf16 %v5052_v61  ;;  %v1659_v4 = vpack.c.bf16 %v1628_v15, %v1627_v11  ;;  %v6970_v26 = vsel %vm394_vm0, %v438_v1, %v504_v27 }
  0xed   : > { %5341 = vrot.lane.b32.xlu0 %v5320_v54, %s6168_s12  ;;  %v727_v54 = vrot.slane %v6904_v25, 2  ;;  %v5069_v61 = vunpack.i.h.bf16 %v5067_v22  ;;  %v655_v11 = vrot.slane %v6967_v59, 1  ;;  %v656_v15 = vrot.slane %v6964_v48, 1 }
  0xee   : > { %v1434_v49 = vsel %vm1426_vm3, %v6447_v16, %v5054_v58  ;;  %v1433_v29 = vsel %vm1426_vm3, %v6450_v19, %v5053_v18  ;;  %1858 = vmatmul.mubr.bf16.gmra.mrb[12].mxu0 %v1659_v4  ;;  %5356 = vrot.lane.b32.xlu1 %v6927_v28, %s6170_s21  ;;  %v9137_v16 = vpack.c.bf16 %v6566_v41, %v6563_v40  ;;  %v729_v19 = vrot.slane %v6919_v36, 2 }
  0xef   : > { %v1465_v14 = vsel %vm1457_vm4, %v1434_v49, %v5059_v30  ;;  %v1464_v38 = vsel %vm1457_vm4, %v1433_v29, %v5058_v45  ;;  %v5062_v47 = vpop.permute.xlu0 %5061  ;;  %v5077_v32 = vpop.permute.xlu1 %5076  ;;  %v5068_v30 = vunpack.i.l.bf16 %v5067_v22  ;;  %v6973_v40 = vpack.i.bf16 %v654_v63, %v652_v57 }
  0xf0   : > { %4791 = vmatprep.mubr.msk.bf16.mxu0 %vm1426_vm3, %v9137_v16  ;;  %v5064_v55 = vunpack.i.h.bf16 %v5062_v47  ;;  %v5063_v23 = vunpack.i.l.bf16 %v5062_v47  ;;  %v6980_v45 = vsel %vm660_vm2, %v726_v0, %v727_v54  ;;  %v6983_v1 = vsel %vm660_vm2, %v727_v54, %v729_v19 }
  0xf1   : > { %5351 = vrot.lane.b32.xlu0 %v5350_v42, %s6173_s23  ;;  %v658_v22 = vrot.slane %v6970_v26, 1  ;;  %v5079_v27 = vunpack.i.h.bf16 %v5077_v32  ;;  %v5078_v57 = vunpack.i.l.bf16 %v5077_v32  ;;  %v5385_v29 = vpack.i.bf16 %v6983_v1, %v6980_v45 }
  0xf2   : > { %v1497_v41 = vsel %vm1488_vm5, %v1464_v38, %v5063_v23  ;;  %v1498_v36 = vsel %vm1488_vm5, %v1465_v14, %v5064_v55  ;;  %5366 = vrot.lane.b32.xlu1 %v6882_v31, %s6169_s19  ;;  %v657_v47 = vsel %vm584_vm1, %v655_v11, %v656_v15  ;;  %v328_v23 = vld [vmem:[%s6331_s15 + $0xf0] sm:$0xff] }
  0xf3   : > { %v5072_v53 = vpop.permute.xlu0 %5071  ;;  %v5087_v39 = vpop.permute.xlu1 %5086  ;;  %v1530_v4 = vsel %vm1521_vm6, %v1497_v41, %v5068_v30  ;;  %v1531_v31 = vsel %vm1521_vm6, %v1498_v36, %v5069_v61  ;;  %v659_v32 = vsel %vm584_vm1, %v656_v15, %v658_v22  ;;  %v329_v15 = vld [vmem:[%s6331_s15 + $0xf8] sm:$0xff] }
  0xf4   : > { %v5074_v58 = vunpack.i.h.bf16 %v5072_v53  ;;  %v5073_v18 = vunpack.i.l.bf16 %v5072_v53  ;;  %v5089_v54 = vunpack.i.h.bf16 %v5087_v39  ;;  %v5088_v14 = vunpack.i.l.bf16 %v5087_v39 }
  0xf5   : > { %5361 = vrot.lane.b32.xlu0 %v6973_v40, %s9099_s8  ;;  %v7007_v41 = vpack.i.bf16 %v659_v32, %v657_v47  ;;  %v505_v47 = vrot.slane %v329_v15, 5 }
  0xf6   : > { %v1563_v63 = vsel %vm1554_vm7, %v1530_v4, %v5073_v18  ;;  %v1564_v49 = vsel %vm1554_vm7, %v1531_v31, %v5074_v58  ;;  %5376 = vrot.lane.b32.xlu1 %v6927_v28, %s6168_s12  ;;  %v1436_v36 = vsel %vm1426_vm3, %v6485_v43, %v5089_v54  ;;  %v1435_v53 = vsel %vm1426_vm3, %v6488_v44, %v5088_v14 }
  0xf7   : > { %v5082_v0 = vpop.permute.xlu0 %5081  ;;  %v5097_v38 = vpop.permute.xlu1 %5096  ;;  %v1596_v55 = vsel %vm1587_vm8, %v1563_v63, %v5078_v57  ;;  %v1597_v28 = vsel %vm1587_vm8, %v1564_v49, %v5079_v27  ;;  %v361_v18 = vrot.slane %v328_v23, 1  ;;  %v5390_v27 = vpack.i.bf16 %v6964_v48, %v6967_v59 }
  0xf8   : > { %v5084_v16 = vunpack.i.h.bf16 %v5082_v0  ;;  %v5083_v19 = vunpack.i.l.bf16 %v5082_v0  ;;  %v5099_v4 = vunpack.i.h.bf16 %v5097_v38  ;;  %v5098_v31 = vunpack.i.l.bf16 %v5097_v38 }
  0xf9   : > { %5371 = vrot.lane.b32.xlu0 %v5350_v42, %s6171_s11  ;;  %v9138_v57 = vpack.c.bf16 %v6598_v8, %v6595_v7  ;;  %v440_v63 = vrot.slane %v328_v23, 7  ;;  %v441_v49 = vrot.slane %v329_v15, 7  ;;  %v734_v54 = vrot.slane %v6970_v26, 2 }
  0xfa   : > { %v1629_v61 = vsel %vm1620_vm9, %v1596_v55, %v5083_v19  ;;  %v1630_v30 = vsel %vm1620_vm9, %v1597_v28, %v5084_v16  ;;  %5386 = vrot.lane.b32.xlu1 %v5385_v29, %s6173_s23  ;;  %v731_v38 = vrot.slane %v6967_v59, 2  ;;  %v732_v19 = vrot.slane %v6964_v48, 2 }
  0xfb   : > { %v5092_v42 = vpop.permute.xlu0 %5091  ;;  %v1661_v39 = vpack.c.bf16 %v1630_v30, %v1629_v61  ;;  %v5107_v11 = vpop.permute.xlu1 %5106  ;;  %v442_v61 = vsel %vm394_vm0, %v440_v63, %v441_v49  ;;  %v537_v30 = vsel %vm394_vm0, %v361_v18, %v440_v63  ;;  %v553_v15 = vsel %vm394_vm0, %v441_v49, %v505_v47 }
  0xfc   : > { %v5094_v22 = vunpack.i.h.bf16 %v5092_v42  ;;  %v5093_v58 = vunpack.i.l.bf16 %v5092_v42  ;;  %v5109_v7 = vunpack.i.h.bf16 %v5107_v11  ;;  %v5108_v8 = vunpack.i.l.bf16 %v5107_v11 }
  0xfd   : > { %5381 = vrot.lane.b32.xlu0 %v6973_v40, %s6172_s18  ;;  %1866 = vmatmul.mubr.bf16.gmra.mrb[16].mxu0 %v1661_v39  ;;  %v738_v18 = vrot.slane %v537_v30, 1  ;;  %v5425_v63 = vpack.i.bf16 %v442_v61, %v537_v30  ;;  %v741_v49 = vrot.slane %v553_v15, 1 }
  0xfe   : > { %v1466_v43 = vsel %vm1457_vm4, %v1435_v53, %v5093_v58  ;;  %v1467_v44 = vsel %vm1457_vm4, %v1436_v36, %v5094_v22  ;;  %5396 = vrot.lane.b32.xlu1 %v7007_v41, %s9099_s8  ;;  %4792 = vmatprep.mubr.msk.bf16.mxu0 %vm1426_vm3, %v9138_v57  ;;  %v7039_v58 = vsel %vm660_vm2, %v731_v38, %v732_v19 }
  0xff   : > { %v5102_v0 = vpop.permute.xlu0 %5101  ;;  %v5117_v14 = vpop.permute.xlu1 %5116  ;;  %v1499_v55 = vsel %vm1488_vm5, %v1466_v43, %v5098_v31  ;;  %v1500_v28 = vsel %vm1488_vm5, %v1467_v44, %v5099_v4  ;;  %v7042_v4 = vsel %vm660_vm2, %v732_v19, %v734_v54  ;;  %v739_v43 = vrot.slane %v442_v61, 1 }
 0x100   : > { %v5104_v32 = vunpack.i.h.bf16 %v5102_v0  ;;  %v5103_v16 = vunpack.i.l.bf16 %v5102_v0  ;;  %v5119_v53 = vunpack.i.h.bf16 %v5117_v14  ;;  %v5118_v42 = vunpack.i.l.bf16 %v5117_v14 }
 0x101   : > { %5391 = vrot.lane.b32.xlu0 %v5390_v27, %s6170_s21 }
 0x102   : > { %v1532_v23 = vsel %vm1521_vm6, %v1499_v55, %v5103_v16  ;;  %v1533_v26 = vsel %vm1521_vm6, %v1500_v28, %v5104_v32  ;;  %5406 = vrot.lane.b32.xlu1 %v5385_v29, %s6171_s11  ;;  %v5420_v55 = vpack.i.bf16 %v7042_v4, %v7039_v58  ;;  %v740_v28 = vsel %vm584_vm1, %v738_v18, %v739_v43 }
 0x103   : > { %v5112_v36 = vpop.permute.xlu0 %5111  ;;  %v5127_v39 = vpop.permute.xlu1 %5126  ;;  %v1565_v29 = vsel %vm1554_vm7, %v1532_v23, %v5108_v8  ;;  %v1566_v31 = vsel %vm1554_vm7, %v1533_v26, %v5109_v7  ;;  %v742_v23 = vsel %vm584_vm1, %v739_v43, %v741_v49  ;;  %v743_v26 = vrot.slane %v537_v30, 2 }
 0x104   : > { %v5114_v22 = vunpack.i.h.bf16 %v5112_v36  ;;  %v5113_v11 = vunpack.i.l.bf16 %v5112_v36  ;;  %v5129_v54 = vunpack.i.h.bf16 %v5127_v39  ;;  %v5128_v14 = vunpack.i.l.bf16 %v5127_v39 }
 0x105   : > { %5401 = vrot.lane.b32.xlu0 %v6973_v40, %s6169_s19  ;;  %v9139_v39 = vpack.c.bf16 %v6629_v50, %v6626_v46  ;;  %v5430_v30 = vpack.i.bf16 %v742_v23, %v740_v28 }
 0x106   : > { %5416 = vrot.lane.b32.xlu1 %v7007_v41, %s6172_s18  ;;  %v1598_v44 = vsel %vm1587_vm8, %v1565_v29, %v5113_v11  ;;  %v1599_v57 = vsel %vm1587_vm8, %v1566_v31, %v5114_v22  ;;  %v746_v22 = vrot.slane %v553_v15, 2 }
 0x107   : > { %v5122_v0 = vpop.permute.xlu0 %5121  ;;  %v1631_v38 = vsel %vm1620_vm9, %v1598_v44, %v5118_v42  ;;  %v1632_v47 = vsel %vm1620_vm9, %v1599_v57, %v5119_v53  ;;  %v5137_v32 = vpop.permute.xlu1 %5136 }
 0x108   : > { %v5124_v40 = vunpack.i.h.bf16 %v5122_v0  ;;  %v5123_v16 = vunpack.i.l.bf16 %v5122_v0  ;;  %v1663_v19 = vpack.c.bf16 %v1632_v47, %v1631_v38  ;;  %v5139_v29 = vunpack.i.h.bf16 %v5137_v32 }
 0x109   : > { %5411 = vrot.lane.b32.xlu0 %v5390_v27, %s6168_s12  ;;  %v5138_v31 = vunpack.i.l.bf16 %v5137_v32 }
 0x10a   : > { %v1438_v7 = vsel %vm1426_vm3, %v6520_v5, %v5124_v40  ;;  %v1437_v8 = vsel %vm1426_vm3, %v6523_v6, %v5123_v16  ;;  %1874 = vmatmul.mubr.bf16.gmra.mrb[20].mxu0 %v1663_v19  ;;  %5426 = vrot.lane.b32.xlu1 %v5425_v63, %s6170_s21  ;;  %v744_v5 = vrot.slane %v442_v61, 2 }
 0x10b   : > { %v1469_v36 = vsel %vm1457_vm4, %v1438_v7, %v5129_v54  ;;  %v1468_v27 = vsel %vm1457_vm4, %v1437_v8, %v5128_v14  ;;  %v5132_v53 = vpop.permute.xlu0 %5131  ;;  %v5147_v42 = vpop.permute.xlu1 %5146  ;;  %4793 = vmatprep.mubr.msk.bf16.mxu0 %vm1426_vm3, %v9139_v39 }
 0x10c   : > { %v5134_v6 = vunpack.i.h.bf16 %v5132_v53  ;;  %v5133_v11 = vunpack.i.l.bf16 %v5132_v53  ;;  %v7076_v50 = vsel %vm660_vm2, %v743_v26, %v744_v5  ;;  %v7079_v61 = vsel %vm660_vm2, %v744_v5, %v746_v22 }
 0x10d   : > { %5421 = vrot.lane.b32.xlu0 %v5420_v55, %s6173_s23  ;;  %v5149_v54 = vunpack.i.h.bf16 %v5147_v42  ;;  %v5148_v14 = vunpack.i.l.bf16 %v5147_v42  ;;  %v5455_v47 = vpack.i.bf16 %v7079_v61, %v7076_v50 }
 0x10e   : > { %v1501_v18 = vsel %vm1488_vm5, %v1468_v27, %v5133_v11  ;;  %v1502_v43 = vsel %vm1488_vm5, %v1469_v36, %v5134_v6  ;;  %5436 = vrot.lane.b32.xlu1 %v7007_v41, %s6169_s19 }
 0x10f   : > { %v5142_v44 = vpop.permute.xlu0 %5141  ;;  %v5157_v46 = vpop.permute.xlu1 %5156  ;;  %v1534_v49 = vsel %vm1521_vm6, %v1501_v18, %v5138_v31  ;;  %v1535_v0 = vsel %vm1521_vm6, %v1502_v43, %v5139_v29 }
 0x110   : > { %v5144_v15 = vunpack.i.h.bf16 %v5142_v44  ;;  %v5143_v57 = vunpack.i.l.bf16 %v5142_v44  ;;  %v5159_v40 = vunpack.i.h.bf16 %v5157_v46  ;;  %v5158_v16 = vunpack.i.l.bf16 %v5157_v46 }
 0x111   : > { %5431 = vrot.lane.b32.xlu0 %v5430_v30, %s9099_s8 }
 0x112   : > { %v1567_v41 = vsel %vm1554_vm7, %v1534_v49, %v5143_v57  ;;  %v1568_v38 = vsel %vm1554_vm7, %v1535_v0, %v5144_v15  ;;  %5446 = vrot.lane.b32.xlu1 %v5425_v63, %s6168_s12  ;;  %v1440_v63 = vsel %vm1426_vm3, %v6554_v34, %v5159_v40  ;;  %v1439_v27 = vsel %vm1426_vm3, %v6557_v37, %v5158_v16 }
 0x113   : > { %v5152_v32 = vpop.permute.xlu0 %5151  ;;  %v5167_v19 = vpop.permute.xlu1 %5166  ;;  %v1600_v8 = vsel %vm1587_vm8, %v1567_v41, %v5148_v14  ;;  %v1601_v23 = vsel %vm1587_vm8, %v1568_v38, %v5149_v54  ;;  %v9140_v34 = vpack.c.bf16 %v6656_v20, %v6653_v35 }
 0x114   : > { %v5154_v28 = vunpack.i.h.bf16 %v5152_v32  ;;  %v5153_v7 = vunpack.i.l.bf16 %v5152_v32  ;;  %v5169_v22 = vunpack.i.h.bf16 %v5167_v19  ;;  %v5168_v6 = vunpack.i.l.bf16 %v5167_v19 }
 0x115   : > { %5441 = vrot.lane.b32.xlu0 %v5420_v55, %s6171_s11 }
 0x116   : > { %v1633_v26 = vsel %vm1620_vm9, %v1600_v8, %v5153_v7  ;;  %v1634_v36 = vsel %vm1620_vm9, %v1601_v23, %v5154_v28  ;;  %5456 = vrot.lane.b32.xlu1 %v5455_v47, %s6173_s23 }
 0x117   : > { %v5162_v53 = vpop.permute.xlu0 %5161  ;;  %v1665_v42 = vpack.c.bf16 %v1634_v36, %v1633_v26  ;;  %v5177_v39 = vpop.permute.xlu1 %5176 }
 0x118   : > { %v5164_v55 = vunpack.i.h.bf16 %v5162_v53  ;;  %v5163_v5 = vunpack.i.l.bf16 %v5162_v53  ;;  %v5179_v15 = vunpack.i.h.bf16 %v5177_v39 }
 0x119   : > { %5451 = vrot.lane.b32.xlu0 %v5430_v30, %s6172_s18  ;;  %1882 = vmatmul.mubr.bf16.gmra.mrb[24].mxu0 %v1665_v42  ;;  %v5178_v30 = vunpack.i.l.bf16 %v5177_v39 }
 0x11a   : > { %v1470_v11 = vsel %vm1457_vm4, %v1439_v27, %v5163_v5  ;;  %v1471_v29 = vsel %vm1457_vm4, %v1440_v63, %v5164_v55  ;;  %4794 = vmatprep.mubr.msk.bf16.mxu0 %vm1426_vm3, %v9140_v34 }
 0x11b   : > { %v5172_v37 = vpop.permute.xlu0 %5171  ;;  %v5187_v31 = vpop.permute.xlu1 %5186  ;;  %v1503_v44 = vsel %vm1488_vm5, %v1470_v11, %v5168_v6  ;;  %v1504_v46 = vsel %vm1488_vm5, %v1471_v29, %v5169_v22  ;;  %v9141_v22 = vpack.c.bf16 %v6689_v10, %v6686_v3 }
 0x11c   : > { %v5174_v18 = vunpack.i.h.bf16 %v5172_v37  ;;  %v5173_v43 = vunpack.i.l.bf16 %v5172_v37  ;;  %v5189_v54 = vunpack.i.h.bf16 %v5187_v31  ;;  %v5188_v14 = vunpack.i.l.bf16 %v5187_v31 }
 0x11e   : > { %v1536_v57 = vsel %vm1521_vm6, %v1503_v44, %v5173_v43  ;;  %v1537_v49 = vsel %vm1521_vm6, %v1504_v46, %v5174_v18 }
 0x11f   : > { %v5182_v0 = vpop.permute.xlu0 %5181  ;;  %v5197_v35 = vpop.permute.xlu1 %5196  ;;  %v1569_v38 = vsel %vm1554_vm7, %v1536_v57, %v5178_v30  ;;  %v1570_v47 = vsel %vm1554_vm7, %v1537_v49, %v5179_v15 }
 0x120   : > { %v5184_v20 = vunpack.i.h.bf16 %v5182_v0  ;;  %v5183_v41 = vunpack.i.l.bf16 %v5182_v0  ;;  %v5199_v19 = vunpack.i.h.bf16 %v5197_v35  ;;  %v5198_v28 = vunpack.i.l.bf16 %v5197_v35 }
 0x122   : > { %v1602_v32 = vsel %vm1587_vm8, %v1569_v38, %v5183_v41  ;;  %v1603_v40 = vsel %vm1587_vm8, %v1570_v47, %v5184_v20 }
 0x123   : > { %v5192_v16 = vpop.permute.xlu0 %5191  ;;  %v1635_v7 = vsel %vm1620_vm9, %v1602_v32, %v5188_v14  ;;  %v1636_v8 = vsel %vm1620_vm9, %v1603_v40, %v5189_v54  ;;  %v5207_v23 = vpop.permute.xlu1 %5206 }
 0x124   : > { %v5194_v26 = vunpack.i.h.bf16 %v5192_v16  ;;  %v5193_v36 = vunpack.i.l.bf16 %v5192_v16  ;;  %v1667_v63 = vpack.c.bf16 %v1636_v8, %v1635_v7  ;;  %v5209_v29 = vunpack.i.h.bf16 %v5207_v23 }
 0x125   : > { %v5208_v34 = vunpack.i.l.bf16 %v5207_v23 }
 0x126   : > { %v1442_v27 = vsel %vm1426_vm3, %v6605_v12, %v5194_v26  ;;  %v1441_v53 = vsel %vm1426_vm3, %v6601_v9, %v5193_v36  ;;  %1890 = vmatmul.mubr.bf16.gmra.mrb[28].mxu0 %v1667_v63 }
 0x127   : > { %v1473_v42 = vsel %vm1457_vm4, %v1442_v27, %v5199_v19  ;;  %v1472_v39 = vsel %vm1457_vm4, %v1441_v53, %v5198_v28  ;;  %v5202_v55 = vpop.permute.xlu0 %5201  ;;  %v5217_v5 = vpop.permute.xlu1 %5216  ;;  %4795 = vmatprep.mubr.msk.bf16.mxu0 %vm1426_vm3, %v9141_v22  ;;  %v9142_v27 = vpack.c.bf16 %v6741_v17, %v6738_v21 }
 0x128   : > { %v5204_v6 = vunpack.i.h.bf16 %v5202_v55  ;;  %v5203_v11 = vunpack.i.l.bf16 %v5202_v55  ;;  %v5219_v15 = vunpack.i.h.bf16 %v5217_v5  ;;  %v5218_v3 = vunpack.i.l.bf16 %v5217_v5 }
 0x12a   : > { %v1505_v12 = vsel %vm1488_vm5, %v1472_v39, %v5203_v11  ;;  %v1506_v9 = vsel %vm1488_vm5, %v1473_v42, %v5204_v6 }
 0x12b   : > { %v5212_v37 = vpop.permute.xlu0 %5211  ;;  %v5227_v31 = vpop.permute.xlu1 %5226  ;;  %v1538_v44 = vsel %vm1521_vm6, %v1505_v12, %v5208_v34  ;;  %v1539_v46 = vsel %vm1521_vm6, %v1506_v9, %v5209_v29 }
 0x12c   : > { %v5214_v18 = vunpack.i.h.bf16 %v5212_v37  ;;  %v5213_v43 = vunpack.i.l.bf16 %v5212_v37  ;;  %v5229_v49 = vunpack.i.h.bf16 %v5227_v31  ;;  %v5228_v0 = vunpack.i.l.bf16 %v5227_v31 }
 0x12e   : > { %v1571_v10 = vsel %vm1554_vm7, %v1538_v44, %v5213_v43  ;;  %v1572_v30 = vsel %vm1554_vm7, %v1539_v46, %v5214_v18  ;;  %v1444_v32 = vsel %vm1426_vm3, %v6632_v51, %v5229_v49  ;;  %v1443_v40 = vsel %vm1426_vm3, %v6635_v52, %v5228_v0 }
 0x12f   : > { %v5222_v57 = vpop.permute.xlu0 %5221  ;;  %v5237_v54 = vpop.permute.xlu1 %5236  ;;  %v1604_v20 = vsel %vm1587_vm8, %v1571_v10, %v5218_v3  ;;  %v1605_v41 = vsel %vm1587_vm8, %v1572_v30, %v5219_v15  ;;  %v1674_v44 = vpack.c.bf16 %v6856_v2, %v6849_v13 }
 0x130   : > { %v5224_v14 = vunpack.i.h.bf16 %v5222_v57  ;;  %v5223_v35 = vunpack.i.l.bf16 %v5222_v57  ;;  %v5239_v23 = vunpack.i.h.bf16 %v5237_v54  ;;  %v5238_v26 = vunpack.i.l.bf16 %v5237_v54 }
 0x132   : > { %v1637_v38 = vsel %vm1620_vm9, %v1604_v20, %v5223_v35  ;;  %v1638_v47 = vsel %vm1620_vm9, %v1605_v41, %v5224_v14  ;;  %v9143_v14 = vld [vmem:[#allocation8_spill] sm:$0xff]  ;;  %v9144_v20 = vld [vmem:[#allocation9_spill] sm:$0xff] }
 0x133   : > { %v5232_v16 = vpop.permute.xlu0 %5231  ;;  %v1669_v19 = vpack.c.bf16 %v1638_v47, %v1637_v38  ;;  %v5247_v28 = vpop.permute.xlu1 %5246 }
 0x134   : > { %v5234_v7 = vunpack.i.h.bf16 %v5232_v16  ;;  %v5233_v8 = vunpack.i.l.bf16 %v5232_v16  ;;  %v5249_v5 = vunpack.i.h.bf16 %v5247_v28  ;;  %v5248_v22 = vunpack.i.l.bf16 %v5247_v28 }
 0x135   : > { %1898 = vmatmul.mubr.bf16.gmra.mrb[32].mxu0 %v1669_v19 }
 0x136   : > { %v1474_v36 = vsel %vm1457_vm4, %v1443_v40, %v5233_v8  ;;  %v1475_v63 = vsel %vm1457_vm4, %v1444_v32, %v5234_v7  ;;  %4796 = vmatprep.mubr.msk.bf16.mxu0 %vm1426_vm3, %v9142_v27 }
 0x137   : > { %v5242_v51 = vpop.permute.xlu0 %5241  ;;  %v5257_v53 = vpop.permute.xlu1 %5256  ;;  %v1507_v39 = vsel %vm1488_vm5, %v1474_v36, %v5238_v26  ;;  %v1508_v55 = vsel %vm1488_vm5, %v1475_v63, %v5239_v23 }
 0x138   : > { %v5244_v52 = vunpack.i.h.bf16 %v5242_v51  ;;  %v5243_v42 = vunpack.i.l.bf16 %v5242_v51  ;;  %v5259_v34 = vunpack.i.h.bf16 %v5257_v53  ;;  %v5258_v12 = vunpack.i.l.bf16 %v5257_v53 }
 0x13a   : > { %v1540_v6 = vsel %vm1521_vm6, %v1507_v39, %v5243_v42  ;;  %v1541_v11 = vsel %vm1521_vm6, %v1508_v55, %v5244_v52 }
 0x13b   : > { %v5252_v29 = vpop.permute.xlu0 %5251  ;;  %v1573_v37 = vsel %vm1554_vm7, %v1540_v6, %v5248_v22  ;;  %v1574_v31 = vsel %vm1554_vm7, %v1541_v11, %v5249_v5 }
 0x13c   : > { %v5254_v21 = vunpack.i.h.bf16 %v5252_v29  ;;  %v5253_v17 = vunpack.i.l.bf16 %v5252_v29  ;;  %v5267_v9 = vpop.permute.xlu1 %5266 }
 0x13d   : > { %v5269_v15 = vunpack.i.h.bf16 %v5267_v9  ;;  %v5268_v3 = vunpack.i.l.bf16 %v5267_v9  ;;  %v9145_v9 = vld [vmem:[#allocation10_spill] sm:$0xff] }
 0x13e   : > { %v1606_v18 = vsel %vm1587_vm8, %v1573_v37, %v5253_v17  ;;  %v1607_v43 = vsel %vm1587_vm8, %v1574_v31, %v5254_v21  ;;  %v1676_v17 = vpack.c.bf16 %v6923_v33, %v6916_v62  ;;  %v9146_v31 = vld [vmem:[#allocation11_spill] sm:$0xff] }
 0x13f   : > { %v5262_v46 = vpop.permute.xlu0 %5261  ;;  %v1639_v10 = vsel %vm1620_vm9, %v1606_v18, %v5258_v12  ;;  %v1640_v30 = vsel %vm1620_vm9, %v1607_v43, %v5259_v34 }
 0x140   : > { %v5264_v57 = vunpack.i.h.bf16 %v5262_v46  ;;  %v5263_v49 = vunpack.i.l.bf16 %v5262_v46  ;;  %v1671_v0 = vpack.c.bf16 %v1640_v30, %v1639_v10  ;;  %v5277_v54 = vpop.permute.xlu1 %5276 }
 0x141   : > { %v5279_v16 = vunpack.i.h.bf16 %v5277_v54  ;;  %v5278_v19 = vunpack.i.l.bf16 %v5277_v54 }
 0x142   : > { %v1446_v35 = vsel %vm1426_vm3, %v9143_v14, %v5264_v57  ;;  %v1445_v41 = vsel %vm1426_vm3, %v9144_v20, %v5263_v49  ;;  %1906 = vmatmul.mubr.bf16.gmra.mrb[36].mxu0 %v1671_v0 }
 0x143   : > { %v1477_v13 = vsel %vm1457_vm4, %v1446_v35, %v5269_v15  ;;  %v1476_v2 = vsel %vm1457_vm4, %v1445_v41, %v5268_v3  ;;  %v5272_v38 = vpop.permute.xlu0 %5271  ;;  %4797 = vmatprep.mubr.msk.bf16.mxu0 %vm1426_vm3, %v1674_v44 }
 0x144   : > { %v5274_v47 = vunpack.i.h.bf16 %v5272_v38  ;;  %v5273_v32 = vunpack.i.l.bf16 %v5272_v38  ;;  %v5287_v40 = vpop.permute.xlu1 %5286 }
 0x145   : > { %v5289_v51 = vunpack.i.h.bf16 %v5287_v40  ;;  %v5288_v53 = vunpack.i.l.bf16 %v5287_v40 }
 0x146   : > { %v1509_v28 = vsel %vm1488_vm5, %v1476_v2, %v5273_v32  ;;  %v1510_v7 = vsel %vm1488_vm5, %v1477_v13, %v5274_v47 }
 0x147   : > { %v5282_v8 = vpop.permute.xlu0 %5281  ;;  %v1542_v63 = vsel %vm1521_vm6, %v1509_v28, %v5278_v19  ;;  %v1543_v27 = vsel %vm1521_vm6, %v1510_v7, %v5279_v16 }
 0x148   : > { %v5284_v23 = vunpack.i.h.bf16 %v5282_v8  ;;  %v5283_v26 = vunpack.i.l.bf16 %v5282_v8  ;;  %v5297_v36 = vpop.permute.xlu1 %5296 }
 0x149   : > { %v5299_v55 = vunpack.i.h.bf16 %v5297_v36  ;;  %v5298_v5 = vunpack.i.l.bf16 %v5297_v36 }
 0x14a   : > { %v1575_v52 = vsel %vm1554_vm7, %v1542_v63, %v5283_v26  ;;  %v1576_v42 = vsel %vm1554_vm7, %v1543_v27, %v5284_v23  ;;  %v1678_v26 = vpack.c.bf16 %v6983_v1, %v6980_v45 }
 0x14b   : > { %v5292_v39 = vpop.permute.xlu0 %5291  ;;  %v1608_v29 = vsel %vm1587_vm8, %v1575_v52, %v5288_v53  ;;  %v1609_v34 = vsel %vm1587_vm8, %v1576_v42, %v5289_v51  ;;  %v1448_v37 = vsel %vm1426_vm3, %v9145_v9, %v5299_v55  ;;  %v1447_v18 = vsel %vm1426_vm3, %v9146_v31, %v5298_v5  ;;  %v9147_v5 = vld [vmem:[#allocation12_spill] sm:$0xff] }
 0x14c   : > { %v5294_v22 = vunpack.i.h.bf16 %v5292_v39  ;;  %v5293_v6 = vunpack.i.l.bf16 %v5292_v39  ;;  %v5307_v11 = vpop.permute.xlu1 %5306 }
 0x14d   : > { %v5309_v10 = vunpack.i.h.bf16 %v5307_v11  ;;  %v5308_v30 = vunpack.i.l.bf16 %v5307_v11 }
 0x14e   : > { %v1641_v12 = vsel %vm1620_vm9, %v1608_v29, %v5293_v6  ;;  %v1642_v21 = vsel %vm1620_vm9, %v1609_v34, %v5294_v22  ;;  %v9148_v6 = vld [vmem:[#allocation13_spill] sm:$0xff] }
 0x14f   : > { %v5302_v43 = vpop.permute.xlu0 %5301  ;;  %v1673_v44 = vpack.c.bf16 %v1642_v21, %v1641_v12 }
 0x150   : > { %v5304_v46 = vunpack.i.h.bf16 %v5302_v43  ;;  %v5303_v15 = vunpack.i.l.bf16 %v5302_v43  ;;  %v5317_v3 = vpop.permute.xlu1 %5316 }
 0x151   : > { %1914 = vmatmul.mubr.bf16.gmra.mrb[40].mxu0 %v1673_v44  ;;  %v5319_v20 = vunpack.i.h.bf16 %v5317_v3  ;;  %v5318_v41 = vunpack.i.l.bf16 %v5317_v3 }
 0x152   : > { %v1478_v57 = vsel %vm1457_vm4, %v1447_v18, %v5303_v15  ;;  %v1479_v49 = vsel %vm1457_vm4, %v1448_v37, %v5304_v46  ;;  %4798 = vmatprep.mubr.msk.bf16.mxu0 %vm1426_vm3, %v1676_v17 }
 0x153   : > { %v5312_v62 = vpop.permute.xlu0 %5311  ;;  %v1511_v14 = vsel %vm1488_vm5, %v1478_v57, %v5308_v30  ;;  %v1512_v35 = vsel %vm1488_vm5, %v1479_v49, %v5309_v10 }
 0x154   : > { %v5314_v33 = vunpack.i.h.bf16 %v5312_v62  ;;  %v5313_v0 = vunpack.i.l.bf16 %v5312_v62  ;;  %v5327_v54 = vpop.permute.xlu1 %5326 }
 0x155   : > { %v5329_v47 = vunpack.i.h.bf16 %v5327_v54  ;;  %v5328_v32 = vunpack.i.l.bf16 %v5327_v54 }
 0x156   : > { %v1544_v13 = vsel %vm1521_vm6, %v1511_v14, %v5313_v0  ;;  %v1545_v2 = vsel %vm1521_vm6, %v1512_v35, %v5314_v33 }
 0x157   : > { %v5322_v38 = vpop.permute.xlu0 %5321  ;;  %v1577_v28 = vsel %vm1554_vm7, %v1544_v13, %v5318_v41  ;;  %v1578_v7 = vsel %vm1554_vm7, %v1545_v2, %v5319_v20 }
 0x158   : > { %v5324_v40 = vunpack.i.h.bf16 %v5322_v38  ;;  %v5323_v16 = vunpack.i.l.bf16 %v5322_v38  ;;  %v5337_v19 = vpop.permute.xlu1 %5336  ;;  %v7215_v38 = vpack.c.bf16 %v7042_v4, %v7039_v58 }
 0x159   : > { %v5339_v63 = vunpack.i.h.bf16 %v5337_v19  ;;  %v5338_v27 = vunpack.i.l.bf16 %v5337_v19 }
 0x15a   : > { %v1610_v8 = vsel %vm1587_vm8, %v1577_v28, %v5323_v16  ;;  %v1611_v23 = vsel %vm1587_vm8, %v1578_v7, %v5324_v40 }
 0x15b   : > { %v5332_v36 = vpop.permute.xlu0 %5331  ;;  %v1643_v51 = vsel %vm1620_vm9, %v1610_v8, %v5328_v32  ;;  %v1644_v53 = vsel %vm1620_vm9, %v1611_v23, %v5329_v47 }
 0x15c   : > { %v5334_v52 = vunpack.i.h.bf16 %v5332_v36  ;;  %v5333_v42 = vunpack.i.l.bf16 %v5332_v36  ;;  %v1675_v39 = vpack.c.bf16 %v1644_v53, %v1643_v51  ;;  %v5347_v55 = vpop.permute.xlu1 %5346 }
 0x15d   : > { %v5349_v17 = vunpack.i.h.bf16 %v5347_v55  ;;  %v5348_v9 = vunpack.i.l.bf16 %v5347_v55 }
 0x15e   : > { %v1450_v22 = vsel %vm1426_vm3, %v9147_v5, %v5334_v52  ;;  %v1449_v11 = vsel %vm1426_vm3, %v9148_v6, %v5333_v42  ;;  %1922 = vmatmul.mubr.bf16.gmra.mrb[44].mxu0 %v1675_v39 }
 0x15f   : > { %v1481_v45 = vsel %vm1457_vm4, %v1450_v22, %v5339_v63  ;;  %v1480_v1 = vsel %vm1457_vm4, %v1449_v11, %v5338_v27  ;;  %v5342_v29 = vpop.permute.xlu0 %5341  ;;  %4799 = vmatprep.mubr.msk.bf16.mxu0 %vm1426_vm3, %v1678_v26 }
 0x160   : > { %v5344_v34 = vunpack.i.h.bf16 %v5342_v29  ;;  %v5343_v12 = vunpack.i.l.bf16 %v5342_v29  ;;  %v5357_v21 = vpop.permute.xlu1 %5356 }
 0x161   : > { %v5359_v10 = vunpack.i.h.bf16 %v5357_v21  ;;  %v5358_v30 = vunpack.i.l.bf16 %v5357_v21 }
 0x162   : > { %v1513_v37 = vsel %vm1488_vm5, %v1480_v1, %v5343_v12  ;;  %v1514_v31 = vsel %vm1488_vm5, %v1481_v45, %v5344_v34  ;;  %v1682_v12 = vpack.c.bf16 %v7079_v61, %v7076_v50 }
 0x163   : > { %v5352_v18 = vpop.permute.xlu0 %5351  ;;  %v1546_v15 = vsel %vm1521_vm6, %v1513_v37, %v5348_v9  ;;  %v1547_v3 = vsel %vm1521_vm6, %v1514_v31, %v5349_v17 }
 0x164   : > { %v5354_v43 = vunpack.i.h.bf16 %v5352_v18  ;;  %v5353_v44 = vunpack.i.l.bf16 %v5352_v18  ;;  %v5367_v46 = vpop.permute.xlu1 %5366 }
 0x165   : > { %v5369_v33 = vunpack.i.h.bf16 %v5367_v46  ;;  %v5368_v0 = vunpack.i.l.bf16 %v5367_v46 }
 0x166   : > { %v1579_v57 = vsel %vm1554_vm7, %v1546_v15, %v5353_v44  ;;  %v1580_v49 = vsel %vm1554_vm7, %v1547_v3, %v5354_v43 }
 0x167   : > { %v5362_v62 = vpop.permute.xlu0 %5361  ;;  %v1612_v20 = vsel %vm1587_vm8, %v1579_v57, %v5358_v30  ;;  %v1613_v41 = vsel %vm1587_vm8, %v1580_v49, %v5359_v10  ;;  %v1452_v47 = vsel %vm1426_vm3, %v6830_v24, %v5369_v33  ;;  %v1451_v32 = vsel %vm1426_vm3, %v6833_v56, %v5368_v0 }
 0x168   : > { %v5364_v54 = vunpack.i.h.bf16 %v5362_v62  ;;  %v5363_v14 = vunpack.i.l.bf16 %v5362_v62  ;;  %v5377_v35 = vpop.permute.xlu1 %5376 }
 0x169   : > { %v5379_v8 = vunpack.i.h.bf16 %v5377_v35  ;;  %v5378_v23 = vunpack.i.l.bf16 %v5377_v35 }
 0x16a   : > { %v1645_v13 = vsel %vm1620_vm9, %v1612_v20, %v5363_v14  ;;  %v1646_v2 = vsel %vm1620_vm9, %v1613_v41, %v5364_v54 }
 0x16b   : > { %v5372_v40 = vpop.permute.xlu0 %5371  ;;  %v1677_v16 = vpack.c.bf16 %v1646_v2, %v1645_v13 }
 0x16c   : > { %v5374_v19 = vunpack.i.h.bf16 %v5372_v40  ;;  %v5373_v28 = vunpack.i.l.bf16 %v5372_v40  ;;  %v5387_v7 = vpop.permute.xlu1 %5386 }
 0x16d   : > { %1930 = vmatmul.mubr.bf16.gmra.mrb[48].mxu0 %v1677_v16  ;;  %v5389_v51 = vunpack.i.h.bf16 %v5387_v7  ;;  %v5388_v53 = vunpack.i.l.bf16 %v5387_v7 }
 0x16e   : > { %v1482_v26 = vsel %vm1457_vm4, %v1451_v32, %v5373_v28  ;;  %v1483_v36 = vsel %vm1457_vm4, %v1452_v47, %v5374_v19  ;;  %4800 = vmatprep.mubr.msk.bf16.mxu0 %vm1426_vm3, %v7215_v38 }
 0x16f   : > { %v5382_v58 = vpop.permute.xlu0 %5381  ;;  %v1515_v56 = vsel %vm1488_vm5, %v1482_v26, %v5378_v23  ;;  %v1516_v27 = vsel %vm1488_vm5, %v1483_v36, %v5379_v8 }
 0x170   : > { %v5384_v24 = vunpack.i.h.bf16 %v5382_v58  ;;  %v5383_v4 = vunpack.i.l.bf16 %v5382_v58  ;;  %v7225_v63 = vpop.permute.xlu1 %5396 }
 0x171   : > { %v5399_v55 = vunpack.i.h.bf16 %v7225_v63  ;;  %v5398_v5 = vunpack.i.l.bf16 %v7225_v63 }
 0x172   : > { %v1548_v52 = vsel %vm1521_vm6, %v1515_v56, %v5383_v4  ;;  %v1549_v42 = vsel %vm1521_vm6, %v1516_v27, %v5384_v24 }
 0x173   : > { %v7231_v39 = vpop.permute.xlu0 %5391  ;;  %v1581_v45 = vsel %vm1554_vm7, %v1548_v52, %v5388_v53  ;;  %v1582_v1 = vsel %vm1554_vm7, %v1549_v42, %v5389_v51 }
 0x174   : > { %v5394_v22 = vunpack.i.h.bf16 %v7231_v39  ;;  %v5393_v6 = vunpack.i.l.bf16 %v7231_v39  ;;  %v5407_v11 = vpop.permute.xlu1 %5406  ;;  %v6010_v39 = vld [vmem:[%s9083_s2 + $0x8] sm:$0xff]  }
 0x175   : > { %v5409_v17 = vunpack.i.h.bf16 %v5407_v11  ;;  %v5408_v9 = vunpack.i.l.bf16 %v5407_v11 }
 0x176   : > { %v1614_v29 = vsel %vm1587_vm8, %v1581_v45, %v5393_v6  ;;  %v1615_v34 = vsel %vm1587_vm8, %v1582_v1, %v5394_v22 }
 0x177   : > { %v5402_v21 = vpop.permute.xlu0 %5401  ;;  %v1647_v37 = vsel %vm1620_vm9, %v1614_v29, %v5398_v5  ;;  %v1648_v31 = vsel %vm1620_vm9, %v1615_v34, %v5399_v55 }
 0x178   : > { %v5404_v18 = vunpack.i.h.bf16 %v5402_v21  ;;  %v5403_v43 = vunpack.i.l.bf16 %v5402_v21  ;;  %v1679_v44 = vpack.c.bf16 %v1648_v31, %v1647_v37  ;;  %v5417_v46 = vpop.permute.xlu1 %5416 }
 0x179   : > { %v5419_v62 = vunpack.i.h.bf16 %v5417_v46  ;;  %v5418_v33 = vunpack.i.l.bf16 %v5417_v46 }
 0x17a   : > { %v1454_v15 = vsel %vm1426_vm3, %v6904_v25, %v5404_v18  ;;  %v1453_v50 = vsel %vm1426_vm3, %v6907_v60, %v5403_v43  ;;  %1938 = vmatmul.mubr.bf16.gmra.mrb[52].mxu0 %v1679_v44 }
 0x17b   : > { %v1485_v61 = vsel %vm1457_vm4, %v1454_v15, %v5409_v17  ;;  %v1484_v3 = vsel %vm1457_vm4, %v1453_v50, %v5408_v9  ;;  %v5412_v10 = vpop.permute.xlu0 %5411  ;;  %4801 = vmatprep.mubr.msk.bf16.mxu0 %vm1426_vm3, %v1682_v12  ;;  %v6009_v50 = vld [vmem:[%s9083_s2] sm:$0xff]  }
 0x17c   : > { %v5414_v30 = vunpack.i.h.bf16 %v5412_v10  ;;  %v5413_v57 = vunpack.i.l.bf16 %v5412_v10  ;;  %v5427_v49 = vpop.permute.xlu1 %5426  ;;  %3456 = vmatpush1.bf16.msra.mxu1 %v6009_v50  ;;  %v6017_v50 = vld [vmem:[%s9083_s2 + $0x40] sm:$0xff]  }
 0x17d   : > { %v5429_v13 = vunpack.i.h.bf16 %v5427_v49  ;;  %v5428_v2 = vunpack.i.l.bf16 %v5427_v49 }
 0x17e   : > { %v1517_v0 = vsel %vm1488_vm5, %v1484_v3, %v5413_v57  ;;  %v1518_v25 = vsel %vm1488_vm5, %v1485_v61, %v5414_v30 }
 0x17f   : > { %v5422_v54 = vpop.permute.xlu0 %5421  ;;  %v1550_v20 = vsel %vm1521_vm6, %v1517_v0, %v5418_v33  ;;  %v1551_v41 = vsel %vm1521_vm6, %v1518_v25, %v5419_v62  ;;  %v6012_v0 = vld [vmem:[%s9083_s2 + $0x18] sm:$0xff]  }
 0x180   : > { %v5424_v14 = vunpack.i.h.bf16 %v5422_v54  ;;  %v5423_v60 = vunpack.i.l.bf16 %v5422_v54  ;;  %v5437_v35 = vpop.permute.xlu1 %5436 }
 0x181   : > { %v5439_v16 = vunpack.i.h.bf16 %v5437_v35  ;;  %v5438_v19 = vunpack.i.l.bf16 %v5437_v35 }
 0x182   : > { %v1583_v47 = vsel %vm1554_vm7, %v1550_v20, %v5423_v60  ;;  %v1584_v32 = vsel %vm1554_vm7, %v1551_v41, %v5424_v14 }
 0x183   : > { %v5432_v40 = vpop.permute.xlu0 %5431  ;;  %v1616_v23 = vsel %vm1587_vm8, %v1583_v47, %v5428_v2  ;;  %v1617_v26 = vsel %vm1587_vm8, %v1584_v32, %v5429_v13  ;;  %v1456_v24 = vsel %vm1426_vm3, %v6964_v48, %v5439_v16  ;;  %v1455_v4 = vsel %vm1426_vm3, %v6967_v59, %v5438_v19  ;;  %v6013_v47 = vld [vmem:[%s9083_s2 + $0x20] sm:$0xff]  }
 0x184   : > { %v5434_v28 = vunpack.i.h.bf16 %v5432_v40  ;;  %v5433_v7 = vunpack.i.l.bf16 %v5432_v40  ;;  %v5447_v8 = vpop.permute.xlu1 %5446 }
 0x185   : > { %v5449_v42 = vunpack.i.h.bf16 %v5447_v8  ;;  %v5448_v11 = vunpack.i.l.bf16 %v5447_v8 }
 0x186   : > { %v1649_v36 = vsel %vm1620_vm9, %v1616_v23, %v5433_v7  ;;  %v1650_v58 = vsel %vm1620_vm9, %v1617_v26, %v5434_v28  ;;  %v6014_v23 = vld [vmem:[%s9083_s2 + $0x28] sm:$0xff]  }
 0x187   : > { %v5442_v56 = vpop.permute.xlu0 %5441  ;;  %v1681_v27 = vpack.c.bf16 %v1650_v58, %v1649_v36 }
 0x188   : > { %v5444_v51 = vunpack.i.h.bf16 %v5442_v56  ;;  %v5443_v53 = vunpack.i.l.bf16 %v5442_v56  ;;  %v5457_v52 = vpop.permute.xlu1 %5456 }
 0x189   : > { %1946 = vmatmul.mubr.bf16.gmra.mrb[56].mxu0 %v1681_v27  ;;  %v5459_v48 = vunpack.i.h.bf16 %v5457_v52  ;;  %v5458_v34 = vunpack.i.l.bf16 %v5457_v52 }
 0x18a   : > { %v1486_v45 = vsel %vm1457_vm4, %v1455_v4, %v5443_v53  ;;  %v1487_v1 = vsel %vm1457_vm4, %v1456_v24, %v5444_v51  ;;  %4802 = vmatprep.mubr.msk.bf16.mxu0 %vm1426_vm3, %v7215_v38  ;;  %v6015_v51 = vld [vmem:[%s9083_s2 + $0x30] sm:$0xff]  }
 0x18b   : > { %v5452_v29 = vpop.permute.xlu0 %5451  ;;  %v1519_v21 = vsel %vm1488_vm5, %v1486_v45, %v5448_v11  ;;  %v1520_v17 = vsel %vm1488_vm5, %v1487_v1, %v5449_v42 }
 0x18c   : > { %v5454_v12 = vunpack.i.h.bf16 %v5452_v29  ;;  %v5453_v59 = vunpack.i.l.bf16 %v5452_v29 }
 0x18e   : > { %v1552_v9 = vsel %vm1521_vm6, %v1519_v21, %v5453_v59  ;;  %v1553_v37 = vsel %vm1521_vm6, %v1520_v17, %v5454_v12  ;;  %v6016_v59 = vld [vmem:[%s9083_s2 + $0x38] sm:$0xff]  }
 0x18f   : > { %v1585_v31 = vsel %vm1554_vm7, %v1552_v9, %v5458_v34  ;;  %v1586_v18 = vsel %vm1554_vm7, %v1553_v37, %v5459_v48 }
 0x190   : > { %v1618_v38 = vsel %vm1587_vm8, %v1585_v31, %v5393_v6  ;;  %v1619_v43 = vsel %vm1587_vm8, %v1586_v18, %v5394_v22  ;;  %v9149_v6 = vmov 0  }
 0x191   : > { %v1651_v44 = vsel %vm1620_vm9, %v1618_v38, %v5398_v5  ;;  %v1652_v46 = vsel %vm1620_vm9, %v1619_v43, %v5399_v55  ;;  %3457 = vmatprep.subr.bf16.mxu1 %v9149_v6  ;;  %v6011_v55 = vld [vmem:[%s9083_s2 + $0x10] sm:$0xff]  }
 0x192   : > { %v1683_v15 = vpack.c.bf16 %v1652_v46, %v1651_v44  ;;  %3458 = vmatpush1.bf16.msra.mxu1 %v6010_v39 }
 0x193   : > { %3459 = vmatprep.subr.bf16.mxu1 %v9149_v6 }
 0x194   : > { %1954 = vmatmul.mubr.bf16.gmra.mrb[60].mxu0 %v1683_v15 }
 0x196   : > { %3460 = vmatpush1.bf16.msra.mxu1 %v6011_v55 }
 0x197   : > { %3461 = vmatprep.subr.bf16.mxu1 %v9149_v6 }
 0x19a   : > { %3462 = vmatpush1.bf16.msra.mxu1 %v6012_v0 }
 0x19b   : > { %3463 = vmatprep.subr.bf16.mxu1 %v9149_v6 }
 0x19c   : > { %v1835_v22 = vpop.f32.mrb[0].mxu0 }
 0x19d   : > { %v1962_v63 = vmax.f32 %v1835_v22, 0.0  ;;  %v1837_v5 = vpop.f32.mrb[1].mxu0 }
 0x19e   : > { %v1838_v61 = vpop.f32.mrb[2].mxu0  ;;  %3464 = vmatpush1.bf16.msra.mxu1 %v6013_v47 }
 0x19f   : > { %v2011_v3 = vrot.slane %v1962_v63, 1  ;;  %v2061_v10 = vrot.slane %v1962_v63, 7  ;;  %v1963_v30 = vmax.f32 %v1838_v61, 0.0  ;;  %v1840_v57 = vpop.f32.mrb[3].mxu0  ;;  %3465 = vmatprep.subr.bf16.mxu1 %v9149_v6 }
 0x1a1   : > { %v7309_v49 = vsel %vm394_vm0, %v2011_v3, %v2061_v10  ;;  %v2062_v62 = vrot.slane %v1963_v30, 7  ;;  %v2154_v33 = vrot.slane %v1963_v30, 5 }
 0x1a2   : > { %v2252_v25 = vrot.slane %v7309_v49, 1  ;;  %v2327_v54 = vrot.slane %v7309_v49, 2  ;;  %3466 = vmatpush1.bf16.msra.mxu1 %v6014_v23 }
 0x1a3   : > { %v7317_v14 = vsel %vm394_vm0, %v2061_v10, %v2062_v62  ;;  %v2202_v60 = vsel %vm394_vm0, %v2062_v62, %v2154_v33  ;;  %3467 = vmatprep.subr.bf16.mxu1 %v9149_v6 }
 0x1a4   : > { %v2253_v35 = vrot.slane %v7317_v14, 1  ;;  %v2255_v20 = vrot.slane %v2202_v60, 1  ;;  %v2328_v41 = vrot.slane %v7317_v14, 2  ;;  %v2330_v13 = vrot.slane %v2202_v60, 2 }
 0x1a5   : > { %v5460_v2 = vpack.i.bf16 %v7317_v14, %v7309_v49 }
 0x1a6   : > { %v2254_v32 = vsel %vm584_vm1, %v2252_v25, %v2253_v35  ;;  %v2256_v40 = vsel %vm584_vm1, %v2253_v35, %v2255_v20  ;;  %v2329_v16 = vsel %vm660_vm2, %v2327_v54, %v2328_v41  ;;  %v2331_v19 = vsel %vm660_vm2, %v2328_v41, %v2330_v13  ;;  %3468 = vmatpush1.bf16.msra.mxu1 %v6015_v51 }
 0x1a7   : > { %5461 = vrot.lane.b32.xlu0 %v5460_v2, %s6168_s12  ;;  %v5465_v28 = vpack.i.bf16 %v2256_v40, %v2254_v32  ;;  %v5470_v7 = vpack.i.bf16 %v2331_v19, %v2329_v16  ;;  %3469 = vmatprep.subr.bf16.mxu1 %v9149_v6 }
 0x1a9   : > { %5466 = vrot.lane.b32.xlu1 %v5465_v28, %s6172_s18  ;;  %v1843_v8 = vpop.f32.mrb[4].mxu0 }
 0x1aa   : > { %v1964_v26 = vmax.f32 %v1843_v8, 0.0  ;;  %v1845_v36 = vpop.f32.mrb[5].mxu0  ;;  %3470 = vmatpush1.bf16.msra.mxu1 %v6016_v59 }
 0x1ab   : > { %5471 = vrot.lane.b32.xlu0 %v5470_v7, %s6173_s23  ;;  %v1846_v58 = vpop.f32.mrb[6].mxu0  ;;  %3471 = vmatprep.subr.bf16.mxu1 %v9149_v6 }
 0x1ac   : > { %v2010_v24 = vrot.slane %v1964_v26, 1  ;;  %v2058_v4 = vrot.slane %v1964_v26, 7  ;;  %v1965_v56 = vmax.f32 %v1846_v58, 0.0  ;;  %v1848_v27 = vpop.f32.mrb[7].mxu0 }
 0x1ad   : > { %5476 = vrot.lane.b32.xlu1 %v5465_v28, %s6169_s19 }
 0x1ae   : > { %v7345_v53 = vsel %vm394_vm0, %v2010_v24, %v2058_v4  ;;  %v2059_v52 = vrot.slane %v1965_v56, 7  ;;  %v2153_v42 = vrot.slane %v1965_v56, 5  ;;  %3472 = vmatpush1.bf16.msra.mxu1 %v6017_v50 }
 0x1af   : > { %5481 = vrot.lane.b32.xlu0 %v5470_v7, %s6171_s11  ;;  %v2247_v11 = vrot.slane %v7345_v53, 1  ;;  %v2322_v21 = vrot.slane %v7345_v53, 2 }
 0x1b0   : > { %v7350_v45 = vsel %vm394_vm0, %v2058_v4, %v2059_v52  ;;  %v2201_v1 = vsel %vm394_vm0, %v2059_v52, %v2153_v42 }
 0x1b1   : > { %v2248_v29 = vrot.slane %v7350_v45, 1  ;;  %v2250_v48 = vrot.slane %v2201_v1, 1  ;;  %v2325_v34 = vrot.slane %v2201_v1, 2  ;;  %v5485_v12 = vpack.i.bf16 %v7350_v45, %v7345_v53 }
 0x1b2   : > { %v2323_v17 = vrot.slane %v7350_v45, 2 }
 0x1b3   : > { %5486 = vrot.lane.b32.xlu1 %v5485_v12, %s6170_s21  ;;  %v2249_v9 = vsel %vm584_vm1, %v2247_v11, %v2248_v29  ;;  %v2251_v37 = vsel %vm584_vm1, %v2248_v29, %v2250_v48 }
 0x1b4   : > { %v1851_v31 = vpop.f32.mrb[8].mxu0  ;;  %v2324_v18 = vsel %vm660_vm2, %v2322_v21, %v2323_v17  ;;  %v2326_v38 = vsel %vm660_vm2, %v2323_v17, %v2325_v34  ;;  %v5495_v43 = vpack.i.bf16 %v2251_v37, %v2249_v9 }
 0x1b5   : > { %v1966_v44 = vmax.f32 %v1851_v31, 0.0  ;;  %v1853_v46 = vpop.f32.mrb[9].mxu0  ;;  %v3308_v15 = vpack.c.bf16 %v2326_v38, %v2324_v18  ;;  %v5500_v6 = vpack.i.bf16 %v2326_v38, %v2324_v18 }
 0x1b6   : > { %5496 = vrot.lane.b32.xlu0 %v5495_v43, %s6169_s19  ;;  %v1854_v39 = vpop.f32.mrb[10].mxu0 }
 0x1b7   : > { %v2012_v22 = vrot.slane %v1966_v44, 1  ;;  %v2064_v63 = vrot.slane %v1966_v44, 7  ;;  %4812 = vmatprep.mubr.msk.bf16.mxu1 %vm1426_vm3, %v3308_v15  ;;  %v1967_v5 = vmax.f32 %v1854_v39, 0.0  ;;  %5491 = vrot.lane.b32.xlu1 %v5485_v12, %s6168_s12  ;;  %v1856_v55 = vpop.f32.mrb[11].mxu0 }
 0x1b9   : > { %v7375_v61 = vsel %vm394_vm0, %v2012_v22, %v2064_v63  ;;  %v2065_v3 = vrot.slane %v1967_v5, 7  ;;  %v2155_v10 = vrot.slane %v1967_v5, 5 }
 0x1ba   : > { %5506 = vrot.lane.b32.xlu0 %v5495_v43, %s9150_s20  ;;  %v2257_v30 = vrot.slane %v7375_v61, 1  ;;  %v2332_v57 = vrot.slane %v7375_v61, 2 }
 0x1bb   : > { %v7381_v62 = vsel %vm394_vm0, %v2064_v63, %v2065_v3  ;;  %v2203_v33 = vsel %vm394_vm0, %v2065_v3, %v2155_v10  ;;  %5501 = vrot.lane.b32.xlu1 %v5500_v6, %s6171_s11 }
 0x1bc   : > { %v2258_v0 = vrot.slane %v7381_v62, 1  ;;  %v2260_v25 = vrot.slane %v2203_v33, 1  ;;  %v2333_v54 = vrot.slane %v7381_v62, 2  ;;  %v2335_v60 = vrot.slane %v2203_v33, 2 }
 0x1bd   : > { %v5520_v2 = vpack.i.bf16 %v7381_v62, %v7375_v61 }
 0x1be   : > { %5511 = vrot.lane.b32.xlu0 %v5495_v43, %s6172_s18  ;;  %v2259_v35 = vsel %vm584_vm1, %v2257_v30, %v2258_v0  ;;  %v2261_v20 = vsel %vm584_vm1, %v2258_v0, %v2260_v25  ;;  %v7391_v41 = vsel %vm660_vm2, %v2332_v57, %v2333_v54  ;;  %v7394_v13 = vsel %vm660_vm2, %v2333_v54, %v2335_v60 }
 0x1bf   : > { %5516 = vrot.lane.b32.xlu1 %v5500_v6, %s6173_s23  ;;  %v5530_v40 = vpack.i.bf16 %v2261_v20, %v2259_v35  ;;  %v5540_v4 = vpack.i.bf16 %v7394_v13, %v7391_v41 }
 0x1c1   : > { %v1859_v32 = vpop.f32.mrb[12].mxu0 }
 0x1c2   : > { %v1968_v16 = vmax.f32 %v1859_v32, 0.0  ;;  %5521 = vrot.lane.b32.xlu0 %v5520_v2, %s6170_s21  ;;  %v1861_v19 = vpop.f32.mrb[13].mxu0 }
 0x1c3   : > { %5531 = vrot.lane.b32.xlu1 %v5530_v40, %s9150_s20  ;;  %v1862_v28 = vpop.f32.mrb[14].mxu0 }
 0x1c4   : > { %v2013_v7 = vrot.slane %v1968_v16, 1  ;;  %v2067_v8 = vrot.slane %v1968_v16, 7  ;;  %v1969_v23 = vmax.f32 %v1862_v28, 0.0  ;;  %v1864_v26 = vpop.f32.mrb[15].mxu0 }
 0x1c6   : > { %v7404_v36 = vsel %vm394_vm0, %v2013_v7, %v2067_v8  ;;  %v2068_v58 = vrot.slane %v1969_v23, 7  ;;  %v2156_v24 = vrot.slane %v1969_v23, 5  ;;  %5526 = vrot.lane.b32.xlu0 %v5520_v2, %s6168_s12 }
 0x1c7   : > { %5536 = vrot.lane.b32.xlu1 %v5530_v40, %s6172_s18  ;;  %v2337_v56 = vrot.slane %v7404_v36, 2  ;;  %v2262_v29 = vrot.slane %v7404_v36, 1 }
 0x1c8   : > { %v7412_v27 = vsel %vm394_vm0, %v2067_v8, %v2068_v58  ;;  %v2204_v51 = vsel %vm394_vm0, %v2068_v58, %v2156_v24 }
 0x1c9   : > { %v2263_v52 = vrot.slane %v7412_v27, 1  ;;  %v2265_v42 = vrot.slane %v2204_v51, 1  ;;  %v2338_v11 = vrot.slane %v7412_v27, 2  ;;  %v2340_v1 = vrot.slane %v2204_v51, 2 }
 0x1ca   : > { %5541 = vrot.lane.b32.xlu0 %v5540_v4, %s6173_s23  ;;  %v5555_v12 = vpack.i.bf16 %v7412_v27, %v7404_v36 }
 0x1cb   : > { %5546 = vrot.lane.b32.xlu1 %v5530_v40, %s6169_s19  ;;  %v7421_v48 = vsel %vm660_vm2, %v2337_v56, %v2338_v11  ;;  %v7424_v34 = vsel %vm660_vm2, %v2338_v11, %v2340_v1  ;;  %v2264_v59 = vsel %vm584_vm1, %v2262_v29, %v2263_v52  ;;  %v2266_v21 = vsel %vm584_vm1, %v2263_v52, %v2265_v42 }
 0x1cc   : > { %v5565_v37 = vpack.i.bf16 %v2266_v21, %v2264_v59  ;;  %v5575_v63 = vpack.i.bf16 %v7424_v34, %v7421_v48 }
 0x1ce   : > { %5551 = vrot.lane.b32.xlu0 %v5540_v4, %s6171_s11 }
 0x1cf   : > { %5556 = vrot.lane.b32.xlu1 %v5555_v12, %s6170_s21 }
 0x1d0   : > { %v1867_v9 = vpop.f32.mrb[16].mxu0 }
 0x1d1   : > { %v1970_v31 = vmax.f32 %v1867_v9, 0.0  ;;  %v1869_v18 = vpop.f32.mrb[17].mxu0 }
 0x1d2   : > { %5566 = vrot.lane.b32.xlu0 %v5565_v37, %s9150_s20  ;;  %v1870_v38 = vpop.f32.mrb[18].mxu0 }
 0x1d3   : > { %v2014_v43 = vrot.slane %v1970_v31, 1  ;;  %v2070_v44 = vrot.slane %v1970_v31, 7  ;;  %v1971_v46 = vmax.f32 %v1870_v38, 0.0  ;;  %5561 = vrot.lane.b32.xlu1 %v5555_v12, %s6168_s12  ;;  %v1872_v15 = vpop.f32.mrb[19].mxu0 }
 0x1d5   : > { %v7437_v50 = vsel %vm394_vm0, %v2014_v43, %v2070_v44  ;;  %v2071_v39 = vrot.slane %v1971_v46, 7  ;;  %v2157_v22 = vrot.slane %v1971_v46, 5 }
 0x1d6   : > { %5571 = vrot.lane.b32.xlu0 %v5565_v37, %s6172_s18  ;;  %v2267_v5 = vrot.slane %v7437_v50, 1  ;;  %v2342_v55 = vrot.slane %v7437_v50, 2 }
 0x1d7   : > { %v7445_v6 = vsel %vm394_vm0, %v2070_v44, %v2071_v39  ;;  %v2205_v3 = vsel %vm394_vm0, %v2071_v39, %v2157_v22  ;;  %5576 = vrot.lane.b32.xlu1 %v5575_v63, %s6173_s23 }
 0x1d8   : > { %v2268_v10 = vrot.slane %v7445_v6, 1  ;;  %v2270_v30 = vrot.slane %v2205_v3, 1  ;;  %v2343_v57 = vrot.slane %v7445_v6, 2  ;;  %v2345_v33 = vrot.slane %v2205_v3, 2 }
 0x1d9   : > { %v5590_v35 = vpack.i.bf16 %v7445_v6, %v7437_v50 }
 0x1da   : > { %5581 = vrot.lane.b32.xlu0 %v5565_v37, %s6169_s19  ;;  %v2269_v0 = vsel %vm584_vm1, %v2267_v5, %v2268_v10  ;;  %v2271_v25 = vsel %vm584_vm1, %v2268_v10, %v2270_v30  ;;  %v7455_v54 = vsel %vm660_vm2, %v2342_v55, %v2343_v57  ;;  %v7458_v60 = vsel %vm660_vm2, %v2343_v57, %v2345_v33 }
 0x1db   : > { %5586 = vrot.lane.b32.xlu1 %v5575_v63, %s6171_s11  ;;  %v5600_v32 = vpack.i.bf16 %v2271_v25, %v2269_v0  ;;  %v5610_v4 = vpack.i.bf16 %v7458_v60, %v7455_v54 }
 0x1dd   : > { %v1875_v2 = vpop.f32.mrb[20].mxu0 }
 0x1de   : > { %v1972_v40 = vmax.f32 %v1875_v2, 0.0  ;;  %5591 = vrot.lane.b32.xlu0 %v5590_v35, %s6170_s21  ;;  %v1877_v16 = vpop.f32.mrb[21].mxu0 }
 0x1df   : > { %5601 = vrot.lane.b32.xlu1 %v5600_v32, %s9150_s20  ;;  %v1878_v19 = vpop.f32.mrb[22].mxu0 }
 0x1e0   : > { %v2015_v28 = vrot.slane %v1972_v40, 1  ;;  %v2073_v7 = vrot.slane %v1972_v40, 7  ;;  %v1973_v8 = vmax.f32 %v1878_v19, 0.0  ;;  %v1880_v23 = vpop.f32.mrb[23].mxu0 }
 0x1e2   : > { %v7468_v26 = vsel %vm394_vm0, %v2015_v28, %v2073_v7  ;;  %v2074_v58 = vrot.slane %v1973_v8, 7  ;;  %v2158_v24 = vrot.slane %v1973_v8, 5  ;;  %5596 = vrot.lane.b32.xlu0 %v5590_v35, %s6168_s12 }
 0x1e3   : > { %5606 = vrot.lane.b32.xlu1 %v5600_v32, %s6172_s18  ;;  %v2347_v56 = vrot.slane %v7468_v26, 2  ;;  %v2272_v12 = vrot.slane %v7468_v26, 1 }
 0x1e4   : > { %v7476_v51 = vsel %vm394_vm0, %v2073_v7, %v2074_v58  ;;  %v2206_v52 = vsel %vm394_vm0, %v2074_v58, %v2158_v24 }
 0x1e5   : > { %v2273_v42 = vrot.slane %v7476_v51, 1  ;;  %v2275_v11 = vrot.slane %v2206_v52, 1  ;;  %v2348_v1 = vrot.slane %v7476_v51, 2  ;;  %v2350_v29 = vrot.slane %v2206_v52, 2 }
 0x1e6   : > { %5611 = vrot.lane.b32.xlu0 %v5610_v4, %s6173_s23  ;;  %v5625_v9 = vpack.i.bf16 %v7476_v51, %v7468_v26 }
 0x1e7   : > { %5616 = vrot.lane.b32.xlu1 %v5600_v32, %s6169_s19  ;;  %v7485_v59 = vsel %vm660_vm2, %v2347_v56, %v2348_v1  ;;  %v7488_v21 = vsel %vm660_vm2, %v2348_v1, %v2350_v29  ;;  %v2274_v37 = vsel %vm584_vm1, %v2272_v12, %v2273_v42  ;;  %v2276_v31 = vsel %vm584_vm1, %v2273_v42, %v2275_v11 }
 0x1e8   : > { %v5635_v43 = vpack.i.bf16 %v2276_v31, %v2274_v37  ;;  %v5645_v30 = vpack.i.bf16 %v7488_v21, %v7485_v59 }
 0x1ea   : > { %5621 = vrot.lane.b32.xlu0 %v5610_v4, %s6171_s11 }
 0x1eb   : > { %5626 = vrot.lane.b32.xlu1 %v5625_v9, %s6170_s21 }
 0x1ec   : > { %v1883_v38 = vpop.f32.mrb[24].mxu0 }
 0x1ed   : > { %v1974_v44 = vmax.f32 %v1883_v38, 0.0  ;;  %v1885_v46 = vpop.f32.mrb[25].mxu0 }
 0x1ee   : > { %5636 = vrot.lane.b32.xlu0 %v5635_v43, %s9150_s20  ;;  %v1886_v15 = vpop.f32.mrb[26].mxu0 }
 0x1ef   : > { %v2016_v39 = vrot.slane %v1974_v44, 1  ;;  %v2076_v22 = vrot.slane %v1974_v44, 7  ;;  %v1975_v63 = vmax.f32 %v1886_v15, 0.0  ;;  %5631 = vrot.lane.b32.xlu1 %v5625_v9, %s6168_s12  ;;  %v1888_v5 = vpop.f32.mrb[27].mxu0 }
 0x1f1   : > { %v7501_v55 = vsel %vm394_vm0, %v2016_v39, %v2076_v22  ;;  %v2077_v3 = vrot.slane %v1975_v63, 7  ;;  %v2159_v10 = vrot.slane %v1975_v63, 5 }
 0x1f2   : > { %5641 = vrot.lane.b32.xlu0 %v5635_v43, %s6172_s18  ;;  %v2277_v57 = vrot.slane %v7501_v55, 1  ;;  %v2352_v33 = vrot.slane %v7501_v55, 2 }
 0x1f3   : > { %v7509_v0 = vsel %vm394_vm0, %v2076_v22, %v2077_v3  ;;  %v2207_v25 = vsel %vm394_vm0, %v2077_v3, %v2159_v10  ;;  %5646 = vrot.lane.b32.xlu1 %v5645_v30, %s6173_s23 }
 0x1f4   : > { %v2278_v35 = vrot.slane %v7509_v0, 1  ;;  %v2280_v2 = vrot.slane %v2207_v25, 1  ;;  %v2353_v32 = vrot.slane %v7509_v0, 2  ;;  %v2355_v40 = vrot.slane %v2207_v25, 2 }
 0x1f5   : > { %v5660_v8 = vpack.i.bf16 %v7509_v0, %v7501_v55 }
 0x1f6   : > { %5651 = vrot.lane.b32.xlu0 %v5635_v43, %s6169_s19  ;;  %v2279_v16 = vsel %vm584_vm1, %v2277_v57, %v2278_v35  ;;  %v2281_v19 = vsel %vm584_vm1, %v2278_v35, %v2280_v2  ;;  %v7519_v28 = vsel %vm660_vm2, %v2352_v33, %v2353_v32  ;;  %v7522_v7 = vsel %vm660_vm2, %v2353_v32, %v2355_v40 }
 0x1f7   : > { %5656 = vrot.lane.b32.xlu1 %v5645_v30, %s6171_s11  ;;  %v5670_v24 = vpack.i.bf16 %v2281_v19, %v2279_v16  ;;  %v5680_v31 = vpack.i.bf16 %v7522_v7, %v7519_v28 }
 0x1f9   : > { %v1891_v58 = vpop.f32.mrb[28].mxu0 }
 0x1fa   : > { %v1976_v4 = vmax.f32 %v1891_v58, 0.0  ;;  %5661 = vrot.lane.b32.xlu0 %v5660_v8, %s6170_s21  ;;  %v1893_v56 = vpop.f32.mrb[29].mxu0 }
 0x1fb   : > { %5671 = vrot.lane.b32.xlu1 %v5670_v24, %s9150_s20  ;;  %v1894_v52 = vpop.f32.mrb[30].mxu0 }
 0x1fc   : > { %v2017_v42 = vrot.slane %v1976_v4, 1  ;;  %v2079_v11 = vrot.slane %v1976_v4, 7  ;;  %v1977_v1 = vmax.f32 %v1894_v52, 0.0  ;;  %v1896_v29 = vpop.f32.mrb[31].mxu0 }
 0x1fe   : > { %v7532_v12 = vsel %vm394_vm0, %v2017_v42, %v2079_v11  ;;  %v2080_v9 = vrot.slane %v1977_v1, 7  ;;  %v2160_v37 = vrot.slane %v1977_v1, 5  ;;  %5666 = vrot.lane.b32.xlu0 %v5660_v8, %s6168_s12 }
 0x1ff   : > { %9151 = vst [vmem:[#allocation8_spill] sm:$0xff] %v7532_v12  ;;  %5676 = vrot.lane.b32.xlu1 %v5670_v24, %s6172_s18  ;;  %v2357_v38 = vrot.slane %v7532_v12, 2  ;;  %v2282_v63 = vrot.slane %v7532_v12, 1 }
 0x200   : > { %v7540_v43 = vsel %vm394_vm0, %v2079_v11, %v2080_v9  ;;  %v2208_v44 = vsel %vm394_vm0, %v2080_v9, %v2160_v37 }
 0x201   : > { %v2283_v46 = vrot.slane %v7540_v43, 1  ;;  %v2285_v15 = vrot.slane %v2208_v44, 1  ;;  %v2358_v39 = vrot.slane %v7540_v43, 2  ;;  %v2360_v22 = vrot.slane %v2208_v44, 2 }
 0x202   : > { %5681 = vrot.lane.b32.xlu0 %v5680_v31, %s6173_s23  ;;  %v5695_v10 = vpack.i.bf16 %v7540_v43, %v7532_v12 }
 0x203   : > { %5686 = vrot.lane.b32.xlu1 %v5670_v24, %s6169_s19  ;;  %v7549_v5 = vsel %vm660_vm2, %v2357_v38, %v2358_v39  ;;  %v7552_v3 = vsel %vm660_vm2, %v2358_v39, %v2360_v22  ;;  %v2284_v30 = vsel %vm584_vm1, %v2282_v63, %v2283_v46  ;;  %v2286_v57 = vsel %vm584_vm1, %v2283_v46, %v2285_v15 }
 0x204   : > { %v5705_v35 = vpack.i.bf16 %v2286_v57, %v2284_v30  ;;  %v5715_v52 = vpack.i.bf16 %v7552_v3, %v7549_v5 }
 0x206   : > { %5691 = vrot.lane.b32.xlu0 %v5680_v31, %s6171_s11 }
 0x207   : > { %5696 = vrot.lane.b32.xlu1 %v5695_v10, %s6170_s21 }
 0x208   : > { %v1899_v25 = vpop.f32.mrb[32].mxu0 }
 0x209   : > { %v1978_v2 = vmax.f32 %v1899_v25, 0.0  ;;  %v1901_v32 = vpop.f32.mrb[33].mxu0 }
 0x20a   : > { %5706 = vrot.lane.b32.xlu0 %v5705_v35, %s9150_s20  ;;  %v1902_v40 = vpop.f32.mrb[34].mxu0 }
 0x20b   : > { %v2018_v16 = vrot.slane %v1978_v2, 1  ;;  %v2082_v19 = vrot.slane %v1978_v2, 7  ;;  %v1979_v8 = vmax.f32 %v1902_v40, 0.0  ;;  %5701 = vrot.lane.b32.xlu1 %v5695_v10, %s6168_s12  ;;  %v1904_v58 = vpop.f32.mrb[35].mxu0 }
 0x20d   : > { %v7565_v24 = vsel %vm394_vm0, %v2018_v16, %v2082_v19  ;;  %v2083_v4 = vrot.slane %v1979_v8, 7  ;;  %v2161_v56 = vrot.slane %v1979_v8, 5 }
 0x20e   : > { %9152 = vst [vmem:[#allocation9_spill] sm:$0xff] %v7565_v24  ;;  %5711 = vrot.lane.b32.xlu0 %v5705_v35, %s6172_s18  ;;  %v2287_v42 = vrot.slane %v7565_v24, 1  ;;  %v2362_v11 = vrot.slane %v7565_v24, 2 }
 0x20f   : > { %v7573_v1 = vsel %vm394_vm0, %v2082_v19, %v2083_v4  ;;  %v2209_v29 = vsel %vm394_vm0, %v2083_v4, %v2161_v56  ;;  %5716 = vrot.lane.b32.xlu1 %v5715_v52, %s6173_s23 }
 0x210   : > { %9153 = vst [vmem:[#allocation10_spill] sm:$0xff] %v7573_v1  ;;  %v2288_v9 = vrot.slane %v7573_v1, 1  ;;  %v2290_v37 = vrot.slane %v2209_v29, 1  ;;  %v2363_v31 = vrot.slane %v7573_v1, 2  ;;  %v2365_v38 = vrot.slane %v2209_v29, 2 }
 0x211   : > { %v5730_v22 = vpack.i.bf16 %v7573_v1, %v7565_v24 }
 0x212   : > { %5721 = vrot.lane.b32.xlu0 %v5705_v35, %s6169_s19  ;;  %v2289_v44 = vsel %vm584_vm1, %v2287_v42, %v2288_v9  ;;  %v2291_v46 = vsel %vm584_vm1, %v2288_v9, %v2290_v37  ;;  %v7583_v15 = vsel %vm660_vm2, %v2362_v11, %v2363_v31  ;;  %v7586_v39 = vsel %vm660_vm2, %v2363_v31, %v2365_v38 }
 0x213   : > { %5726 = vrot.lane.b32.xlu1 %v5715_v52, %s6171_s11  ;;  %v5740_v30 = vpack.i.bf16 %v2291_v46, %v2289_v44  ;;  %v5750_v52 = vpack.i.bf16 %v7586_v39, %v7583_v15 }
 0x215   : > { %v1907_v10 = vpop.f32.mrb[36].mxu0 }
 0x216   : > { %v1980_v57 = vmax.f32 %v1907_v10, 0.0  ;;  %5731 = vrot.lane.b32.xlu0 %v5730_v22, %s6170_s21  ;;  %v1909_v25 = vpop.f32.mrb[37].mxu0 }
 0x217   : > { %5741 = vrot.lane.b32.xlu1 %v5740_v30, %s9150_s20  ;;  %v1910_v35 = vpop.f32.mrb[38].mxu0 }
 0x218   : > { %v2019_v2 = vrot.slane %v1980_v57, 1  ;;  %v2085_v32 = vrot.slane %v1980_v57, 7  ;;  %v1981_v40 = vmax.f32 %v1910_v35, 0.0  ;;  %v1912_v16 = vpop.f32.mrb[39].mxu0 }
 0x219   : > { %v7595_v19 = vpop.permute.xlu0 %5461 }
 0x21a   : > { %v7598_v8 = vsel %vm394_vm0, %v2019_v2, %v2085_v32  ;;  %v2086_v58 = vrot.slane %v1981_v40, 7  ;;  %v2162_v4 = vrot.slane %v1981_v40, 5  ;;  %5736 = vrot.lane.b32.xlu0 %v5730_v22, %s6168_s12 }
 0x21b   : > { %9154 = vst [vmem:[#allocation11_spill] sm:$0xff] %v7598_v8  ;;  %v7601_v56 = vpop.permute.xlu1 %5466  ;;  %5746 = vrot.lane.b32.xlu1 %v5740_v30, %s6172_s18  ;;  %v2367_v42 = vrot.slane %v7598_v8, 2  ;;  %v2292_v46 = vrot.slane %v7598_v8, 1 }
 0x21c   : > { %v7608_v11 = vsel %vm394_vm0, %v2085_v32, %v2086_v58  ;;  %v2210_v29 = vsel %vm394_vm0, %v2086_v58, %v2162_v4 }
 0x21d   : > { %9155 = vst [vmem:[#allocation12_spill] sm:$0xff] %v7608_v11  ;;  %v2293_v9 = vrot.slane %v7608_v11, 1  ;;  %v2295_v37 = vrot.slane %v2210_v29, 1  ;;  %v2368_v31 = vrot.slane %v7608_v11, 2  ;;  %v2370_v38 = vrot.slane %v2210_v29, 2  ;;  %v7613_v44 = vpop.permute.xlu0 %5471 }
 0x21e   : > { %5751 = vrot.lane.b32.xlu0 %v5750_v52, %s6173_s23  ;;  %v5765_v25 = vpack.i.bf16 %v7608_v11, %v7598_v8 }
 0x21f   : > { %5756 = vrot.lane.b32.xlu1 %v5740_v30, %s6169_s19  ;;  %v7619_v22 = vsel %vm660_vm2, %v2367_v42, %v2368_v31  ;;  %v7622_v10 = vsel %vm660_vm2, %v2368_v31, %v2370_v38  ;;  %v5477_v57 = vpop.permute.xlu1 %5476  ;;  %v2294_v35 = vsel %vm584_vm1, %v2292_v46, %v2293_v9  ;;  %v2296_v2 = vsel %vm584_vm1, %v2293_v9, %v2295_v37 }
 0x220   : > { %v5775_v16 = vpack.i.bf16 %v2296_v2, %v2294_v35  ;;  %v5478_v58 = vunpack.i.l.bf16 %v5477_v57  ;;  %v5464_v31 = vunpack.i.h.bf16 %v7595_v19  ;;  %v5463_v38 = vunpack.i.l.bf16 %v7595_v19 }
 0x221   : > { %v5482_v30 = vpop.permute.xlu0 %5481  ;;  %v5479_v37 = vunpack.i.h.bf16 %v5477_v57  ;;  %v5468_v46 = vunpack.i.l.bf16 %v7601_v56  ;;  %v5785_v19 = vpack.i.bf16 %v7622_v10, %v7619_v22 }
 0x222   : > { %5761 = vrot.lane.b32.xlu0 %v5750_v52, %s6171_s11  ;;  %v3089_v57 = vsel %vm1426_vm3, %v7309_v49, %v5478_v58  ;;  %v5484_v23 = vunpack.i.h.bf16 %v5482_v30 }
 0x223   : > { %5766 = vrot.lane.b32.xlu1 %v5765_v25, %s6170_s21 }
 0x224   : > { %v1915_v40 = vpop.f32.mrb[40].mxu0 }
 0x225   : > { %v1982_v4 = vmax.f32 %v1915_v40, 0.0  ;;  %v7632_v42 = vpop.permute.xlu1 %5486  ;;  %v1917_v29 = vpop.f32.mrb[41].mxu0 }
 0x226   : > { %5776 = vrot.lane.b32.xlu0 %v5775_v16, %s9150_s20  ;;  %v1918_v52 = vpop.f32.mrb[42].mxu0  ;;  %v5483_v29 = vunpack.i.l.bf16 %v5482_v30  ;;  %v5489_v40 = vunpack.i.h.bf16 %v7632_v42 }
 0x227   : > { %v2020_v32 = vrot.slane %v1982_v4, 1  ;;  %v2088_v63 = vrot.slane %v1982_v4, 7  ;;  %v1983_v35 = vmax.f32 %v1918_v52, 0.0  ;;  %5771 = vrot.lane.b32.xlu1 %v5765_v25, %s6168_s12  ;;  %v1920_v2 = vpop.f32.mrb[43].mxu0  ;;  %v5473_v4 = vunpack.i.l.bf16 %v7613_v44 }
 0x228   : > { %v5497_v33 = vpop.permute.xlu0 %5496  ;;  %v3090_v25 = vsel %vm1426_vm3, %v7317_v14, %v5479_v37  ;;  %v3119_v58 = vsel %vm1457_vm4, %v3089_v57, %v5483_v29 }
 0x229   : > { %v2089_v18 = vrot.slane %v1983_v35, 7  ;;  %v2163_v20 = vrot.slane %v1983_v35, 5  ;;  %v5492_v17 = vpop.permute.xlu1 %5491  ;;  %v7649_v52 = vsel %vm394_vm0, %v2020_v32, %v2088_v63  ;;  %v5499_v49 = vunpack.i.h.bf16 %v5497_v33 }
 0x22a   : > { %9156 = vst [vmem:[#allocation13_spill] sm:$0xff] %v7649_v52  ;;  %5781 = vrot.lane.b32.xlu0 %v5775_v16, %s6172_s18  ;;  %v5498_v30 = vunpack.i.l.bf16 %v5497_v33  ;;  %v3120_v37 = vsel %vm1457_vm4, %v3090_v25, %v5484_v23  ;;  %v2372_v33 = vrot.slane %v7649_v52, 2  ;;  %v5494_v9 = vunpack.i.h.bf16 %v5492_v17 }
 0x22b   : > { %v7653_v2 = vsel %vm394_vm0, %v2088_v63, %v2089_v18  ;;  %v7656_v47 = vsel %vm394_vm0, %v2089_v18, %v2163_v20  ;;  %5786 = vrot.lane.b32.xlu1 %v5785_v19, %s6173_s23  ;;  %v2297_v63 = vrot.slane %v7649_v52, 1  ;;  %v5488_v20 = vunpack.i.l.bf16 %v7632_v42 }
 0x22c   : > { %9157 = vst [vmem:[#allocation14_spill] sm:$0xff] %v7653_v2  ;;  %v2298_v35 = vrot.slane %v7653_v2, 1  ;;  %v2300_v14 = vrot.slane %v7656_v47, 1  ;;  %v7662_v32 = vpop.permute.xlu0 %5506  ;;  %v3088_v57 = vsel %vm1426_vm3, %v7350_v45, %v5499_v49  ;;  %v3087_v23 = vsel %vm1426_vm3, %v7345_v53, %v5498_v30 }
 0x22d   : > { %v5502_v18 = vpop.permute.xlu1 %5501  ;;  %v5493_v11 = vunpack.i.l.bf16 %v5492_v17  ;;  %v5800_v45 = vpack.i.bf16 %v7653_v2, %v7649_v52  ;;  %v2373_v49 = vrot.slane %v7653_v2, 2  ;;  %v9159_v2 = vunpack.i.h.bf16 %v7613_v44 }
 0x22e   : > { %v5504_v8 = vunpack.i.h.bf16 %v5502_v18  ;;  %v5503_v29 = vunpack.i.l.bf16 %v5502_v18  ;;  %5791 = vrot.lane.b32.xlu0 %v5775_v16, %s6169_s19  ;;  %v2299_v25 = vsel %vm584_vm1, %v2297_v63, %v2298_v35  ;;  %v2301_v42 = vsel %vm584_vm1, %v2298_v35, %v2300_v14 }
 0x22f   : > { %5796 = vrot.lane.b32.xlu1 %v5785_v19, %s6171_s11  ;;  %v7690_v35 = vpack.i.bf16 %v2301_v42, %v2299_v25  ;;  %v2375_v14 = vrot.slane %v7656_v47, 2 }
 0x230   : > { %v7678_v24 = vsel %vm1457_vm4, %v3087_v23, %v5503_v29  ;;  %v7681_v18 = vsel %vm1457_vm4, %v3088_v57, %v5504_v8  ;;  %v5512_v16 = vpop.permute.xlu0 %5511  ;;  %v3150_v8 = vsel %vm1488_vm5, %v3120_v37, %v5494_v9  ;;  %v3149_v9 = vsel %vm1488_vm5, %v3119_v58, %v5493_v11 }
 0x231   : > { %v3147_v53 = vsel %vm1488_vm5, %v7678_v24, %v5463_v38  ;;  %v3148_v19 = vsel %vm1488_vm5, %v7681_v18, %v5464_v31  ;;  %v5517_v30 = vpop.permute.xlu1 %5516  ;;  %v1923_v17 = vpop.f32.mrb[44].mxu0  ;;  %v5514_v23 = vunpack.i.h.bf16 %v5512_v16  ;;  %v5513_v52 = vunpack.i.l.bf16 %v5512_v16 }
 0x232   : > { %v1984_v63 = vmax.f32 %v1923_v17, 0.0  ;;  %5801 = vrot.lane.b32.xlu0 %v5800_v45, %s6170_s21  ;;  %v1925_v29 = vpop.f32.mrb[45].mxu0  ;;  %v3179_v57 = vsel %vm1521_vm6, %v3147_v53, %v5468_v46  ;;  %v9158_v38 = vunpack.i.h.bf16 %v7601_v56  ;;  %v5509_v37 = vunpack.i.h.bf16 %v7662_v32 }
 0x233   : > { %5811 = vrot.lane.b32.xlu1 %v7690_v35, %s9150_s20  ;;  %v1926_v31 = vpop.f32.mrb[46].mxu0  ;;  %v3211_v47 = vsel %vm1554_vm7, %v3179_v57, %v5473_v4  ;;  %v5508_v56 = vunpack.i.l.bf16 %v7662_v32  ;;  %v5519_v12 = vunpack.i.h.bf16 %v5517_v30  ;;  %v3182_v4 = vsel %vm1521_vm6, %v3150_v8, %v5514_v23 }
 0x234   : > { %v3180_v25 = vsel %vm1521_vm6, %v3148_v19, %v9158_v38  ;;  %v5522_v42 = vpop.permute.xlu0 %5521  ;;  %v1928_v17 = vpop.f32.mrb[47].mxu0  ;;  %v2021_v29 = vrot.slane %v1984_v63, 1  ;;  %v2091_v46 = vrot.slane %v1984_v63, 7  ;;  %v1985_v53 = vmax.f32 %v1926_v31, 0.0 }
 0x235   : > { %v5532_v16 = vpop.permute.xlu1 %5531  ;;  %v3212_v1 = vsel %vm1554_vm7, %v3180_v25, %v9159_v2  ;;  %v5518_v19 = vunpack.i.l.bf16 %v5517_v30  ;;  %v3243_v11 = vsel %vm1587_vm8, %v3211_v47, %v5488_v20  ;;  %v3181_v58 = vsel %vm1521_vm6, %v3149_v9, %v5513_v52 }
 0x236   : > { %5806 = vrot.lane.b32.xlu0 %v5800_v45, %s6168_s12  ;;  %v2092_v57 = vrot.slane %v1985_v53, 7  ;;  %v2164_v63 = vrot.slane %v1985_v53, 5  ;;  %v5524_v44 = vunpack.i.h.bf16 %v5522_v42  ;;  %v3244_v2 = vsel %vm1587_vm8, %v3212_v1, %v5489_v40 }
 0x237   : > { %5816 = vrot.lane.b32.xlu1 %v7690_v35, %s6172_s18  ;;  %v3275_v32 = vsel %vm1620_vm9, %v3243_v11, %v5508_v56  ;;  %v7717_v30 = vsel %vm660_vm2, %v2372_v33, %v2373_v49  ;;  %v7720_v20 = vsel %vm394_vm0, %v2021_v29, %v2091_v46  ;;  %v5523_v52 = vunpack.i.l.bf16 %v5522_v42 }
 0x238   : > { %v5527_v31 = vpop.permute.xlu0 %5526  ;;  %v7723_v45 = vsel %vm394_vm0, %v2091_v46, %v2092_v57  ;;  %v3276_v8 = vsel %vm1620_vm9, %v3244_v2, %v5509_v37  ;;  %v3213_v38 = vsel %vm1554_vm7, %v3181_v58, %v5518_v19  ;;  %v3214_v1 = vsel %vm1554_vm7, %v3182_v4, %v5519_v12 }
 0x239   : > { %v5537_v23 = vpop.permute.xlu1 %5536  ;;  %v5534_v40 = vunpack.i.h.bf16 %v5532_v16  ;;  %v5529_v25 = vunpack.i.h.bf16 %v5527_v31  ;;  %v7729_v47 = vsel %vm394_vm0, %v2092_v57, %v2164_v63  ;;  %v5533_v33 = vunpack.i.l.bf16 %v5532_v16 }
 0x23a   : > { %v3307_v9 = vpack.c.bf16 %v3276_v8, %v3275_v32  ;;  %v5528_v17 = vunpack.i.l.bf16 %v5527_v31  ;;  %v2302_v29 = vrot.slane %v7720_v20, 1  ;;  %v3246_v46 = vsel %vm1587_vm8, %v3214_v1, %v5524_v44 }
 0x23b   : > { %v7734_v42 = vsel %vm660_vm2, %v2373_v49, %v2375_v14  ;;  %v3245_v53 = vsel %vm1587_vm8, %v3213_v38, %v5523_v52  ;;  %v5539_v12 = vunpack.i.h.bf16 %v5537_v23  ;;  %v5538_v56 = vunpack.i.l.bf16 %v5537_v23  ;;  %5826 = vrot.lane.b32.xlu1 %v7690_v35, %s6169_s19 }
 0x23c   : > { %v5542_v37 = vpop.permute.xlu0 %5541  ;;  %3488 = vmatmul.mubr.bf16.vlgmr.msra.gmra.mrb[0].mxu1 %v3307_v9  ;;  %v5820_v19 = vpack.i.bf16 %v7734_v42, %v7717_v30  ;;  %v2303_v16 = vrot.slane %v7723_v45, 1  ;;  %v2305_v4 = vrot.slane %v7729_v47, 1  ;;  %v3152_v58 = vsel %vm1488_vm5, %v7681_v18, %v5529_v25 }
 0x23d   : > { %v5547_v11 = vpop.permute.xlu1 %5546  ;;  %v3151_v49 = vsel %vm1488_vm5, %v7678_v24, %v5528_v17  ;;  %v9160_v14 = vpack.c.bf16 %v7394_v13, %v7391_v41  ;;  %v2377_v57 = vrot.slane %v7720_v20, 2  ;;  %v5544_v63 = vunpack.i.h.bf16 %v5542_v37 }
 0x23e   : > { %5821 = vrot.lane.b32.xlu0 %v5820_v19, %s6173_s23  ;;  %v5543_v44 = vunpack.i.l.bf16 %v5542_v37  ;;  %v5549_v2 = vunpack.i.h.bf16 %v5547_v11  ;;  %v2378_v18 = vrot.slane %v7723_v45, 2  ;;  %v5835_v24 = vpack.i.bf16 %v7723_v45, %v7720_v20 }
 0x23f   : > { %4813 = vmatprep.mubr.msk.bf16.mxu1 %vm1426_vm3, %v9160_v14  ;;  %v3277_v41 = vsel %vm1620_vm9, %v3245_v53, %v5533_v33  ;;  %v3278_v13 = vsel %vm1620_vm9, %v3246_v46, %v5534_v40  ;;  %v2380_v35 = vrot.slane %v7729_v47, 2  ;;  %v3184_v52 = vsel %vm1521_vm6, %v3152_v58, %v5539_v12 }
 0x240   : > { %v5552_v32 = vpop.permute.xlu0 %5551  ;;  %v1931_v31 = vpop.f32.mrb[48].mxu0  ;;  %v3183_v8 = vsel %vm1521_vm6, %v3151_v49, %v5538_v56  ;;  %v5548_v1 = vunpack.i.l.bf16 %v5547_v11  ;;  %5836 = vrot.lane.b32.xlu1 %v5835_v24, %s6170_s21  ;;  %v2304_v9 = vsel %vm584_vm1, %v2302_v29, %v2303_v16  ;;  %v2306_v17 = vsel %vm584_vm1, %v2303_v16, %v2305_v4 }
 0x241   : > { %v5557_v23 = vpop.permute.xlu1 %5556  ;;  %v1933_v38 = vpop.f32.mrb[49].mxu0  ;;  %v1986_v25 = vmax.f32 %v1931_v31, 0.0  ;;  %v3215_v33 = vsel %vm1554_vm7, %v3183_v8, %v5543_v44  ;;  %v3216_v40 = vsel %vm1554_vm7, %v3184_v52, %v5544_v63  ;;  %v3092_v47 = vsel %vm1426_vm3, %v7381_v62, %v5549_v2 }
 0x242   : > { %v1934_v37 = vpop.f32.mrb[50].mxu0  ;;  %5831 = vrot.lane.b32.xlu0 %v5820_v19, %s6171_s11  ;;  %v3309_v46 = vpack.c.bf16 %v3278_v13, %v3277_v41  ;;  %v5554_v12 = vunpack.i.h.bf16 %v5552_v32  ;;  %v5558_v56 = vunpack.i.l.bf16 %v5557_v23  ;;  %v5553_v49 = vunpack.i.l.bf16 %v5552_v32 }
 0x243   : > { %v1936_v53 = vpop.f32.mrb[51].mxu0  ;;  %v1987_v11 = vmax.f32 %v1934_v37, 0.0  ;;  %v5559_v29 = vunpack.i.h.bf16 %v5557_v23  ;;  %v5845_v16 = vpack.i.bf16 %v2306_v17, %v2304_v9  ;;  %v2022_v44 = vrot.slane %v1986_v25, 1 }
 0x244   : > { %v5567_v58 = vpop.permute.xlu0 %5566  ;;  %3496 = vmatmul.mubr.bf16.gmra.mrb[4].mxu1 %v3309_v46  ;;  %v2094_v31 = vrot.slane %v1986_v25, 7  ;;  %v9161_v63 = vpack.c.bf16 %v7424_v34, %v7421_v48  ;;  %5841 = vrot.lane.b32.xlu1 %v5835_v24, %s6168_s12  ;;  %v7776_v41 = vsel %vm660_vm2, %v2377_v57, %v2378_v18  ;;  %v7779_v13 = vsel %vm660_vm2, %v2378_v18, %v2380_v35 }
 0x245   : > { %v5568_v4 = vunpack.i.l.bf16 %v5567_v58  ;;  %v5562_v14 = vpop.permute.xlu1 %5561  ;;  %v2095_v62 = vrot.slane %v1987_v11, 7  ;;  %v2165_v19 = vrot.slane %v1987_v11, 5  ;;  %v5569_v2 = vunpack.i.h.bf16 %v5567_v58 }
 0x246   : > { %4814 = vmatprep.mubr.msk.bf16.mxu1 %vm1426_vm3, %v9161_v63  ;;  %5846 = vrot.lane.b32.xlu0 %v5845_v16, %s9150_s20  ;;  %v5563_v32 = vunpack.i.l.bf16 %v5562_v14  ;;  %v3091_v52 = vsel %vm1426_vm3, %v7375_v61, %v5548_v1  ;;  %v3247_v48 = vsel %vm1587_vm8, %v3215_v33, %v5558_v56  ;;  %v5855_v24 = vpack.i.bf16 %v7779_v13, %v7776_v41 }
 0x247   : > { %v7785_v34 = vsel %vm394_vm0, %v2094_v31, %v2095_v62  ;;  %v3121_v23 = vsel %vm1457_vm4, %v3091_v52, %v5553_v49  ;;  %v3122_v57 = vsel %vm1457_vm4, %v3092_v47, %v5554_v12  ;;  %v3279_v18 = vsel %vm1620_vm9, %v3247_v48, %v5568_v4 }
 0x248   : > { %v5572_v8 = vpop.permute.xlu0 %5571  ;;  %v7793_v35 = vsel %vm394_vm0, %v2022_v44, %v2094_v31  ;;  %v3248_v61 = vsel %vm1587_vm8, %v3216_v40, %v5559_v29  ;;  %v7797_v1 = vsel %vm394_vm0, %v2095_v62, %v2165_v19  ;;  %5856 = vrot.lane.b32.xlu1 %v5855_v24, %s6173_s23  ;;  %v2308_v9 = vrot.slane %v7785_v34, 1 }
 0x249   : > { %v5577_v38 = vpop.permute.xlu1 %5576  ;;  %v5573_v25 = vunpack.i.l.bf16 %v5572_v8  ;;  %v5564_v17 = vunpack.i.h.bf16 %v5562_v14  ;;  %v3153_v37 = vsel %vm1488_vm5, %v3121_v23, %v5563_v32  ;;  %v3280_v33 = vsel %vm1620_vm9, %v3248_v61, %v5569_v2 }
 0x24a   : > { %5851 = vrot.lane.b32.xlu0 %v5845_v16, %s6172_s18  ;;  %v5574_v47 = vunpack.i.h.bf16 %v5572_v8  ;;  %v5578_v46 = vunpack.i.l.bf16 %v5577_v38  ;;  %v3311_v53 = vpack.c.bf16 %v3280_v33, %v3279_v18  ;;  %v2307_v40 = vrot.slane %v7793_v35, 1 }
 0x24b   : > { %v2310_v56 = vrot.slane %v7797_v1, 1  ;;  %v3185_v11 = vsel %vm1521_vm6, %v3153_v37, %v5573_v25  ;;  %v2382_v29 = vrot.slane %v7793_v35, 2  ;;  %v2383_v4 = vrot.slane %v7785_v34, 2 }
 0x24c   : > { %v5582_v12 = vpop.permute.xlu0 %5581  ;;  %v2385_v14 = vrot.slane %v7797_v1, 2  ;;  %3504 = vmatmul.mubr.bf16.gmra.mrb[8].mxu1 %v3311_v53  ;;  %5866 = vrot.lane.b32.xlu1 %v5855_v24, %s6171_s11  ;;  %v3154_v63 = vsel %vm1488_vm5, %v3122_v57, %v5564_v17  ;;  %v5579_v62 = vunpack.i.h.bf16 %v5577_v38  ;;  %v9162_v19 = vpack.c.bf16 %v7458_v60, %v7455_v54 }
 0x24d   : > { %v5587_v58 = vpop.permute.xlu1 %5586  ;;  %v1939_v49 = vpop.f32.mrb[52].mxu0  ;;  %v5583_v44 = vunpack.i.l.bf16 %v5582_v12  ;;  %v2309_v32 = vsel %vm584_vm1, %v2307_v40, %v2308_v9  ;;  %v3186_v48 = vsel %vm1521_vm6, %v3154_v63, %v5574_v47  ;;  %v3217_v24 = vsel %vm1554_vm7, %v3185_v11, %v5578_v46 }
 0x24e   : > { %v1941_v31 = vpop.f32.mrb[53].mxu0  ;;  %5861 = vrot.lane.b32.xlu0 %v5845_v16, %s6169_s19  ;;  %4815 = vmatprep.mubr.msk.bf16.mxu1 %vm1426_vm3, %v9162_v19  ;;  %v1988_v2 = vmax.f32 %v1939_v49, 0.0  ;;  %v5584_v8 = vunpack.i.h.bf16 %v5582_v12  ;;  %v5870_v23 = vpack.i.bf16 %v7785_v34, %v7793_v35  ;;  %v2311_v16 = vsel %vm584_vm1, %v2308_v9, %v2310_v56 }
 0x24f   : > { %v1942_v52 = vpop.f32.mrb[54].mxu0  ;;  %v3093_v1 = vsel %vm1426_vm3, %v7404_v36, %v5583_v44  ;;  %v5589_v25 = vunpack.i.h.bf16 %v5587_v58  ;;  %v5588_v17 = vunpack.i.l.bf16 %v5587_v58  ;;  %v5880_v37 = vpack.i.bf16 %v2311_v16, %v2309_v32 }
 0x250   : > { %v5592_v57 = vpop.permute.xlu0 %5591  ;;  %v1944_v38 = vpop.f32.mrb[55].mxu0  ;;  %v1989_v18 = vmax.f32 %v1942_v52, 0.0  ;;  %v2023_v33 = vrot.slane %v1988_v2, 1  ;;  %v2097_v47 = vrot.slane %v1988_v2, 7  ;;  %v3218_v12 = vsel %vm1554_vm7, %v3186_v48, %v5579_v62 }
 0x251   : > { %v5594_v54 = vunpack.i.h.bf16 %v5592_v57  ;;  %v5593_v60 = vunpack.i.l.bf16 %v5592_v57  ;;  %v5602_v61 = vpop.permute.xlu1 %5601  ;;  %v3094_v9 = vsel %vm1426_vm3, %v7412_v27, %v5584_v8  ;;  %5881 = vrot.lane.b32.xlu1 %v5880_v37, %s9150_s20  ;;  %v3123_v31 = vsel %vm1457_vm4, %v3093_v1, %v5588_v17 }
 0x252   : > { %5871 = vrot.lane.b32.xlu0 %v5870_v23, %s6170_s21  ;;  %v2098_v46 = vrot.slane %v1989_v18, 7  ;;  %v2166_v53 = vrot.slane %v1989_v18, 5  ;;  %v5604_v40 = vunpack.i.h.bf16 %v5602_v61  ;;  %v5603_v56 = vunpack.i.l.bf16 %v5602_v61 }
 0x253   : > { %v3250_v58 = vsel %vm1587_vm8, %v3218_v12, %v5594_v54  ;;  %v3249_v49 = vsel %vm1587_vm8, %v3217_v24, %v5593_v60  ;;  %v3124_v19 = vsel %vm1457_vm4, %v3094_v9, %v5589_v25  ;;  %v7838_v27 = vsel %vm394_vm0, %v2023_v33, %v2097_v47 }
 0x254   : > { %v5597_v11 = vpop.permute.xlu0 %5596  ;;  %v7831_v36 = vsel %vm394_vm0, %v2097_v47, %v2098_v46  ;;  %v7841_v2 = vsel %vm394_vm0, %v2098_v46, %v2166_v53  ;;  %v7847_v52 = vsel %vm660_vm2, %v2382_v29, %v2383_v4  ;;  %v7850_v48 = vsel %vm660_vm2, %v2383_v4, %v2385_v14 }
 0x255   : > { %v5607_v44 = vpop.permute.xlu1 %5606  ;;  %v5599_v63 = vunpack.i.h.bf16 %v5597_v11  ;;  %v5598_v62 = vunpack.i.l.bf16 %v5597_v11  ;;  %v2313_v32 = vrot.slane %v7831_v36, 1  ;;  %5886 = vrot.lane.b32.xlu1 %v5880_v37, %s6172_s18  ;;  %v3281_v24 = vsel %vm1620_vm9, %v3249_v49, %v5603_v56 }
 0x256   : > { %5876 = vrot.lane.b32.xlu0 %v5870_v23, %s6168_s12  ;;  %v3282_v8 = vsel %vm1620_vm9, %v3250_v58, %v5604_v40  ;;  %v5609_v38 = vunpack.i.h.bf16 %v5607_v44  ;;  %v5608_v16 = vunpack.i.l.bf16 %v5607_v44  ;;  %v5890_v18 = vpack.i.bf16 %v7850_v48, %v7847_v52 }
 0x257   : > { %v3313_v54 = vpack.c.bf16 %v3282_v8, %v3281_v24  ;;  %v2315_v60 = vrot.slane %v7841_v2, 1  ;;  %v3156_v29 = vsel %vm1488_vm5, %v3124_v19, %v5599_v63  ;;  %v3155_v61 = vsel %vm1488_vm5, %v3123_v31, %v5598_v62 }
 0x258   : > { %v5612_v57 = vpop.permute.xlu0 %5611  ;;  %v2312_v4 = vrot.slane %v7838_v27, 1  ;;  %v2387_v14 = vrot.slane %v7838_v27, 2  ;;  %v2388_v17 = vrot.slane %v7831_v36, 2  ;;  %v2390_v33 = vrot.slane %v7841_v2, 2 }
 0x259   : > { %v5617_v23 = vpop.permute.xlu1 %5616  ;;  %3512 = vmatmul.mubr.bf16.gmra.mrb[12].mxu1 %v3313_v54  ;;  %v5614_v1 = vunpack.i.h.bf16 %v5612_v57  ;;  %v5613_v25 = vunpack.i.l.bf16 %v5612_v57  ;;  %5896 = vrot.lane.b32.xlu1 %v5880_v37, %s6169_s19  ;;  %v9163_v47 = vpack.c.bf16 %v7488_v21, %v7485_v59  ;;  %v3188_v40 = vsel %vm1521_vm6, %v3156_v29, %v5609_v38 }
 0x25a   : > { %5891 = vrot.lane.b32.xlu0 %v5890_v18, %s6173_s23  ;;  %v5619_v46 = vunpack.i.h.bf16 %v5617_v23  ;;  %v5618_v53 = vunpack.i.l.bf16 %v5617_v23  ;;  %v3187_v56 = vsel %vm1521_vm6, %v3155_v61, %v5608_v16  ;;  %v5905_v44 = vpack.i.bf16 %v7831_v36, %v7838_v27 }
 0x25b   : > { %4816 = vmatprep.mubr.msk.bf16.mxu1 %vm1426_vm3, %v9163_v47  ;;  %v2314_v31 = vsel %vm584_vm1, %v2312_v4, %v2313_v32  ;;  %v2316_v59 = vsel %vm584_vm1, %v2313_v32, %v2315_v60  ;;  %v3219_v63 = vsel %vm1554_vm7, %v3187_v56, %v5613_v25  ;;  %v3220_v62 = vsel %vm1554_vm7, %v3188_v40, %v5614_v1 }
 0x25c   : > { %v5622_v12 = vpop.permute.xlu0 %5621  ;;  %v1947_v9 = vpop.f32.mrb[56].mxu0  ;;  %v3096_v8 = vsel %vm1426_vm3, %v7445_v6, %v5619_v46  ;;  %v3095_v57 = vsel %vm1426_vm3, %v7437_v50, %v5618_v53  ;;  %v5915_v60 = vpack.i.bf16 %v2316_v59, %v2314_v31  ;;  %v7889_v6 = vsel %vm660_vm2, %v2387_v14, %v2388_v17 }
 0x25d   : > { %v1990_v11 = vmax.f32 %v1947_v9, 0.0  ;;  %v5627_v58 = vpop.permute.xlu1 %5626  ;;  %v1949_v49 = vpop.f32.mrb[57].mxu0  ;;  %5906 = vrot.lane.b32.xlu1 %v5905_v44, %s6170_s21  ;;  %v5624_v38 = vunpack.i.h.bf16 %v5622_v12  ;;  %v5623_v54 = vunpack.i.l.bf16 %v5622_v12  ;;  %v7892_v47 = vsel %vm660_vm2, %v2388_v17, %v2390_v33 }
 0x25e   : > { %v5628_v37 = vunpack.i.l.bf16 %v5627_v58  ;;  %v1950_v21 = vpop.f32.mrb[58].mxu0  ;;  %5901 = vrot.lane.b32.xlu0 %v5890_v18, %s6171_s11  ;;  %v5629_v23 = vunpack.i.h.bf16 %v5627_v58 }
 0x25f   : > { %v2024_v19 = vrot.slane %v1990_v11, 1  ;;  %v2100_v2 = vrot.slane %v1990_v11, 7  ;;  %v1952_v24 = vpop.f32.mrb[59].mxu0  ;;  %v1991_v32 = vmax.f32 %v1950_v21, 0.0  ;;  %v3125_v56 = vsel %vm1457_vm4, %v3095_v57, %v5623_v54 }
 0x260   : > { %v5637_v16 = vpop.permute.xlu0 %5636  ;;  %v3251_v18 = vsel %vm1587_vm8, %v3219_v63, %v5628_v37  ;;  %v3126_v11 = vsel %vm1457_vm4, %v3096_v8, %v5624_v38  ;;  %v3252_v49 = vsel %vm1587_vm8, %v3220_v62, %v5629_v23  ;;  %v5925_v37 = vpack.i.bf16 %v7892_v47, %v7889_v6 }
 0x261   : > { %v5638_v29 = vunpack.i.l.bf16 %v5637_v16  ;;  %v5632_v61 = vpop.permute.xlu1 %5631  ;;  %v2101_v4 = vrot.slane %v1991_v32, 7  ;;  %v2167_v1 = vrot.slane %v1991_v32, 5  ;;  %v7885_v25 = vsel %vm394_vm0, %v2024_v19, %v2100_v2  ;;  %5911 = vrot.lane.b32.xlu1 %v5905_v44, %s6168_s12 }
 0x262   : > { %5916 = vrot.lane.b32.xlu0 %v5915_v60, %s9150_s20  ;;  %v5639_v50 = vunpack.i.h.bf16 %v5637_v16  ;;  %v5634_v12 = vunpack.i.h.bf16 %v5632_v61  ;;  %v5633_v9 = vunpack.i.l.bf16 %v5632_v61  ;;  %v2317_v17 = vrot.slane %v7885_v25, 1 }
 0x263   : > { %v7895_v46 = vsel %vm394_vm0, %v2100_v2, %v2101_v4  ;;  %v7898_v53 = vsel %vm394_vm0, %v2101_v4, %v2167_v1  ;;  %v3283_v58 = vsel %vm1620_vm9, %v3251_v18, %v5638_v29  ;;  %v2392_v33 = vrot.slane %v7885_v25, 2 }
 0x264   : > { %v5642_v40 = vpop.permute.xlu0 %5641  ;;  %v2318_v44 = vrot.slane %v7895_v46, 1  ;;  %v2320_v31 = vrot.slane %v7898_v53, 1  ;;  %v3284_v21 = vsel %vm1620_vm9, %v3252_v49, %v5639_v50  ;;  %v3158_v19 = vsel %vm1488_vm5, %v3126_v11, %v5634_v12 }
 0x265   : > { %v5647_v14 = vpop.permute.xlu1 %5646  ;;  %v5644_v59 = vunpack.i.h.bf16 %v5642_v40  ;;  %v3157_v2 = vsel %vm1488_vm5, %v3125_v56, %v5633_v9  ;;  %5926 = vrot.lane.b32.xlu1 %v5925_v37, %s6173_s23  ;;  %v5643_v62 = vunpack.i.l.bf16 %v5642_v40  ;;  %v3315_v24 = vpack.c.bf16 %v3284_v21, %v3283_v58 }
 0x266   : > { %5921 = vrot.lane.b32.xlu0 %v5915_v60, %s6172_s18  ;;  %v5649_v38 = vunpack.i.h.bf16 %v5647_v14  ;;  %v5648_v29 = vunpack.i.l.bf16 %v5647_v14  ;;  %v9164_v50 = vpack.c.bf16 %v7522_v7, %v7519_v28  ;;  %v2319_v28 = vsel %vm584_vm1, %v2317_v17, %v2318_v44 }
 0x267   : > { %v1955_v63 = vpop.f32.mrb[60].mxu0  ;;  %3520 = vmatmul.mubr.bf16.gmra.mrb[16].mxu1 %v3315_v24  ;;  %v3190_v1 = vsel %vm1521_vm6, %v3158_v19, %v5644_v59  ;;  %v3189_v56 = vsel %vm1521_vm6, %v3157_v2, %v5643_v62  ;;  %v2321_v7 = vsel %vm584_vm1, %v2318_v44, %v2320_v31  ;;  %v2395_v19 = vrot.slane %v7898_v53, 2 }
 0x268   : > { %v5652_v8 = vpop.permute.xlu0 %5651  ;;  %v1957_v57 = vpop.f32.mrb[61].mxu0  ;;  %v1992_v32 = vmax.f32 %v1955_v63, 0.0  ;;  %4817 = vmatprep.mubr.msk.bf16.mxu1 %vm1426_vm3, %v9164_v50  ;;  %v2393_v63 = vrot.slane %v7895_v46, 2  ;;  %v3221_v2 = vsel %vm1554_vm7, %v3189_v56, %v5648_v29  ;;  %v3222_v62 = vsel %vm1554_vm7, %v3190_v1, %v5649_v38 }
 0x269   : > { %v5654_v16 = vunpack.i.h.bf16 %v5652_v8  ;;  %v5657_v54 = vpop.permute.xlu1 %5656  ;;  %v1958_v23 = vpop.f32.mrb[62].mxu0  ;;  %v5653_v61 = vunpack.i.l.bf16 %v5652_v8  ;;  %5936 = vrot.lane.b32.xlu1 %v5925_v37, %s6171_s11  ;;  %v5950_v31 = vpack.i.bf16 %v2321_v7, %v2319_v28 }
 0x26a   : > { %v1993_v18 = vmax.f32 %v1958_v23, 0.0  ;;  %v1960_v4 = vpop.f32.mrb[63].mxu0  ;;  %5931 = vrot.lane.b32.xlu0 %v5915_v60, %s6169_s19  ;;  %v2025_v12 = vrot.slane %v1992_v32, 1  ;;  %v2103_v9 = vrot.slane %v1992_v32, 7  ;;  %v5659_v40 = vunpack.i.h.bf16 %v5657_v54 }
 0x26b   : > { %v3098_v11 = vsel %vm1426_vm3, %v7476_v51, %v5654_v16  ;;  %v5658_v59 = vunpack.i.l.bf16 %v5657_v54  ;;  %v5940_v60 = vpack.i.bf16 %v7895_v46, %v7885_v25  ;;  %v3097_v37 = vsel %vm1426_vm3, %v7468_v26, %v5653_v61 }
 0x26c   : > { %v2104_v14 = vrot.slane %v1993_v18, 7  ;;  %v2168_v58 = vrot.slane %v1993_v18, 5  ;;  %v5662_v49 = vpop.permute.xlu0 %5661  ;;  %v2200_v24 = vsel %vm394_vm0, %v2025_v12, %v2103_v9  ;;  %v3128_v17 = vsel %vm1457_vm4, %v3098_v11, %v5659_v40 }
 0x26d   : > { %v5672_v21 = vpop.permute.xlu1 %5671  ;;  %v5664_v8 = vunpack.i.h.bf16 %v5662_v49  ;;  %v5663_v53 = vunpack.i.l.bf16 %v5662_v49  ;;  %v3127_v26 = vsel %vm1457_vm4, %v3097_v37, %v5658_v59  ;;  %v2399_v23 = vrot.slane %v2200_v24, 1  ;;  %5951 = vrot.lane.b32.xlu1 %v5950_v31, %s9150_s20 }
 0x26e   : > { %v2105_v51 = vsel %vm394_vm0, %v2103_v9, %v2104_v14  ;;  %5941 = vrot.lane.b32.xlu0 %v5940_v60, %s6170_s21  ;;  %v2216_v44 = vsel %vm394_vm0, %v2104_v14, %v2168_v58  ;;  %v5674_v32 = vunpack.i.h.bf16 %v5672_v21  ;;  %v5673_v16 = vunpack.i.l.bf16 %v5672_v21 }
 0x26f   : > { %v3254_v38 = vsel %vm1587_vm8, %v3222_v62, %v5664_v8  ;;  %v3253_v29 = vsel %vm1587_vm8, %v3221_v2, %v5663_v53  ;;  %v2400_v18 = vrot.slane %v2105_v51, 1  ;;  %v2402_v4 = vrot.slane %v2216_v44, 1 }
 0x270   : > { %v5667_v57 = vpop.permute.xlu0 %5666  ;;  %v2394_v1 = vsel %vm660_vm2, %v2392_v33, %v2393_v63  ;;  %v2396_v50 = vsel %vm660_vm2, %v2393_v63, %v2395_v19  ;;  %v2404_v12 = vrot.slane %v2200_v24, 2  ;;  %v3285_v40 = vsel %vm1620_vm9, %v3253_v29, %v5673_v16 }
 0x271   : > { %v5677_v54 = vpop.permute.xlu1 %5676  ;;  %v5669_v61 = vunpack.i.h.bf16 %v5667_v57  ;;  %v5668_v9 = vunpack.i.l.bf16 %v5667_v57  ;;  %v2405_v11 = vrot.slane %v2105_v51, 2  ;;  %v5960_v58 = vpack.i.bf16 %v2396_v50, %v2394_v1  ;;  %5956 = vrot.lane.b32.xlu1 %v5950_v31, %s6172_s18 }
 0x272   : > { %5946 = vrot.lane.b32.xlu0 %v5940_v60, %s6168_s12  ;;  %v5679_v14 = vunpack.i.h.bf16 %v5677_v54  ;;  %v3286_v49 = vsel %vm1620_vm9, %v3254_v38, %v5674_v32  ;;  %v2407_v28 = vrot.slane %v2216_v44, 2  ;;  %v5678_v33 = vunpack.i.l.bf16 %v5677_v54 }
 0x273   : > { %v3160_v60 = vsel %vm1488_vm5, %v3128_v17, %v5669_v61  ;;  %v3317_v7 = vpack.c.bf16 %v3286_v49, %v3285_v40  ;;  %v2401_v63 = vsel %vm584_vm1, %v2399_v23, %v2400_v18  ;;  %v2403_v19 = vsel %vm584_vm1, %v2400_v18, %v2402_v4 }
 0x274   : > { %v5682_v56 = vpop.permute.xlu0 %5681  ;;  %v5970_v37 = vpack.i.bf16 %v2105_v51, %v2200_v24  ;;  %v3159_v2 = vsel %vm1488_vm5, %v3127_v26, %v5668_v9  ;;  %v5975_v8 = vpack.i.bf16 %v2403_v19, %v2401_v63  ;;  %v3192_v53 = vsel %vm1521_vm6, %v3160_v60, %v5679_v14 }
 0x275   : > { %v7952_v59 = vpop.permute.xlu1 %5686  ;;  %v5684_v21 = vunpack.i.h.bf16 %v5682_v56  ;;  %3528 = vmatmul.mubr.bf16.gmra.mrb[20].mxu1 %v3317_v7  ;;  %v5683_v62 = vunpack.i.l.bf16 %v5682_v56  ;;  %v9165_v17 = vpack.c.bf16 %v7552_v3, %v7549_v5  ;;  %5966 = vrot.lane.b32.xlu1 %v5950_v31, %s6169_s19  ;;  %v7967_v51 = vsel %vm660_vm2, %v2404_v12, %v2405_v11 }
 0x276   : > { %5961 = vrot.lane.b32.xlu0 %v5960_v58, %s6173_s23  ;;  %v3191_v24 = vsel %vm1521_vm6, %v3159_v2, %v5678_v33  ;;  %v7973_v54 = vsel %vm660_vm2, %v2405_v11, %v2407_v28  ;;  %v3326_v5 = vpack.c.bf16 %v7734_v42, %v7717_v30  ;;  %v3328_v38 = vpack.c.bf16 %v7779_v13, %v7776_v41 }
 0x277   : > { %4818 = vmatprep.mubr.msk.bf16.mxu1 %vm1426_vm3, %v9165_v17  ;;  %v3224_v26 = vsel %vm1554_vm7, %v3192_v53, %v5684_v21  ;;  %v3223_v3 = vsel %vm1554_vm7, %v3191_v24, %v5683_v62  ;;  %v5995_v23 = vpack.i.bf16 %v7973_v54, %v7967_v51  ;;  %v3330_v4 = vpack.c.bf16 %v7850_v48, %v7847_v52 }
 0x278   : > { %v5692_v44 = vpop.permute.xlu0 %5691  ;;  %v3332_v12 = vpack.c.bf16 %v7892_v47, %v7889_v6  ;;  %v7989_v56 = vpack.c.bf16 %v2396_v50, %v2394_v1  ;;  %v3336_v11 = vpack.c.bf16 %v7973_v54, %v7967_v51  ;;  %v5689_v28 = vunpack.i.h.bf16 %v7952_v59 }
 0x279   : > { %v5697_v57 = vpop.permute.xlu1 %5696  ;;  %5971 = vrot.lane.b32.xlu1 %v5970_v37, %s6170_s21  ;;  %v5688_v60 = vunpack.i.l.bf16 %v7952_v59  ;;  %v5694_v21 = vunpack.i.h.bf16 %v5692_v44  ;;  %v5693_v63 = vunpack.i.l.bf16 %v5692_v44  ;;  %v9166_v62 = vpack.c.bf16 %v7586_v39, %v7583_v15  ;;  %s9209_s21 = sshll.u32 %s6325_s16, 8 }
 0x27a   : > { %v5699_v32 = vunpack.i.h.bf16 %v5697_v57  ;;  %v5698_v16 = vunpack.i.l.bf16 %v5697_v57  ;;  %5976 = vrot.lane.b32.xlu0 %v5975_v8, %s9150_s20  ;;  %v3100_v59 = vsel %vm1426_vm3, %v7509_v0, %v5689_v28  ;;  %s6102_s20 = scalar_lea.vmem %s6101_s9, 8192 }
 0x27b   : > { %v3099_v44 = vsel %vm1426_vm3, %v7501_v55, %v5688_v60  ;;  %v3130_v17 = vsel %vm1457_vm4, %v3100_v59, %v5694_v21 }
 0x27c   : > { %v5707_v31 = vpop.permute.xlu0 %5706  ;;  %v3256_v9 = vsel %vm1587_vm8, %v3224_v26, %v5699_v32  ;;  %v3255_v40 = vsel %vm1587_vm8, %v3223_v3, %v5698_v16 }
 0x27d   : > { %v5709_v29 = vunpack.i.h.bf16 %v5707_v31  ;;  %v5708_v61 = vunpack.i.l.bf16 %v5707_v31  ;;  %v5702_v18 = vpop.permute.xlu1 %5701  ;;  %5986 = vrot.lane.b32.xlu1 %v5970_v37, %s6168_s12  ;;  %v3129_v37 = vsel %vm1457_vm4, %v3099_v44, %v5693_v63 }
 0x27e   : > { %5981 = vrot.lane.b32.xlu0 %v5960_v58, %s6171_s11  ;;  %v5704_v1 = vunpack.i.h.bf16 %v5702_v18  ;;  %v5703_v50 = vunpack.i.l.bf16 %v5702_v18  ;;  %s8927_s11 = scalar_lea.vmem [#allocation5], %s9209_s21 }
 0x27f   : > { %v3287_v14 = vsel %vm1620_vm9, %v3255_v40, %v5708_v61  ;;  %v3288_v49 = vsel %vm1620_vm9, %v3256_v9, %v5709_v29 }
 0x280   : > { %v5712_v33 = vpop.permute.xlu0 %5711  ;;  %v3319_v7 = vpack.c.bf16 %v3288_v49, %v3287_v14  ;;  %v3161_v32 = vsel %vm1488_vm5, %v3129_v37, %v5703_v50 }
 0x281   : > { %v5717_v19 = vpop.permute.xlu1 %5716  ;;  %v5714_v58 = vunpack.i.h.bf16 %v5712_v33  ;;  %v5713_v2 = vunpack.i.l.bf16 %v5712_v33  ;;  %5996 = vrot.lane.b32.xlu1 %v5995_v23, %s6173_s23  ;;  %s4696_s23 = sshll.u32 %s8927_s11, 4  ;;  %s9005_s23 = int_to_ptr.vmem [resolvable:$true] %s4696_s23 }
 0x282   : > { %3536 = vmatmul.mubr.bf16.gmra.mrb[24].mxu1 %v3319_v7  ;;  %5991 = vrot.lane.b32.xlu0 %v5975_v8, %s6172_s18  ;;  %v3162_v8 = vsel %vm1488_vm5, %v3130_v17, %v5704_v1  ;;  %v5719_v15 = vunpack.i.h.bf16 %v5717_v19  ;;  %v5718_v39 = vunpack.i.l.bf16 %v5717_v19  ;;  %v9167_v1 = vpack.c.bf16 %v7622_v10, %v7619_v22  ;;  %s4838_s18 = sshll.u32 %s6242_s28, 12  ;;  %s4683_s28 = scalar_lea.sflag [#allocation4], %s6325_s16 }
 0x283   : > { %4819 = vmatprep.mubr.msk.bf16.mxu1 %vm1426_vm3, %v9166_v62  ;;  %v3194_v16 = vsel %vm1521_vm6, %v3162_v8, %v5714_v58  ;;  %v3193_v0 = vsel %vm1521_vm6, %v3161_v32, %v5713_v2  ;;  %v9168_v58 = vld [vmem:[#allocation8_spill] sm:$0xff]  ;;  %s9001_s8 = scalar_lea.hbm %s9088_s7, %s4838_s18  ;;  %p6103_p8 = scmp.lt.s32.totalorder %s9005_s23, %s6101_s9 }
 0x284   : > { %v5722_v53 = vpop.permute.xlu0 %5721  ;;  %v3225_v31 = vsel %vm1554_vm7, %v3193_v0, %v5718_v39  ;;  %v3226_v29 = vsel %vm1554_vm7, %v3194_v16, %v5719_v15 }
 0x285   : > { %v5727_v57 = vpop.permute.xlu1 %5726  ;;  %v5724_v28 = vunpack.i.h.bf16 %v5722_v53  ;;  %v5723_v60 = vunpack.i.l.bf16 %v5722_v53 }
 0x286   : > { %v5729_v21 = vunpack.i.h.bf16 %v5727_v57  ;;  %v5728_v63 = vunpack.i.l.bf16 %v5727_v57 }
 0x287   : > { %v3102_v50 = vsel %vm1426_vm3, %v7540_v43, %v5724_v28  ;;  %v3101_v2 = vsel %vm1426_vm3, %v9168_v58, %v5723_v60  ;;  %v9169_v58 = vld [vmem:[#allocation10_spill] sm:$0xff] }
 0x288   : > { %v5732_v24 = vpop.permute.xlu0 %5731  ;;  %v3131_v53 = vsel %vm1457_vm4, %v3101_v2, %v5728_v63  ;;  %v3132_v37 = vsel %vm1457_vm4, %v3102_v50, %v5729_v21 }
 0x289   : > { %v5734_v55 = vunpack.i.h.bf16 %v5732_v24  ;;  %v5733_v26 = vunpack.i.l.bf16 %v5732_v24  ;;  %v5742_v3 = vpop.permute.xlu1 %5741 }
 0x28a   : > { %v5744_v61 = vunpack.i.h.bf16 %v5742_v3  ;;  %v5743_v18 = vunpack.i.l.bf16 %v5742_v3 }
 0x28b   : > { %v3258_v9 = vsel %vm1587_vm8, %v3226_v29, %v5734_v55  ;;  %v3257_v23 = vsel %vm1587_vm8, %v3225_v31, %v5733_v26 }
 0x28c   : > { %v5737_v40 = vpop.permute.xlu0 %5736  ;;  %v3289_v14 = vsel %vm1620_vm9, %v3257_v23, %v5743_v18  ;;  %v3290_v49 = vsel %vm1620_vm9, %v3258_v9, %v5744_v61 }
 0x28d   : > { %v5747_v33 = vpop.permute.xlu1 %5746  ;;  %v3321_v7 = vpack.c.bf16 %v3290_v49, %v3289_v14  ;;  %v5739_v62 = vunpack.i.h.bf16 %v5737_v40  ;;  %v5738_v59 = vunpack.i.l.bf16 %v5737_v40 }
 0x28e   : > { %v5749_v17 = vunpack.i.h.bf16 %v5747_v33  ;;  %v5748_v57 = vunpack.i.l.bf16 %v5747_v33 }
 0x28f   : > { %3544 = vmatmul.mubr.bf16.gmra.mrb[28].mxu1 %v3321_v7  ;;  %v3164_v22 = vsel %vm1488_vm5, %v3132_v37, %v5739_v62  ;;  %v3163_v10 = vsel %vm1488_vm5, %v3131_v53, %v5738_v59  ;;  %v9170_v62 = vld [vmem:[#allocation9_spill] sm:$0xff] }
 0x290   : > { %v5752_v19 = vpop.permute.xlu0 %5751  ;;  %4820 = vmatprep.mubr.msk.bf16.mxu1 %vm1426_vm3, %v9167_v1  ;;  %v3196_v0 = vsel %vm1521_vm6, %v3164_v22, %v5749_v17  ;;  %v3195_v24 = vsel %vm1521_vm6, %v3163_v10, %v5748_v57 }
 0x291   : > { %v5757_v44 = vpop.permute.xlu1 %5756  ;;  %v5754_v32 = vunpack.i.h.bf16 %v5752_v19  ;;  %v5753_v15 = vunpack.i.l.bf16 %v5752_v19 }
 0x292   : > { %v5759_v14 = vunpack.i.h.bf16 %v5757_v44  ;;  %v5758_v49 = vunpack.i.l.bf16 %v5757_v44 }
 0x293   : > { %v3227_v26 = vsel %vm1554_vm7, %v3195_v24, %v5753_v15  ;;  %v3228_v3 = vsel %vm1554_vm7, %v3196_v0, %v5754_v32 }
 0x294   : > { %v5762_v8 = vpop.permute.xlu0 %5761  ;;  %v3104_v2 = vsel %vm1426_vm3, %v9169_v58, %v5759_v14  ;;  %v3103_v59 = vsel %vm1426_vm3, %v9170_v62, %v5758_v49 }
 0x295   : > { %v5767_v43 = vpop.permute.xlu1 %5766  ;;  %v5764_v33 = vunpack.i.h.bf16 %v5762_v8  ;;  %v5763_v7 = vunpack.i.l.bf16 %v5762_v8 }
 0x296   : > { %v5769_v39 = vunpack.i.h.bf16 %v5767_v43  ;;  %v5768_v16 = vunpack.i.l.bf16 %v5767_v43 }
 0x297   : > { %v3133_v53 = vsel %vm1457_vm4, %v3103_v59, %v5763_v7  ;;  %v3134_v37 = vsel %vm1457_vm4, %v3104_v2, %v5764_v33  ;;  %v9172_v7 = vld [vmem:[#allocation11_spill] sm:$0xff] }
 0x298   : > { %v5777_v55 = vpop.permute.xlu0 %5776  ;;  %v3260_v18 = vsel %vm1587_vm8, %v3228_v3, %v5769_v39  ;;  %v3259_v9 = vsel %vm1587_vm8, %v3227_v26, %v5768_v16 }
 0x299   : > { %v5779_v31 = vunpack.i.h.bf16 %v5777_v55  ;;  %v5778_v29 = vunpack.i.l.bf16 %v5777_v55  ;;  %v5772_v61 = vpop.permute.xlu1 %5771 }
 0x29a   : > { %v5774_v63 = vunpack.i.h.bf16 %v5772_v61  ;;  %v5773_v19 = vunpack.i.l.bf16 %v5772_v61 }
 0x29b   : > { %v3291_v23 = vsel %vm1620_vm9, %v3259_v9, %v5778_v29  ;;  %v3292_v40 = vsel %vm1620_vm9, %v3260_v18, %v5779_v31 }
 0x29c   : > { %v5782_v28 = vpop.permute.xlu0 %5781  ;;  %v3323_v60 = vpack.c.bf16 %v3292_v40, %v3291_v23  ;;  %v3166_v57 = vsel %vm1488_vm5, %v3134_v37, %v5774_v63  ;;  %v3165_v8 = vsel %vm1488_vm5, %v3133_v53, %v5773_v19 }
 0x29d   : > { %v5787_v21 = vpop.permute.xlu1 %5786  ;;  %v5784_v1 = vunpack.i.h.bf16 %v5782_v28  ;;  %v5783_v50 = vunpack.i.l.bf16 %v5782_v28 }
 0x29e   : > { %3552 = vmatmul.mubr.bf16.gmra.mrb[32].mxu1 %v3323_v60  ;;  %v5789_v22 = vunpack.i.h.bf16 %v5787_v21  ;;  %v5788_v30 = vunpack.i.l.bf16 %v5787_v21  ;;  %v9171_v60 = vld [vmem:[#allocation12_spill] sm:$0xff] }
 0x29f   : > { %4821 = vmatprep.mubr.msk.bf16.mxu1 %vm1426_vm3, %v3326_v5  ;;  %v3198_v42 = vsel %vm1521_vm6, %v3166_v57, %v5784_v1  ;;  %v3197_v5 = vsel %vm1521_vm6, %v3165_v8, %v5783_v50 }
 0x2a0   : > { %v5792_v44 = vpop.permute.xlu0 %5791  ;;  %v3229_v39 = vsel %vm1554_vm7, %v3197_v5, %v5788_v30  ;;  %v3230_v16 = vsel %vm1554_vm7, %v3198_v42, %v5789_v22 }
 0x2a1   : > { %v5797_v17 = vpop.permute.xlu1 %5796  ;;  %v5794_v9 = vunpack.i.h.bf16 %v5792_v44  ;;  %v5793_v23 = vunpack.i.l.bf16 %v5792_v44 }
 0x2a2   : > { %v5799_v14 = vunpack.i.h.bf16 %v5797_v17  ;;  %v5798_v49 = vunpack.i.l.bf16 %v5797_v17 }
 0x2a3   : > { %v3106_v33 = vsel %vm1426_vm3, %v9171_v60, %v5794_v9  ;;  %v3105_v21 = vsel %vm1426_vm3, %v9172_v7, %v5793_v23 }
 0x2a4   : > { %v5802_v10 = vpop.permute.xlu0 %5801  ;;  %v3135_v50 = vsel %vm1457_vm4, %v3105_v21, %v5798_v49  ;;  %v3136_v41 = vsel %vm1457_vm4, %v3106_v33, %v5799_v14  ;;  %v9173_v14 = vld [vmem:[#allocation14_spill] sm:$0xff] }
 0x2a5   : > { %v5804_v32 = vunpack.i.h.bf16 %v5802_v10  ;;  %v5803_v15 = vunpack.i.l.bf16 %v5802_v10  ;;  %v5812_v43 = vpop.permute.xlu1 %5811 }
 0x2a6   : > { %v5814_v0 = vunpack.i.h.bf16 %v5812_v43  ;;  %v5813_v24 = vunpack.i.l.bf16 %v5812_v43 }
 0x2a7   : > { %v3262_v55 = vsel %vm1587_vm8, %v3230_v16, %v5804_v32  ;;  %v3261_v26 = vsel %vm1587_vm8, %v3229_v39, %v5803_v15 }
 0x2a8   : > { %v3293_v3 = vsel %vm1620_vm9, %v3261_v26, %v5813_v24  ;;  %v3294_v31 = vsel %vm1620_vm9, %v3262_v55, %v5814_v0  ;;  %v5807_v18 = vpop.permute.xlu0 %5806 }
 0x2a9   : > { %v3325_v29 = vpack.c.bf16 %v3294_v31, %v3293_v3  ;;  %v5817_v61 = vpop.permute.xlu1 %5816  ;;  %v5809_v63 = vunpack.i.h.bf16 %v5807_v18  ;;  %v5808_v19 = vunpack.i.l.bf16 %v5807_v18 }
 0x2aa   : > { %v5819_v13 = vunpack.i.h.bf16 %v5817_v61 }
 0x2ab   : > { %3560 = vmatmul.mubr.bf16.gmra.mrb[36].mxu1 %v3325_v29  ;;  %v3168_v2 = vsel %vm1488_vm5, %v3136_v41, %v5809_v63  ;;  %v3167_v62 = vsel %vm1488_vm5, %v3135_v50, %v5808_v19 }
 0x2ac   : > { %4822 = vmatprep.mubr.msk.bf16.mxu1 %vm1426_vm3, %v3328_v38  ;;  %v5818_v38 = vunpack.i.l.bf16 %v5817_v61  ;;  %v3200_v57 = vsel %vm1521_vm6, %v3168_v2, %v5819_v13 }
 0x2ad   : > { %v5827_v40 = vpop.permute.xlu1 %5826 }
 0x2ae   : > { %v3199_v8 = vsel %vm1521_vm6, %v3167_v62, %v5818_v38  ;;  %v5829_v0 = vunpack.i.h.bf16 %v5827_v40  ;;  %v5828_v24 = vunpack.i.l.bf16 %v5827_v40 }
 0x2b0   : > { %v5822_v28 = vpop.permute.xlu0 %5821  ;;  %v3108_v49 = vsel %vm1426_vm3, %v9173_v14, %v5829_v0 }
 0x2b1   : > { %v5824_v59 = vunpack.i.h.bf16 %v5822_v28  ;;  %v5823_v44 = vunpack.i.l.bf16 %v5822_v28  ;;  %v9174_v28 = vld [vmem:[#allocation13_spill] sm:$0xff] }
 0x2b2   : > { %v5837_v1 = vpop.permute.xlu1 %5836  ;;  %v3107_v40 = vsel %vm1426_vm3, %v9174_v28, %v5828_v24 }
 0x2b3   : > { %v5839_v53 = vunpack.i.h.bf16 %v5837_v1  ;;  %v5838_v37 = vunpack.i.l.bf16 %v5837_v1  ;;  %v3231_v30 = vsel %vm1554_vm7, %v3199_v8, %v5823_v44  ;;  %v3232_v42 = vsel %vm1554_vm7, %v3200_v57, %v5824_v59 }
 0x2b4   : > { %v5832_v58 = vpop.permute.xlu0 %5831 }
 0x2b5   : > { %v3264_v32 = vsel %vm1587_vm8, %v3232_v42, %v5839_v53  ;;  %v3263_v15 = vsel %vm1587_vm8, %v3231_v30, %v5838_v37  ;;  %v5834_v3 = vunpack.i.h.bf16 %v5832_v58  ;;  %v5833_v31 = vunpack.i.l.bf16 %v5832_v58 }
 0x2b6   : > { %v5842_v17 = vpop.permute.xlu1 %5841 }
 0x2b7   : > { %v5844_v29 = vunpack.i.h.bf16 %v5842_v17  ;;  %v5843_v61 = vunpack.i.l.bf16 %v5842_v17  ;;  %v3137_v33 = vsel %vm1457_vm4, %v3107_v40, %v5833_v31  ;;  %v3138_v7 = vsel %vm1457_vm4, %v3108_v49, %v5834_v3 }
 0x2b8   : > { %v5847_v22 = vpop.permute.xlu0 %5846 }
 0x2b9   : > { %v5849_v5 = vunpack.i.h.bf16 %v5847_v22  ;;  %v5848_v10 = vunpack.i.l.bf16 %v5847_v22  ;;  %v3170_v21 = vsel %vm1488_vm5, %v3138_v7, %v5844_v29  ;;  %v3169_v63 = vsel %vm1488_vm5, %v3137_v33, %v5843_v61 }
 0x2ba   : > { %v5857_v43 = vpop.permute.xlu1 %5856 }
 0x2bb   : > { %v3295_v39 = vsel %vm1620_vm9, %v3263_v15, %v5848_v10  ;;  %v3296_v16 = vsel %vm1620_vm9, %v3264_v32, %v5849_v5  ;;  %v5859_v19 = vunpack.i.h.bf16 %v5857_v43  ;;  %v5858_v52 = vunpack.i.l.bf16 %v5857_v43 }
 0x2bc   : > { %v5852_v55 = vpop.permute.xlu0 %5851  ;;  %v3327_v26 = vpack.c.bf16 %v3296_v16, %v3295_v39 }
 0x2bd   : > { %v5854_v18 = vunpack.i.h.bf16 %v5852_v55  ;;  %v5853_v9 = vunpack.i.l.bf16 %v5852_v55 }
 0x2be   : > { %3568 = vmatmul.mubr.bf16.gmra.mrb[40].mxu1 %v3327_v26  ;;  %v5867_v23 = vpop.permute.xlu1 %5866 }
 0x2bf   : > { %4823 = vmatprep.mubr.msk.bf16.mxu1 %vm1426_vm3, %v3330_v4  ;;  %v3202_v48 = vsel %vm1521_vm6, %v3170_v21, %v5854_v18  ;;  %v3201_v4 = vsel %vm1521_vm6, %v3169_v63, %v5853_v9  ;;  %v5869_v42 = vunpack.i.h.bf16 %v5867_v23  ;;  %v5868_v5 = vunpack.i.l.bf16 %v5867_v23 }
 0x2c0   : > { %v5862_v60 = vpop.permute.xlu0 %5861  ;;  %v3233_v38 = vsel %vm1554_vm7, %v3201_v4, %v5858_v52  ;;  %v3234_v58 = vsel %vm1554_vm7, %v3202_v48, %v5859_v19 }
 0x2c1   : > { %v5864_v57 = vunpack.i.h.bf16 %v5862_v60  ;;  %v5863_v8 = vunpack.i.l.bf16 %v5862_v60 }
 0x2c3   : > { %v5882_v13 = vpop.permute.xlu1 %5881  ;;  %v3110_v32 = vsel %vm1426_vm3, %v7723_v45, %v5864_v57  ;;  %v3109_v15 = vsel %vm1426_vm3, %v7720_v20, %v5863_v8 }
 0x2c4   : > { %v5872_v1 = vpop.permute.xlu0 %5871  ;;  %v5884_v2 = vunpack.i.h.bf16 %v5882_v13  ;;  %v5883_v62 = vunpack.i.l.bf16 %v5882_v13  ;;  %v3139_v0 = vsel %vm1457_vm4, %v3109_v15, %v5868_v5  ;;  %v3140_v24 = vsel %vm1457_vm4, %v3110_v32, %v5869_v42 }
 0x2c5   : > { %v5874_v50 = vunpack.i.h.bf16 %v5872_v1  ;;  %v5873_v41 = vunpack.i.l.bf16 %v5872_v1 }
 0x2c7   : > { %v3266_v59 = vsel %vm1587_vm8, %v3234_v58, %v5874_v50  ;;  %v3265_v44 = vsel %vm1587_vm8, %v3233_v38, %v5873_v41  ;;  %v5887_v22 = vpop.permute.xlu1 %5886 }
 0x2c8   : > { %v5877_v53 = vpop.permute.xlu0 %5876  ;;  %v3297_v37 = vsel %vm1620_vm9, %v3265_v44, %v5883_v62  ;;  %v3298_v17 = vsel %vm1620_vm9, %v3266_v59, %v5884_v2  ;;  %v5889_v55 = vunpack.i.h.bf16 %v5887_v22  ;;  %v5888_v26 = vunpack.i.l.bf16 %v5887_v22 }
 0x2c9   : > { %v3329_v30 = vpack.c.bf16 %v3298_v17, %v3297_v37  ;;  %v5879_v43 = vunpack.i.h.bf16 %v5877_v53  ;;  %v5878_v39 = vunpack.i.l.bf16 %v5877_v53 }
 0x2cb   : > { %3576 = vmatmul.mubr.bf16.gmra.mrb[44].mxu1 %v3329_v30  ;;  %v5897_v16 = vpop.permute.xlu1 %5896  ;;  %v3172_v6 = vsel %vm1488_vm5, %v3140_v24, %v5879_v43  ;;  %v3171_v47 = vsel %vm1488_vm5, %v3139_v0, %v5878_v39 }
 0x2cc   : > { %v5892_v10 = vpop.permute.xlu0 %5891  ;;  %4824 = vmatprep.mubr.msk.bf16.mxu1 %vm1426_vm3, %v3332_v12  ;;  %v3204_v20 = vsel %vm1521_vm6, %v3172_v6, %v5889_v55  ;;  %v3203_v18 = vsel %vm1521_vm6, %v3171_v47, %v5888_v26  ;;  %v5899_v63 = vunpack.i.h.bf16 %v5897_v16  ;;  %v5898_v19 = vunpack.i.l.bf16 %v5897_v16 }
 0x2cd   : > { %v5894_v12 = vunpack.i.h.bf16 %v5892_v10  ;;  %v5893_v31 = vunpack.i.l.bf16 %v5892_v10 }
 0x2ce   : > { %v3112_v2 = vsel %vm1426_vm3, %v7785_v34, %v5899_v63  ;;  %v3111_v62 = vsel %vm1426_vm3, %v7793_v35, %v5898_v19 }
 0x2cf   : > { %v5907_v45 = vpop.permute.xlu1 %5906  ;;  %v3235_v23 = vsel %vm1554_vm7, %v3203_v18, %v5893_v31  ;;  %v3236_v14 = vsel %vm1554_vm7, %v3204_v20, %v5894_v12 }
 0x2d0   : > { %v5902_v3 = vpop.permute.xlu0 %5901  ;;  %v5909_v29 = vunpack.i.h.bf16 %v5907_v45  ;;  %v5908_v61 = vunpack.i.l.bf16 %v5907_v45 }
 0x2d1   : > { %v5904_v4 = vunpack.i.h.bf16 %v5902_v3  ;;  %v5903_v1 = vunpack.i.l.bf16 %v5902_v3 }
 0x2d2   : > { %v3268_v60 = vsel %vm1587_vm8, %v3236_v14, %v5909_v29  ;;  %v3267_v33 = vsel %vm1587_vm8, %v3235_v23, %v5908_v61 }
 0x2d3   : > { %v5912_v40 = vpop.permute.xlu1 %5911  ;;  %v3141_v44 = vsel %vm1457_vm4, %v3111_v62, %v5903_v1  ;;  %v3142_v53 = vsel %vm1457_vm4, %v3112_v2, %v5904_v4 }
 0x2d4   : > { %v5917_v9 = vpop.permute.xlu0 %5916  ;;  %v5914_v41 = vunpack.i.h.bf16 %v5912_v40  ;;  %v5913_v13 = vunpack.i.l.bf16 %v5912_v40 }
 0x2d5   : > { %v5919_v49 = vunpack.i.h.bf16 %v5917_v9  ;;  %v5918_v28 = vunpack.i.l.bf16 %v5917_v9 }
 0x2d6   : > { %v3174_v17 = vsel %vm1488_vm5, %v3142_v53, %v5914_v41  ;;  %v3173_v57 = vsel %vm1488_vm5, %v3141_v44, %v5913_v13 }
 0x2d7   : > { %v3299_v7 = vsel %vm1620_vm9, %v3267_v33, %v5918_v28  ;;  %v3300_v21 = vsel %vm1620_vm9, %v3268_v60, %v5919_v49  ;;  %v5927_v50 = vpop.permute.xlu1 %5926 }
 0x2d8   : > { %v5922_v52 = vpop.permute.xlu0 %5921  ;;  %v3331_v48 = vpack.c.bf16 %v3300_v21, %v3299_v7  ;;  %v5929_v8 = vunpack.i.h.bf16 %v5927_v50  ;;  %v5928_v22 = vunpack.i.l.bf16 %v5927_v50 }
 0x2d9   : > { %v5924_v38 = vunpack.i.h.bf16 %v5922_v52  ;;  %v5923_v58 = vunpack.i.l.bf16 %v5922_v52 }
 0x2da   : > { %3584 = vmatmul.mubr.bf16.gmra.mrb[48].mxu1 %v3331_v48 }
 0x2db   : > { %4825 = vmatprep.mubr.msk.bf16.mxu1 %vm1426_vm3, %v7989_v56  ;;  %v5937_v37 = vpop.permute.xlu1 %5936  ;;  %v3206_v30 = vsel %vm1521_vm6, %v3174_v17, %v5924_v38  ;;  %v3205_v42 = vsel %vm1521_vm6, %v3173_v57, %v5923_v58 }
 0x2dc   : > { %v5932_v59 = vpop.permute.xlu0 %5931  ;;  %v3237_v10 = vsel %vm1554_vm7, %v3205_v42, %v5928_v22  ;;  %v3238_v32 = vsel %vm1554_vm7, %v3206_v30, %v5929_v8  ;;  %v5939_v47 = vunpack.i.h.bf16 %v5937_v37  ;;  %v5938_v12 = vunpack.i.l.bf16 %v5937_v37 }
 0x2dd   : > { %v5934_v16 = vunpack.i.h.bf16 %v5932_v59  ;;  %v5933_v0 = vunpack.i.l.bf16 %v5932_v59 }
 0x2df   : > { %v8145_v39 = vpop.permute.xlu1 %5951  ;;  %v3114_v29 = vsel %vm1426_vm3, %v7831_v36, %v5934_v16  ;;  %v3113_v61 = vsel %vm1426_vm3, %v7838_v27, %v5933_v0 }
 0x2e0   : > { %v8133_v34 = vpop.permute.xlu0 %5941  ;;  %v5954_v24 = vunpack.i.h.bf16 %v8145_v39  ;;  %v5953_v55 = vunpack.i.l.bf16 %v8145_v39  ;;  %v3143_v23 = vsel %vm1457_vm4, %v3113_v61, %v5938_v12  ;;  %v3144_v14 = vsel %vm1457_vm4, %v3114_v29, %v5939_v47 }
 0x2e1   : > { %v5944_v35 = vunpack.i.h.bf16 %v8133_v34  ;;  %v5943_v5 = vunpack.i.l.bf16 %v8133_v34 }
 0x2e3   : > { %v3270_v15 = vsel %vm1587_vm8, %v3238_v32, %v5944_v35  ;;  %v3269_v43 = vsel %vm1587_vm8, %v3237_v10, %v5943_v5  ;;  %v5957_v31 = vpop.permute.xlu1 %5956 }
 0x2e4   : > { %v5947_v26 = vpop.permute.xlu0 %5946  ;;  %v3301_v3 = vsel %vm1620_vm9, %v3269_v43, %v5953_v55  ;;  %v3302_v6 = vsel %vm1620_vm9, %v3270_v15, %v5954_v24  ;;  %v5959_v49 = vunpack.i.h.bf16 %v5957_v31  ;;  %v5958_v28 = vunpack.i.l.bf16 %v5957_v31 }
 0x2e5   : > { %v3333_v45 = vpack.c.bf16 %v3302_v6, %v3301_v3  ;;  %v5949_v20 = vunpack.i.h.bf16 %v5947_v26  ;;  %v5948_v18 = vunpack.i.l.bf16 %v5947_v26 }
 0x2e7   : > { %3592 = vmatmul.mubr.bf16.gmra.mrb[52].mxu1 %v3333_v45  ;;  %v5967_v40 = vpop.permute.xlu1 %5966  ;;  %v3176_v36 = vsel %vm1488_vm5, %v3144_v14, %v5949_v20  ;;  %v3175_v27 = vsel %vm1488_vm5, %v3143_v23, %v5948_v18 }
 0x2e8   : > { %v5962_v9 = vpop.permute.xlu0 %5961  ;;  %4826 = vmatprep.mubr.msk.bf16.mxu1 %vm1426_vm3, %v3336_v11  ;;  %v5969_v21 = vunpack.i.h.bf16 %v5967_v40  ;;  %v5968_v63 = vunpack.i.l.bf16 %v5967_v40  ;;  %v3208_v51 = vsel %vm1521_vm6, %v3176_v36, %v5959_v49  ;;  %v3207_v54 = vsel %vm1521_vm6, %v3175_v27, %v5958_v28 }
 0x2e9   : > { %v5964_v60 = vunpack.i.h.bf16 %v5962_v9  ;;  %v5963_v33 = vunpack.i.l.bf16 %v5962_v9 }
 0x2ea   : > { %v3116_v58 = vsel %vm1426_vm3, %v7895_v46, %v5969_v21  ;;  %v3115_v2 = vsel %vm1426_vm3, %v7885_v25, %v5968_v63 }
 0x2eb   : > { %v5972_v11 = vpop.permute.xlu1 %5971  ;;  %v3239_v19 = vsel %vm1554_vm7, %v3207_v54, %v5963_v33  ;;  %v3240_v52 = vsel %vm1554_vm7, %v3208_v51, %v5964_v60  ;;  %v4423_v33 = vld [vmem:[%s9086_s5] sm:$0xff]  ;;  %v6175_v54 = vmov 0.0|0.0  }
 0x2ec   : > { %v5977_v7 = vpop.permute.xlu0 %5976  ;;  %v5974_v48 = vunpack.i.h.bf16 %v5972_v11  ;;  %v5973_v4 = vunpack.i.l.bf16 %v5972_v11  ;;  %4856 = vmatprep.subr.bf16.mxu0 %v6175_v54 }
 0x2ed   : > { %v5979_v50 = vunpack.i.h.bf16 %v5977_v7  ;;  %v5978_v41 = vunpack.i.l.bf16 %v5977_v7  ;;  %v4424_v7 = vld [vmem:[%s9086_s5 + $0x8] sm:$0xff] }
 0x2ee   : > { %v3272_v62 = vsel %vm1587_vm8, %v3240_v52, %v5974_v48  ;;  %v3271_v59 = vsel %vm1587_vm8, %v3239_v19, %v5973_v4  ;;  %v4857_v51 = vpack.c.bf16 %v4424_v7, %v4423_v33  ;;  %v8220_v48 = vld [vmem:[%s9084_s3 + $0x8] sm:$0x1f] }
 0x2ef   : > { %v5987_v37 = vpop.permute.xlu1 %5986  ;;  %v3303_v17 = vsel %vm1620_vm9, %v3271_v59, %v5978_v41  ;;  %v3304_v57 = vsel %vm1620_vm9, %v3272_v62, %v5979_v50  ;;  %v8226_v50 = vrot.slane %v8220_v48, 4  ;;  %v8237_v62 = vld [vmem:[%s9084_s3] sm:$0x1f]  ;;  %v8242_v59 = vld [vmem:[%s9084_s3 + $0x10] sm:$0x1f] }
 0x2f0   : > { %v5982_v1 = vpop.permute.xlu0 %5981  ;;  %v5989_v8 = vunpack.i.h.bf16 %v5987_v37  ;;  %v5988_v22 = vunpack.i.l.bf16 %v5987_v37  ;;  %v3335_v46 = vpack.c.bf16 %v3304_v57, %v3303_v17  ;;  %4858 = vmatpush3.bf16.msra.mxu0 %v4857_v51  ;;  %v8253_v37 = vld [vmem:[%s9084_s3 + $0x20] sm:$0x1f] }
 0x2f1   : > { %v5984_v13 = vunpack.i.h.bf16 %v5982_v1  ;;  %v5983_v38 = vunpack.i.l.bf16 %v5982_v1 }
 0x2f2   : > { %3600 = vmatmul.mubr.bf16.gmra.mrb[56].mxu1 %v3335_v46 }
 0x2f3   : > { %v3146_v44 = vsel %vm1457_vm4, %v3116_v58, %v5984_v13  ;;  %v3145_v53 = vsel %vm1457_vm4, %v3115_v2, %v5983_v38  ;;  %v5997_v16 = vpop.permute.xlu1 %5996  ;;  %4827 = vmatprep.mubr.msk.bf16.mxu1 %vm1426_vm3, %v7989_v56  ;;  %vm4375_vm4 = vcmask 1042432  }
 0x2f4   : > { %v5992_v30 = vpop.permute.xlu0 %5991  ;;  %v3177_v25 = vsel %vm1488_vm5, %v3145_v53, %v5988_v22  ;;  %v3178_v32 = vsel %vm1488_vm5, %v3146_v44, %v5989_v8  ;;  %v5999_v0 = vunpack.i.h.bf16 %v5997_v16  ;;  %v5998_v26 = vunpack.i.l.bf16 %v5997_v16  ;;  %v8248_v53 = vld [vmem:[%s9084_s3 + $0x18] sm:$0x1f] }
 0x2f5   : > { %v5994_v42 = vunpack.i.h.bf16 %v5992_v30  ;;  %v5993_v10 = vunpack.i.l.bf16 %v5992_v30  ;;  %v8276_v16 = vrot.slane %v8253_v37, 4  ;;  %vm4378_vm5 = vcmask 1044480  }
 0x2f7   : > { %v3209_v15 = vsel %vm1521_vm6, %v3177_v25, %v5993_v10  ;;  %v3210_v43 = vsel %vm1521_vm6, %v3178_v32, %v5994_v42  ;;  %v8262_v42 = vrot.slane %v8237_v62, 4  ;;  %v8265_v10 = vrot.slane %v8242_v59, 4 }
 0x2f8   : > { %v3241_v3 = vsel %vm1554_vm7, %v3209_v15, %v5998_v26  ;;  %v3242_v6 = vsel %vm1554_vm7, %v3210_v43, %v5999_v0  ;;  %v8273_v43 = vrot.slane %v8248_v53, 4 }
 0x2f9   : > { %v3273_v47 = vsel %vm1587_vm8, %v3241_v3, %v5943_v5  ;;  %v3274_v12 = vsel %vm1587_vm8, %v3242_v6, %v5944_v35 }
 0x2fa   : > { %v3305_v31 = vsel %vm1620_vm9, %v3273_v47, %v5953_v55  ;;  %v3306_v56 = vsel %vm1620_vm9, %v3274_v12, %v5954_v24 }
 0x2fb   : > { %v3337_v45 = vpack.c.bf16 %v3306_v56, %v3305_v31 }
 0x2fd   : > { %3608 = vmatmul.mubr.bf16.gmra.mrb[60].mxu1 %v3337_v45 }
 0x30f   : > { %v3489_v29 = vpop.f32.mrb[0].mxu1 }
 0x310   : > { %v3491_v61 = vpop.f32.mrb[1].mxu1  ;;  %v8211_v21 = vmax.f32 %v3489_v29, 0.0 }
 0x311   : > { %v3492_v20 = vpop.f32.mrb[2].mxu1 }
 0x312   : > { %v3494_v18 = vpop.f32.mrb[3].mxu1  ;;  %v3665_v11 = vrot.slane %v8211_v21, 1  ;;  %v3715_v19 = vrot.slane %v8211_v21, 7  ;;  %v8215_v52 = vmax.f32 %v3492_v20, 0.0 }
 0x314   : > { %v3841_v1 = vsel %vm394_vm0, %v3665_v11, %v3715_v19  ;;  %v3716_v41 = vrot.slane %v8215_v52, 7  ;;  %v3809_v2 = vrot.slane %v8215_v52, 5 }
 0x315   : > { %v3878_v44 = vmul.f32 %v8220_v48, %v3841_v1  ;;  %v3916_v57 = vmul.f32 %v8226_v50, %v3841_v1 }
 0x316   : > { %v3717_v8 = vsel %vm394_vm0, %v3715_v19, %v3716_v41  ;;  %v3857_v32 = vsel %vm394_vm0, %v3716_v41, %v3809_v2 }
 0x317   : > { %v3497_v9 = vpop.f32.mrb[4].mxu1  ;;  %v3884_v26 = vsel %vm3882_vm10, %v3878_v44, 0.0  ;;  %v3917_v3 = vmul.f32 %v8226_v50, %v3717_v8  ;;  %v3959_v6 = vmul.f32 %v8220_v48, %v3717_v8  ;;  %v3926_v12 = vsel %vm3924_vm11, %v3916_v57, 0.0 }
 0x318   : > { %v3499_v5 = vpop.f32.mrb[5].mxu1  ;;  %v8222_v4 = vmax.f32 %v3497_v9, 0.0  ;;  %v3980_v29 = vmul.f32 %v8226_v50, %v3857_v32 }
 0x319   : > { %v3500_v23 = vpop.f32.mrb[6].mxu1 }
 0x31a   : > { %v3502_v34 = vpop.f32.mrb[7].mxu1  ;;  %v8229_v13 = vmax.f32 %v3500_v23, 0.0  ;;  %v3664_v38 = vrot.slane %v8222_v4, 1  ;;  %v3712_v58 = vrot.slane %v8222_v4, 7 }
 0x31c   : > { %v3713_v22 = vrot.slane %v8229_v13, 7  ;;  %v3840_v46 = vsel %vm394_vm0, %v3664_v38, %v3712_v58  ;;  %v3808_v20 = vrot.slane %v8229_v13, 5 }
 0x31d   : > { %v3877_v31 = vmul.f32 %v8237_v62, %v3840_v46  ;;  %v3914_v61 = vmul.f32 %v8262_v42, %v3840_v46  ;;  %v3879_v9 = vmul.f32 %v8242_v59, %v3840_v46  ;;  %v3918_v5 = vmul.f32 %v8265_v10, %v3840_v46 }
 0x31e   : > { %v3714_v56 = vsel %vm394_vm0, %v3712_v58, %v3713_v22  ;;  %v3856_v7 = vsel %vm394_vm0, %v3713_v22, %v3808_v20 }
 0x31f   : > { %v3505_v14 = vpop.f32.mrb[8].mxu1  ;;  %v3925_v33 = vsel %vm3924_vm11, %v3914_v61, 0.0  ;;  %v3886_v54 = vsel %vm3882_vm10, %v3879_v9, 0.0  ;;  %v3928_v11 = vsel %vm3924_vm11, %v3918_v5, 0.0  ;;  %v3958_v19 = vmul.f32 %v8237_v62, %v3714_v56 }
 0x320   : > { %v3507_v35 = vpop.f32.mrb[9].mxu1  ;;  %v8270_v15 = vmax.f32 %v3505_v14, 0.0  ;;  %v3936_v14 = vsel %vm3934_vm12, %v3917_v3, 0.0  ;;  %v3919_v58 = vmul.f32 %v8265_v10, %v3714_v56  ;;  %v3927_v8 = vadd.f32 %v3926_v12, %v3925_v33 }
 0x321   : > { %v3508_v49 = vpop.f32.mrb[10].mxu1  ;;  %v3964_v35 = vsel %vm3882_vm10, %v3959_v6, 0.0  ;;  %v3960_v22 = vmul.f32 %v8242_v59, %v3714_v56  ;;  %v3963_v12 = vsel %vm3882_vm10, %v3958_v19, 0.0  ;;  %v3981_v20 = vmul.f32 %v8265_v10, %v3856_v7 }
 0x322   : > { %v3510_v28 = vpop.f32.mrb[11].mxu1  ;;  %v8281_v47 = vmax.f32 %v3508_v49, 0.0  ;;  %v3666_v23 = vrot.slane %v8270_v15, 1  ;;  %v3718_v34 = vrot.slane %v8270_v15, 7  ;;  %v3915_v49 = vmul.f32 %v8262_v42, %v3714_v56 }
 0x323   : > { %v3938_v61 = vsel %vm3934_vm12, %v3919_v58, 0.0 }
 0x324   : > { %v3719_v28 = vrot.slane %v8281_v47, 7  ;;  %v3842_v1 = vsel %vm394_vm0, %v3666_v23, %v3718_v34  ;;  %v3935_v2 = vsel %vm3934_vm12, %v3915_v49, 0.0 }
 0x325   : > { %v3920_v9 = vmul.f32 %v8273_v43, %v3842_v1 }
 0x326   : > { %v3720_v44 = vsel %vm394_vm0, %v3718_v34, %v3719_v28  ;;  %v3987_v34 = vsel %vm3924_vm11, %v3919_v58, 0.0 }
 0x327   : > { %v3921_v56 = vmul.f32 %v8273_v43, %v3720_v44 }
 0x329   : > { %v3940_v19 = vsel %vm3934_vm12, %v3921_v56, 0.0 }
 0x32c   : > { %v3513_v40 = vpop.f32.mrb[12].mxu1 }
 0x32d   : > { %v3515_v55 = vpop.f32.mrb[13].mxu1  ;;  %v8286_v45 = vmax.f32 %v3513_v40, 0.0  ;;  %v3985_v40 = vsel %vm3924_vm11, %v3917_v3, 0.0  ;;  %v3880_v3 = vmul.f32 %v8248_v53, %v3842_v1 }
 0x32e   : > { %v3516_v36 = vpop.f32.mrb[14].mxu1  ;;  %v3883_v55 = vsel %vm3882_vm10, %v3877_v31, 0.0  ;;  %v3937_v31 = vadd.f32 %v3936_v14, %v3935_v2 }
 0x32f   : > { %v3518_v39 = vpop.f32.mrb[15].mxu1  ;;  %v8291_v18 = vmax.f32 %v3516_v36, 0.0  ;;  %v3667_v36 = vrot.slane %v8286_v45, 1  ;;  %v3885_v38 = vadd.f32 %v3884_v26, %v3883_v55  ;;  %v3984_v26 = vsel %vm3924_vm11, %v3915_v49, 0.0 }
 0x330   : > { %v3721_v39 = vrot.slane %v8286_v45, 7  ;;  %v3986_v23 = vadd.f32 %v3985_v40, %v3984_v26  ;;  %v3965_v55 = vadd.f32 %v3964_v35, %v3963_v12  ;;  %v3888_v33 = vsel %vm3882_vm10, %v3880_v3, 0.0 }
 0x331   : > { %v3996_v3 = vsel %vm3934_vm12, %v3981_v20, 0.0 }
 0x332   : > { %v8323_v46 = vsel %vm394_vm0, %v3667_v36, %v3721_v39 }
 0x333   : > { %v3881_v5 = vmul.f32 %v8253_v37, %v8323_v46  ;;  %v3922_v1 = vmul.f32 %v8276_v16, %v8323_v46 }
 0x335   : > { %v3890_v35 = vsel %vm3882_vm10, %v3881_v5, 0.0  ;;  %v3932_v12 = vsel %vm3924_vm11, %v3922_v1, 0.0 }
 0x33a   : > { %v8201_v27 = vpop.f32.mrb[16].mxu1 }
 0x33b   : > { %v3523_v24 = vpop.f32.mrb[17].mxu1 }
 0x33c   : > { %v8203_v60 = vpop.f32.mrb[18].mxu1  ;;  %v3994_v24 = vsel %vm3934_vm12, %v3980_v29, 0.0  ;;  %v3811_v29 = vrot.slane %v8291_v18, 5 }
 0x33d   : > { %v3526_v63 = vpop.f32.mrb[19].mxu1 }
 0x33e   : > { %v3722_v63 = vrot.slane %v8291_v18, 7 }
 0x340   : > { %v8329_v6 = vsel %vm394_vm0, %v3721_v39, %v3722_v63  ;;  %v3887_v39 = vadd.f32 %v3886_v54, %v3885_v38  ;;  %v3859_v40 = vsel %vm394_vm0, %v3722_v63, %v3811_v29  ;;  %v3929_v38 = vadd.f32 %v3928_v11, %v3927_v8 }
 0x341   : > { %v3923_v49 = vmul.f32 %v8276_v16, %v8329_v6  ;;  %v3962_v26 = vmul.f32 %v8253_v37, %v8329_v6  ;;  %v3983_v63 = vmul.f32 %v8276_v16, %v3859_v40  ;;  %v3989_v11 = vsel %vm3924_vm11, %v3921_v56, 0.0 }
 0x342   : > { %v3889_v54 = vadd.f32 %v3888_v33, %v3887_v39 }
 0x343   : > { %v3970_v20 = vsel %vm3882_vm10, %v3962_v26, 0.0  ;;  %v3991_v33 = vsel %vm3924_vm11, %v3923_v49, 0.0 }
 0x348   : > { %v8255_v17 = vpop.f32.mrb[20].mxu1 }
 0x349   : > { %v3531_v30 = vpop.f32.mrb[21].mxu1 }
 0x34a   : > { %v8267_v25 = vpop.f32.mrb[22].mxu1  ;;  %v3810_v30 = vrot.slane %v8281_v47, 5 }
 0x34b   : > { %v3534_v0 = vpop.f32.mrb[23].mxu1 }
 0x34c   : > { %v3979_v0 = vmul.f32 %v8262_v42, %v3856_v7  ;;  %v3858_v14 = vsel %vm394_vm0, %v3719_v28, %v3810_v30  ;;  %v3939_v7 = vadd.f32 %v3938_v61, %v3937_v31  ;;  %v3961_v28 = vmul.f32 %v8248_v53, %v3720_v44 }
 0x34d   : > { %v3982_v58 = vmul.f32 %v8273_v43, %v3858_v14  ;;  %v3942_v30 = vsel %vm3934_vm12, %v3923_v49, 0.0  ;;  %v3891_v31 = vadd.f32 %v3890_v35, %v3889_v54  ;;  %v3988_v14 = vadd.f32 %v3987_v34, %v3986_v23 }
 0x34e   : > { %v3993_v36 = vsel %vm3934_vm12, %v3979_v0, 0.0  ;;  %v3941_v0 = vadd.f32 %v3940_v19, %v3939_v7  ;;  %v4000_v7 = vsel %vm3934_vm12, %v3983_v63, 0.0  ;;  %v8370_v35 = vmax.f32 %v8201_v27, 0.0 }
 0x34f   : > { %v3995_v2 = vadd.f32 %v3994_v24, %v3993_v36  ;;  %v3968_v24 = vsel %vm3882_vm10, %v3961_v28, 0.0  ;;  %v3998_v8 = vsel %vm3934_vm12, %v3982_v58, 0.0  ;;  %v3892_v56 = vsel %vm3882_vm10, %v3891_v31, 0.0 }
 0x350   : > { %v8373_v49 = vmax.f32 %v8203_v60, 0.0  ;;  %v3668_v27 = vrot.slane %v8370_v35, 1  ;;  %v4037_v31 = vmul.f32 %v8262_v42, %v8329_v6 }
 0x352   : > { %9175 = vst [vmem:[#allocation8_spill] sm:$0xff] %v8373_v49 }
 0x355   : > { %v8309_v51 = vpop.f32.mrb[24].mxu1 }
 0x356   : > { %v3539_v41 = vpop.f32.mrb[25].mxu1 }
 0x357   : > { %v8318_v57 = vpop.f32.mrb[26].mxu1  ;;  %v3930_v41 = vsel %vm3924_vm11, %v3920_v9, 0.0  ;;  %v3997_v9 = vadd.f32 %v3996_v3, %v3995_v2  ;;  %v3893_v2 = vrot.slane %v3892_v56, 4 }
 0x358   : > { %v3542_v32 = vpop.f32.mrb[27].mxu1  ;;  %v3931_v44 = vadd.f32 %v3930_v41, %v3929_v38  ;;  %v3990_v41 = vadd.f32 %v3989_v11, %v3988_v14  ;;  %v4015_v38 = vmul.f32 %v8237_v62, %v8323_v46  ;;  %v8403_v14 = vmax.f32 %v8267_v25, 0.0 }
 0x359   : > { %v3966_v32 = vsel %vm3882_vm10, %v3960_v22, 0.0  ;;  %v3943_v22 = vadd.f32 %v3942_v30, %v3941_v0  ;;  %v3999_v28 = vadd.f32 %v3998_v8, %v3997_v9  ;;  %v4036_v30 = vmul.f32 %v8262_v42, %v8323_v46 }
 0x35a   : > { %v3967_v5 = vadd.f32 %v3966_v32, %v3965_v55  ;;  %v3933_v39 = vadd.f32 %v3932_v12, %v3931_v44  ;;  %v3992_v34 = vadd.f32 %v3991_v33, %v3990_v41  ;;  %v3724_v0 = vrot.slane %v8370_v35, 7  ;;  %9177 = vst [vmem:[#allocation9_spill] sm:$0xff] %v8403_v14 }
 0x35b   : > { %v3948_v58 = vrot.slane %v3943_v22, 4  ;;  %v4001_v55 = vadd.f32 %v4000_v7, %v3999_v28  ;;  %v4098_v44 = vmul.f32 %v8262_v42, %v3859_v40  ;;  %v8384_v60 = vadd.f32 %v3893_v2, %v3892_v56 }
 0x35c   : > { %v3969_v1 = vadd.f32 %v3968_v24, %v3967_v5  ;;  %v3947_v54 = vrot.slane %v3933_v39, 4  ;;  %v4004_v63 = vrot.slane %v3992_v34, 4  ;;  %v3725_v12 = vrot.slane %v8373_v49, 7 }
 0x35d   : > { %v4005_v3 = vrot.slane %v4001_v55, 4  ;;  %v8391_v24 = vmax.f32 %v8255_v17, 0.0  ;;  %v4077_v8 = vmul.f32 %v8237_v62, %v8329_v6  ;;  %v3844_v22 = vsel %vm394_vm0, %v3668_v27, %v3724_v0 }
 0x35e   : > { %v3971_v23 = vadd.f32 %v3970_v20, %v3969_v1  ;;  %v3949_v32 = vsel %vm3946_vm13, %v3947_v54, %v3948_v58  ;;  %v4020_v40 = vsel %vm3882_vm10, %v4015_v38, 0.0  ;;  %v8399_v9 = vsel %vm3934_vm12, %v4098_v44, 0.0 }
 0x35f   : > { %v3951_v46 = vsel %vm3882_vm10, %v3949_v32, 0.0  ;;  %9176 = vst [vmem:[#allocation10_spill] sm:$0xff] %v8391_v24  ;;  %v4046_v5 = vsel %vm3924_vm11, %v4036_v30, 0.0  ;;  %v3726_v20 = vsel %vm394_vm0, %v3724_v0, %v3725_v12  ;;  %v4055_v6 = vsel %vm3934_vm12, %v4037_v31, 0.0 }
 0x360   : > { %v3972_v26 = vsel %vm3882_vm10, %v3971_v23, 0.0  ;;  %v3952_v39 = vrot.slane %v3951_v46, 4  ;;  %v4016_v7 = vmul.f32 %v8220_v48, %v3844_v22  ;;  %v3727_v1 = vrot.slane %v8391_v24, 7 }
 0x361   : > { %v3973_v11 = vrot.slane %v3972_v26, 4  ;;  %v8414_v41 = vmax.f32 %v8318_v57, 0.0  ;;  %v4038_v56 = vmul.f32 %v8226_v50, %v3844_v22  ;;  %v3812_v58 = vrot.slane %v8373_v49, 5 }
 0x362   : > { %v8360_v29 = vpop.f32.mrb[28].mxu1  ;;  %v8422_v23 = vmax.f32 %v8309_v51, 0.0  ;;  %v4039_v2 = vmul.f32 %v8226_v50, %v3726_v20  ;;  %v3728_v57 = vrot.slane %v8403_v14, 7  ;;  %v8432_v30 = vadd.f32 %v3952_v39, %v3951_v46 }
 0x363   : > { %v3547_v61 = vpop.f32.mrb[29].mxu1  ;;  %9178 = vst [vmem:[#allocation12_spill] sm:$0xff] %v8414_v41  ;;  %v8426_v55 = vadd.f32 %v3973_v11, %v3972_v26  ;;  %v4082_v32 = vsel %vm3882_vm10, %v4077_v8, 0.0  ;;  %v4103_v27 = vsel %vm3924_vm11, %v4037_v31, 0.0  ;;  %v8437_v51 = vmax.f32 %v8360_v29, 0.0 }
 0x364   : > { %v3548_v36 = vpop.f32.mrb[30].mxu1  ;;  %v4006_v61 = vsel %vm3946_vm13, %v4004_v63, %v4005_v3  ;;  %9179 = vst [vmem:[#allocation11_spill] sm:$0xff] %v8422_v23  ;;  %v4021_v26 = vsel %vm3882_vm10, %v4016_v7, 0.0  ;;  %v3731_v3 = vrot.slane %v8414_v41, 7  ;;  %v3860_v44 = vsel %vm394_vm0, %v3725_v12, %v3812_v58 }
 0x365   : > { %v3550_v19 = vpop.f32.mrb[31].mxu1  ;;  %v8417_v28 = vsel %vm3882_vm10, %v4006_v61, 0.0  ;;  %v8430_v54 = vmax.f32 %v3548_v36, 0.0  ;;  %9181 = vst [vmem:[#allocation13_spill] sm:$0xff] %v8437_v51  ;;  %v4047_v36 = vsel %vm3924_vm11, %v4038_v56, 0.0  ;;  %v3670_v46 = vrot.slane %v8422_v23, 1 }
 0x366   : > { %v3669_v19 = vrot.slane %v8391_v24, 1  ;;  %v3730_v11 = vrot.slane %v8422_v23, 7  ;;  %v4056_v31 = vsel %vm3934_vm12, %v4039_v2, 0.0  ;;  %v4078_v29 = vmul.f32 %v8220_v48, %v3726_v20 }
 0x367   : > { %9180 = vst [vmem:[#allocation14_spill] sm:$0xff] %v8430_v54  ;;  %v3729_v8 = vsel %vm394_vm0, %v3727_v1, %v3728_v57  ;;  %v3734_v22 = vrot.slane %v8430_v54, 7  ;;  %v4104_v61 = vsel %vm3924_vm11, %v4039_v2, 0.0  ;;  %v3671_v7 = vrot.slane %v8437_v51, 1 }
 0x368   : > { %v3845_v63 = vsel %vm394_vm0, %v3669_v19, %v3727_v1  ;;  %v3733_v12 = vrot.slane %v8437_v51, 7  ;;  %v4022_v19 = vadd.f32 %v4021_v26, %v4020_v40  ;;  %v3813_v56 = vrot.slane %v8403_v14, 5 }
 0x369   : > { %v4017_v39 = vmul.f32 %v8242_v59, %v3845_v63  ;;  %v3732_v58 = vsel %vm394_vm0, %v3730_v11, %v3731_v3  ;;  %v4048_v20 = vadd.f32 %v4047_v36, %v4046_v5  ;;  %v4041_v1 = vmul.f32 %v8265_v10, %v3729_v8 }
 0x36a   : > { %v3846_v17 = vsel %vm394_vm0, %v3670_v46, %v3730_v11  ;;  %v4083_v2 = vsel %vm3882_vm10, %v4078_v29, 0.0  ;;  %v4099_v0 = vmul.f32 %v8226_v50, %v3860_v44  ;;  %v4105_v23 = vadd.f32 %v4104_v61, %v4103_v27 }
 0x36b   : > { %v8463_v51 = vsel %vm394_vm0, %v3733_v12, %v3734_v22  ;;  %v4023_v40 = vsel %vm3882_vm10, %v4017_v39, 0.0  ;;  %v3814_v26 = vrot.slane %v8414_v41, 5  ;;  %v8469_v5 = vsel %vm394_vm0, %v3671_v7, %v3733_v12 }
 0x36c   : > { %v3861_v36 = vsel %vm394_vm0, %v3728_v57, %v3813_v56  ;;  %v4079_v46 = vmul.f32 %v8242_v59, %v3729_v8  ;;  %v4018_v27 = vmul.f32 %v8248_v53, %v3846_v17  ;;  %v4058_v11 = vsel %vm3934_vm12, %v4041_v1, 0.0 }
 0x36d   : > { %v3815_v29 = vrot.slane %v8430_v54, 5  ;;  %v4045_v61 = vmul.f32 %v8276_v16, %v8463_v51  ;;  %v4084_v7 = vadd.f32 %v4083_v2, %v4082_v32  ;;  %v4113_v12 = vsel %vm3934_vm12, %v4099_v0, 0.0 }
 0x36e   : > { %v4024_v57 = vadd.f32 %v4023_v40, %v4022_v19  ;;  %v4019_v8 = vmul.f32 %v8253_v37, %v8469_v5  ;;  %v4100_v56 = vmul.f32 %v8265_v10, %v3861_v36  ;;  %v3862_v41 = vsel %vm394_vm0, %v3731_v3, %v3814_v26 }
 0x36f   : > { %v4044_v54 = vmul.f32 %v8276_v16, %v8469_v5  ;;  %v4025_v0 = vsel %vm3882_vm10, %v4018_v27, 0.0  ;;  %v4080_v19 = vmul.f32 %v8248_v53, %v3732_v58  ;;  %v4085_v2 = vsel %vm3882_vm10, %v4079_v46, 0.0 }
 0x370   : > { %v8497_v36 = vsel %vm394_vm0, %v3734_v22, %v3815_v29  ;;  %v4062_v3 = vsel %vm3934_vm12, %v4045_v61, 0.0  ;;  %v4106_v26 = vsel %vm3924_vm11, %v4041_v1, 0.0  ;;  %v4081_v46 = vmul.f32 %v8253_v37, %v8463_v51 }
 0x371   : > { %v8408_v33 = vpop.f32.mrb[32].mxu1  ;;  %v4087_v22 = vsel %vm3882_vm10, %v4080_v19, 0.0  ;;  %v4102_v1 = vmul.f32 %v8276_v16, %v8497_v36  ;;  %v4086_v29 = vadd.f32 %v4085_v2, %v4084_v7 }
 0x372   : > { %v3555_v25 = vpop.f32.mrb[33].mxu1 }
 0x373   : > { %v8424_v34 = vpop.f32.mrb[34].mxu1  ;;  %v4040_v25 = vmul.f32 %v8265_v10, %v3845_v63  ;;  %v4043_v63 = vmul.f32 %v8273_v43, %v3732_v58  ;;  %v4053_v58 = vsel %vm3924_vm11, %v4044_v54, 0.0 }
 0x374   : > { %v3558_v38 = vpop.f32.mrb[35].mxu1 }
 0x375   : > { %v4057_v38 = vadd.f32 %v4056_v31, %v4055_v6  ;;  %v4049_v6 = vsel %vm3924_vm11, %v4040_v25, 0.0  ;;  %v4042_v31 = vmul.f32 %v8273_v43, %v3846_v17  ;;  %v4060_v17 = vsel %vm3934_vm12, %v4043_v63, 0.0 }
 0x377   : > { %v4059_v32 = vadd.f32 %v4058_v11, %v4057_v38  ;;  %v4051_v40 = vsel %vm3924_vm11, %v4042_v31, 0.0  ;;  %v4115_v38 = vsel %vm3934_vm12, %v4100_v56, 0.0  ;;  %v3954_v31 = vrot.slane %v8432_v30, 2 }
 0x378   : > { %v4107_v56 = vadd.f32 %v4106_v26, %v4105_v23 }
 0x379   : > { %v4061_v24 = vadd.f32 %v4060_v17, %v4059_v32 }
 0x37b   : > { %v4063_v11 = vadd.f32 %v4062_v3, %v4061_v24  ;;  %v4110_v24 = vsel %vm3924_vm11, %v4045_v61, 0.0  ;;  %v3975_v3 = vrot.slane %v8426_v55, 2  ;;  %v3955_v61 = vadd.f32 %v3954_v31, %v8432_v30 }
 0x37c   : > { %v8531_v31 = vmax.f32 %v8408_v33, 0.0 }
 0x37d   : > { %v4067_v19 = vrot.slane %v4063_v11, 4 }
 0x37e   : > { %v8475_v44 = vpop.f32.mrb[36].mxu1  ;;  %9184 = vst [vmem:[#allocation15_spill] sm:$0xff] %v8531_v31 }
 0x37f   : > { %v3563_v39 = vpop.f32.mrb[37].mxu1 }
 0x380   : > { %v8485_v25 = vpop.f32.mrb[38].mxu1  ;;  %v4050_v39 = vadd.f32 %v4049_v6, %v4048_v20  ;;  %v4027_v20 = vsel %vm3882_vm10, %v4019_v8, 0.0  ;;  %v4026_v6 = vadd.f32 %v4025_v0, %v4024_v57  ;;  %v4108_v57 = vsel %vm3924_vm11, %v4043_v63, 0.0 }
 0x381   : > { %v3566_v14 = vpop.f32.mrb[39].mxu1  ;;  %v4089_v0 = vsel %vm3882_vm10, %v4081_v46, 0.0  ;;  %v6177_v63 = vmov 0.0   ;;  %v9183_v46 = vrot.slane %v8384_v60, 2 }
 0x382   : > { %v4101_v14 = vmul.f32 %v8273_v43, %v3862_v41  ;;  %v4052_v27 = vadd.f32 %v4051_v40, %v4050_v39  ;;  %v4114_v41 = vadd.f32 %v4113_v12, %v8399_v9  ;;  %v4028_v8 = vadd.f32 %v4027_v20, %v4026_v6  ;;  %4848 = vmatprep.mubr.msk.f32.mxu0 %vm6176_vm14, %v6177_v63 }
 0x383   : > { %v4088_v39 = vadd.f32 %v4087_v22, %v4086_v29  ;;  %v4119_v40 = vsel %vm3934_vm12, %v4102_v1, 0.0  ;;  %v4109_v9 = vadd.f32 %v4108_v57, %v4107_v56  ;;  %4851 = vmatprep.subr.mxu1 %v6177_v63  ;;  %v9182_v12 = vrot.slane %v8417_v28, 4  ;;  %4853 = vmatprep.mubr.msk.f32.mxu1 %vm6176_vm14, %v6177_v63 }
 0x384   : > { %v4117_v54 = vsel %vm3934_vm12, %v4101_v14, 0.0  ;;  %v4054_v17 = vadd.f32 %v4053_v58, %v4052_v27  ;;  %v4116_v32 = vadd.f32 %v4115_v38, %v4114_v41  ;;  %v4029_v23 = vsel %vm3882_vm10, %v4028_v8, 0.0 }
 0x385   : > { %v4010_v2 = vadd.f32 %v9182_v12, %v8417_v28  ;;  %v4090_v14 = vadd.f32 %v4089_v0, %v4088_v39  ;;  %v4111_v20 = vadd.f32 %v4110_v24, %v4109_v9  ;;  %v4030_v6 = vrot.slane %v4029_v23, 4 }
 0x386   : > { %v4118_v7 = vadd.f32 %v4117_v54, %v4116_v32  ;;  %v4066_v26 = vrot.slane %v4054_v17, 4  ;;  %v3896_v27 = vadd.f32 %v9183_v46, %v8384_v60  ;;  %v3976_v22 = vadd.f32 %v3975_v3, %v8426_v55 }
 0x387   : > { %v4011_v11 = vrot.slane %v4010_v2, 2  ;;  %v4091_v1 = vsel %vm3882_vm10, %v4090_v14, 0.0  ;;  %v3956_v28 = vrot.slane %v3955_v61, 1  ;;  %v4123_v29 = vrot.slane %v4111_v20, 4 }
 0x388   : > { %v4120_v38 = vadd.f32 %v4119_v40, %v4118_v7  ;;  %v4068_v58 = vsel %vm3946_vm13, %v4066_v26, %v4067_v19  ;;  %v4031_v30 = vadd.f32 %v4030_v6, %v4029_v23  ;;  %v3897_v57 = vrot.slane %v3896_v27, 1 }
 0x389   : > { %v4070_v41 = vsel %vm3882_vm10, %v4068_v58, 0.0  ;;  %v3977_v54 = vrot.slane %v3976_v22, 1  ;;  %v4092_v17 = vrot.slane %v4091_v1, 4  ;;  %v8533_v60 = vadd.f32 %v4011_v11, %v4010_v2 }
 0x38a   : > { %v4124_v8 = vrot.slane %v4120_v38, 4  ;;  %v4071_v55 = vrot.slane %v4070_v41, 4  ;;  %v3957_v0 = vadd.f32 %v3956_v28, %v3955_v61  ;;  %v4134_v24 = vmul.f32 %v8237_v62, %v8469_v5 }
 0x38b   : > { %v4217_v40 = vmul.f32 %v8262_v42, %v8497_v36  ;;  %v4032_v3 = vrot.slane %v4031_v30, 2  ;;  %v3672_v9 = vrot.slane %v8531_v31, 1  ;;  %v3736_v7 = vrot.slane %v8531_v31, 7 }
 0x38c   : > { %v4125_v19 = vsel %vm3946_vm13, %v4123_v29, %v4124_v8  ;;  %v8543_v23 = vmax.f32 %v8424_v34, 0.0  ;;  %v3898_v63 = vadd.f32 %v3897_v57, %v3896_v27  ;;  %v8545_v12 = vadd.f32 %v3977_v54, %v3976_v22 }
 0x38d   : > { %v4155_v2 = vmul.f32 %v8262_v42, %v8469_v5  ;;  %v4093_v26 = vadd.f32 %v4092_v17, %v4091_v1  ;;  %v4072_v61 = vadd.f32 %v4071_v55, %v4070_v41  ;;  %v4127_v36 = vsel %vm3882_vm10, %v4125_v19, 0.0 }
 0x38e   : > { %9185 = vst [vmem:[#allocation16_spill] sm:$0xff] %v8543_v23  ;;  %v4156_v20 = vmul.f32 %v8262_v42, %v8463_v51  ;;  %v8554_v38 = vsel %vm394_vm0, %v3898_v63, %v3957_v0  ;;  %v4196_v34 = vmul.f32 %v8237_v62, %v8463_v51  ;;  %v8559_v6 = vsel %vm3934_vm12, %v4217_v40, 0.0 }
 0x38f   : > { %v4139_v5 = vsel %vm3882_vm10, %v4134_v24, 0.0  ;;  %v8562_v58 = vadd.f32 %v4032_v3, %v4031_v30  ;;  %v3848_v46 = vsel %vm394_vm0, %v3672_v9, %v3736_v7  ;;  %v3737_v27 = vrot.slane %v8543_v23, 7 }
 0x390   : > { %v8567_v22 = vmax.f32 %v8485_v25, 0.0  ;;  %v4094_v11 = vrot.slane %v4093_v26, 2  ;;  %v4128_v1 = vrot.slane %v4127_v36, 4  ;;  %v4165_v28 = vsel %vm3924_vm11, %v4155_v2, 0.0 }
 0x391   : > { %v3569_v56 = vpop.f32.mrb[40].mxu1  ;;  %v8571_v51 = vmax.f32 %v8475_v44, 0.0  ;;  %v4073_v41 = vrot.slane %v4072_v61, 2  ;;  %v3816_v29 = vrot.slane %v8543_v23, 5  ;;  %v4174_v8 = vsel %vm3934_vm12, %v4156_v20, 0.0 }
 0x392   : > { %v3571_v32 = vpop.f32.mrb[41].mxu1  ;;  %9186 = vst [vmem:[#allocation17_spill] sm:$0xff] %v8567_v22  ;;  %v4135_v57 = vmul.f32 %v8220_v48, %v3848_v46  ;;  %v4157_v54 = vmul.f32 %v8226_v50, %v3848_v46  ;;  %v8580_v25 = vsel %vm3882_vm10, %v4196_v34, 0.0  ;;  %v4222_v17 = vsel %vm3924_vm11, %v4156_v20, 0.0 }
 0x393   : > { %v3572_v39 = vpop.f32.mrb[42].mxu1  ;;  %9187 = vst [vmem:[#allocation18_spill] sm:$0xff] %v8571_v51  ;;  %v3738_v44 = vsel %vm394_vm0, %v3736_v7, %v3737_v27  ;;  %v3740_v55 = vrot.slane %v8567_v22, 7  ;;  %v8586_v0 = vmax.f32 %v3569_v56, 0.0  ;;  %v8588_v24 = vadd.f32 %v4094_v11, %v4093_v26 }
 0x394   : > { %v3574_v33 = vpop.f32.mrb[43].mxu1  ;;  %v8575_v30 = vmax.f32 %v3572_v39, 0.0  ;;  %v8590_v39 = vadd.f32 %v4128_v1, %v4127_v36  ;;  %v3673_v19 = vrot.slane %v8571_v51, 1  ;;  %v3739_v40 = vrot.slane %v8571_v51, 7 }
 0x395   : > { %9189 = vst [vmem:[#allocation20_spill] sm:$0xff] %v8586_v0  ;;  %v8594_v3 = vadd.f32 %v4073_v41, %v4072_v61  ;;  %v3864_v9 = vsel %vm394_vm0, %v3737_v27, %v3816_v29  ;;  %v4140_v56 = vsel %vm3882_vm10, %v4135_v57, 0.0  ;;  %v4166_v26 = vsel %vm3924_vm11, %v4157_v54, 0.0 }
 0x396   : > { %9188 = vst [vmem:[#allocation19_spill] sm:$0xff] %v8575_v30  ;;  %v3743_v63 = vrot.slane %v8575_v30, 7  ;;  %v4158_v36 = vmul.f32 %v8226_v50, %v3738_v44  ;;  %v3817_v20 = vrot.slane %v8567_v22, 5  ;;  %v3741_v46 = vsel %vm394_vm0, %v3739_v40, %v3740_v55 }
 0x397   : > { %v3674_v61 = vrot.slane %v8586_v0, 1  ;;  %v3742_v27 = vrot.slane %v8586_v0, 7  ;;  %v4197_v41 = vmul.f32 %v8220_v48, %v3738_v44  ;;  %v4218_v29 = vmul.f32 %v8226_v50, %v3864_v9 }
 0x398   : > { %v3849_v57 = vsel %vm394_vm0, %v3673_v19, %v3739_v40  ;;  %v3818_v54 = vrot.slane %v8575_v30, 5  ;;  %v4141_v0 = vadd.f32 %v4140_v56, %v4139_v5  ;;  %v4160_v44 = vmul.f32 %v8265_v10, %v3741_v46 }
 0x399   : > { %v3865_v9 = vsel %vm394_vm0, %v3740_v55, %v3817_v20  ;;  %v3850_v19 = vsel %vm394_vm0, %v3674_v61, %v3742_v27  ;;  %v4223_v5 = vsel %vm3924_vm11, %v4158_v36, 0.0  ;;  %v4159_v56 = vmul.f32 %v8265_v10, %v3849_v57 }
 0x39a   : > { %v4202_v20 = vsel %vm3882_vm10, %v4197_v41, 0.0  ;;  %v3866_v61 = vsel %vm394_vm0, %v3743_v63, %v3818_v54  ;;  %v4224_v51 = vadd.f32 %v4223_v5, %v4222_v17  ;;  %v4198_v17 = vmul.f32 %v8242_v59, %v3741_v46 }
 0x39b   : > { %v4220_v54 = vmul.f32 %v8273_v43, %v3866_v61 }
 0x39e   : > { %v3577_v33 = vpop.f32.mrb[44].mxu1 }
 0x39f   : > { %v8598_v7 = vmax.f32 %v3577_v33, 0.0  ;;  %v3579_v2 = vpop.f32.mrb[45].mxu1  ;;  %v3744_v33 = vsel %vm394_vm0, %v3742_v27, %v3743_v63 }
 0x3a0   : > { %v3580_v34 = vpop.f32.mrb[46].mxu1 }
 0x3a1   : > { %9190 = vst [vmem:[#allocation21_spill] sm:$0xff] %v8598_v7  ;;  %v8607_v11 = vmax.f32 %v3580_v34, 0.0  ;;  %v3582_v1 = vpop.f32.mrb[47].mxu1  ;;  %v3675_v2 = vrot.slane %v8598_v7, 1  ;;  %v3745_v32 = vrot.slane %v8598_v7, 7  ;;  %v4167_v34 = vadd.f32 %v4166_v26, %v4165_v28 }
 0x3a2   : > { %v4175_v1 = vsel %vm3934_vm12, %v4158_v36, 0.0  ;;  %v4499_v7 = vld [vmem:[%s9087_s6] sm:$0xf]  ;;  %v4232_v28 = vsel %vm3934_vm12, %v4218_v29, 0.0  ;;  %v4162_v26 = vmul.f32 %v8273_v43, %v3744_v33  ;;  %v4219_v36 = vmul.f32 %v8265_v10, %v3865_v9 }
 0x3a3   : > { %9191 = vst [vmem:[#allocation22_spill] sm:$0xff] %v8607_v11  ;;  %v3746_v14 = vrot.slane %v8607_v11, 7  ;;  %v3819_v30 = vrot.slane %v8607_v11, 5  ;;  %4852 = vmatpush3.msk.msra.mxu1 %vm3946_vm13, %v4499_v7  ;;  %v4176_v55 = vadd.f32 %v4175_v1, %v4174_v8  ;;  %v8636_v27 = vsel %vm394_vm0, %v3675_v2, %v3745_v32 }
 0x3a4   : > { %v4177_v11 = vsel %vm3934_vm12, %v4160_v44, 0.0  ;;  %v4161_v29 = vmul.f32 %v8273_v43, %v3850_v19  ;;  %v4233_v7 = vadd.f32 %v4232_v28, %v8559_v6  ;;  %v4136_v8 = vmul.f32 %v8242_v59, %v3849_v57 }
 0x3a5   : > { %v8622_v40 = vsel %vm394_vm0, %v3745_v32, %v3746_v14  ;;  %v8646_v41 = vsel %vm394_vm0, %v3746_v14, %v3819_v30  ;;  %v4168_v32 = vsel %vm3924_vm11, %v4159_v56, 0.0  ;;  %v4179_v63 = vsel %vm3934_vm12, %v4162_v26, 0.0 }
 0x3a6   : > { %v4164_v22 = vmul.f32 %v8276_v16, %v8622_v40  ;;  %v4163_v2 = vmul.f32 %v8276_v16, %v8636_v27  ;;  %v4178_v1 = vadd.f32 %v4177_v11, %v4176_v55  ;;  %v4225_v6 = vsel %vm3924_vm11, %v4160_v44, 0.0 }
 0x3a7   : > { %v4137_v57 = vmul.f32 %v8248_v53, %v3850_v19  ;;  %v4234_v14 = vsel %vm3934_vm12, %v4219_v36, 0.0  ;;  %v4170_v30 = vsel %vm3924_vm11, %v4161_v29, 0.0  ;;  %v4221_v5 = vmul.f32 %v8276_v16, %v8646_v41 }
 0x3a8   : > { %v4181_v9 = vsel %vm3934_vm12, %v4164_v22, 0.0  ;;  %v4142_v28 = vsel %vm3882_vm10, %v4136_v8, 0.0  ;;  %v4169_v56 = vadd.f32 %v4168_v32, %v4167_v34  ;;  %v4180_v11 = vadd.f32 %v4179_v63, %v4178_v1 }
 0x3a9   : > { %v4138_v59 = vmul.f32 %v8253_v37, %v8636_v27  ;;  %v4226_v44 = vadd.f32 %v4225_v6, %v4224_v51  ;;  %v4227_v19 = vsel %vm3924_vm11, %v4162_v26, 0.0  ;;  %v4236_v55 = vsel %vm3934_vm12, %v4220_v54, 0.0 }
 0x3aa   : > { %v4172_v61 = vsel %vm3924_vm11, %v4163_v2, 0.0  ;;  %v4235_v29 = vadd.f32 %v4234_v14, %v4233_v7  ;;  %v4144_v23 = vsel %vm3882_vm10, %v4137_v57, 0.0  ;;  %v4171_v31 = vadd.f32 %v4170_v30, %v4169_v56 }
 0x3ab   : > { %v4182_v49 = vadd.f32 %v4181_v9, %v4180_v11  ;;  %v4143_v34 = vadd.f32 %v4142_v28, %v4141_v0  ;;  %v4199_v32 = vmul.f32 %v8248_v53, %v3744_v33  ;;  %v4229_v63 = vsel %vm3924_vm11, %v4164_v22, 0.0 }
 0x3ac   : > { %v4238_v51 = vsel %vm3934_vm12, %v4221_v5, 0.0  ;;  %v4228_v26 = vadd.f32 %v4227_v19, %v4226_v44  ;;  %v4237_v6 = vadd.f32 %v4236_v55, %v4235_v29  ;;  %v4146_v54 = vsel %vm3882_vm10, %v4138_v59, 0.0 }
 0x3ad   : > { %v3585_v46 = vpop.f32.mrb[48].mxu1  ;;  %v4173_v2 = vadd.f32 %v4172_v61, %v4171_v31  ;;  %v4075_v7 = vrot.slane %v8594_v3, 1  ;;  %v4130_v57 = vrot.slane %v8590_v39, 2  ;;  %v4204_v14 = vsel %vm3882_vm10, %v4198_v17, 0.0 }
 0x3ae   : > { %v3587_v36 = vpop.f32.mrb[49].mxu1  ;;  %v4145_v30 = vadd.f32 %v4144_v23, %v4143_v34  ;;  %v4186_v0 = vrot.slane %v4182_v49, 4  ;;  %v4200_v53 = vmul.f32 %v8253_v37, %v8622_v40  ;;  %v4230_v22 = vadd.f32 %v4229_v63, %v4228_v26 }
 0x3af   : > { %v3588_v8 = vpop.f32.mrb[50].mxu1  ;;  %v4239_v33 = vadd.f32 %v4238_v51, %v4237_v6  ;;  %v9192_v9 = vrot.slane %v8533_v60, 1  ;;  %v4203_v31 = vadd.f32 %v4202_v20, %v8580_v25  ;;  %v4374_v56 = vsel %vm4373_vm15, %v8554_v38, %v8545_v12 }
 0x3b0   : > { %v3590_v1 = vpop.f32.mrb[51].mxu1  ;;  %v4147_v28 = vadd.f32 %v4146_v54, %v4145_v30  ;;  %v9193_v49 = vrot.slane %v8562_v58, 1  ;;  %v4206_v37 = vsel %vm3882_vm10, %v4199_v32, 0.0  ;;  %v4185_v17 = vrot.slane %v4173_v2, 4 }
 0x3b1   : > { %v4014_v5 = vadd.f32 %v9192_v9, %v8533_v60  ;;  %v4076_v11 = vadd.f32 %v4075_v7, %v8594_v3  ;;  %v4096_v59 = vrot.slane %v8588_v24, 1  ;;  %v4131_v60 = vadd.f32 %v4130_v57, %v8590_v39 }
 0x3b2   : > { %v4035_v23 = vadd.f32 %v9193_v49, %v8562_v58  ;;  %v4205_v44 = vadd.f32 %v4204_v14, %v4203_v31  ;;  %v4187_v25 = vsel %vm3946_vm13, %v4185_v17, %v4186_v0  ;;  %v4208_v20 = vsel %vm3882_vm10, %v4200_v53, 0.0 }
 0x3b3   : > { %v4242_v19 = vrot.slane %v4230_v22, 4  ;;  %v4243_v12 = vrot.slane %v4239_v33, 4  ;;  %v4376_v38 = vsel %vm4375_vm4, %v4374_v56, %v4014_v5  ;;  %v4148_v58 = vsel %vm3882_vm10, %v4147_v28, 0.0 }
 0x3b4   : > { %v4207_v55 = vadd.f32 %v4206_v37, %v4205_v44  ;;  %v8695_v61 = vmax.f32 %v3585_v46, 0.0  ;;  %v4377_v3 = vsel %vm3946_vm13, %v4376_v38, %v4035_v23  ;;  %v4132_v36 = vrot.slane %v4131_v60, 1 }
 0x3b5   : > { %v4379_v29 = vsel %vm4378_vm5, %v4377_v3, %v4076_v11  ;;  %v4189_v39 = vsel %vm3882_vm10, %v4187_v25, 0.0  ;;  %v4097_v32 = vadd.f32 %v4096_v59, %v8588_v24  ;;  %v4149_v63 = vrot.slane %v4148_v58, 4 }
 0x3b6   : > { %v4209_v34 = vadd.f32 %v4208_v20, %v4207_v55  ;;  %v4244_v51 = vsel %vm3946_vm13, %v4242_v19, %v4243_v12  ;;  %v3676_v1 = vrot.slane %v8695_v61, 1  ;;  %v3748_v26 = vrot.slane %v8695_v61, 7 }
 0x3b7   : > { %v8704_v6 = vmax.f32 %v3588_v8, 0.0  ;;  %v4380_v54 = vsel %vm660_vm2, %v4379_v29, %v4097_v32  ;;  %v4190_v2 = vrot.slane %v4189_v39, 4  ;;  %v4133_v57 = vadd.f32 %v4132_v36, %v4131_v60 }
 0x3b8   : > { %v4210_v14 = vsel %vm3882_vm10, %v4209_v34, 0.0  ;;  %v4246_v30 = vsel %vm3882_vm10, %v4244_v51, 0.0  ;;  %v4150_v0 = vadd.f32 %v4149_v63, %v4148_v58  ;;  %v4253_v53 = vmul.f32 %v8237_v62, %v8636_v27 }
 0x3b9   : > { %v8712_v33 = vsel %vm584_vm1, %v4380_v54, %v4133_v57  ;;  %v3852_v8 = vsel %vm394_vm0, %v3676_v1, %v3748_v26  ;;  %v3749_v9 = vrot.slane %v8704_v6, 7  ;;  %v4191_v31 = vadd.f32 %v4190_v2, %v4189_v39  ;;  %v6030_v54 = vld [vmem:[%s9084_s3 + $0x8] sm:$0x1f] }
 0x3ba   : > { %v3593_v46 = vpop.f32.mrb[52].mxu1  ;;  %v4211_v28 = vrot.slane %v4210_v14, 4  ;;  %v4247_v56 = vrot.slane %v4246_v30, 4  ;;  %v4336_v49 = vmul.f32 %v8262_v42, %v8646_v41  ;;  %v4274_v23 = vmul.f32 %v8262_v42, %v8636_v27 }
 0x3bb   : > { %v3595_v7 = vpop.f32.mrb[53].mxu1  ;;  %v8716_v5 = vmax.f32 %v3593_v46, 0.0  ;;  %v4275_v37 = vmul.f32 %v8262_v42, %v8622_v40  ;;  %v4315_v17 = vmul.f32 %v8237_v62, %v8622_v40  ;;  %v4151_v59 = vrot.slane %v4150_v0, 2 }
 0x3bc   : > { %v3596_v24 = vpop.f32.mrb[54].mxu1  ;;  %v4254_v60 = vmul.f32 %v8220_v48, %v3852_v8  ;;  %v4258_v44 = vsel %vm3882_vm10, %v4253_v53, 0.0  ;;  %v3820_v25 = vrot.slane %v8704_v6, 5  ;;  %v4276_v41 = vmul.f32 %v8226_v50, %v3852_v8  ;;  %v6031_v8 = vld [vmem:[%s9084_s3 + $0x10] sm:$0x1f] }
 0x3bd   : > { %v3598_v22 = vpop.f32.mrb[55].mxu1  ;;  %v8726_v11 = vmax.f32 %v3596_v24, 0.0  ;;  %v3750_v20 = vsel %vm394_vm0, %v3748_v26, %v3749_v9  ;;  %v3677_v27 = vrot.slane %v8716_v5, 1  ;;  %v3751_v42 = vrot.slane %v8716_v5, 7 }
 0x3be   : > { %v4192_v19 = vrot.slane %v4191_v31, 2  ;;  %v8735_v12 = vadd.f32 %v4211_v28, %v4210_v14  ;;  %v8737_v62 = vadd.f32 %v4247_v56, %v4246_v30  ;;  %v4350_v40 = vsel %vm3934_vm12, %v4336_v49, 0.0 }
 0x3bf   : > { %v4284_v48 = vsel %vm3924_vm11, %v4274_v23, 0.0  ;;  %v4293_v38 = vsel %vm3934_vm12, %v4275_v37, 0.0  ;;  %v4320_v55 = vsel %vm3882_vm10, %v4315_v17, 0.0  ;;  %v3752_v58 = vrot.slane %v8726_v11, 7 }
 0x3c0   : > { %v4259_v3 = vsel %vm3882_vm10, %v4254_v60, 0.0  ;;  %v3868_v36 = vsel %vm394_vm0, %v3749_v9, %v3820_v25  ;;  %v4277_v29 = vmul.f32 %v8226_v50, %v3750_v20  ;;  %v4341_v39 = vsel %vm3924_vm11, %v4275_v37, 0.0 }
 0x3c1   : > { %v8748_v34 = vadd.f32 %v4151_v59, %v4150_v0  ;;  %v4285_v32 = vsel %vm3924_vm11, %v4276_v41, 0.0  ;;  %v3853_v63 = vsel %vm394_vm0, %v3677_v27, %v3751_v42  ;;  %v3821_v51 = vrot.slane %v8726_v11, 5 }
 0x3c2   : > { %v8753_v1 = vadd.f32 %v4192_v19, %v4191_v31  ;;  %v4213_v26 = vrot.slane %v8735_v12, 2  ;;  %v4249_v46 = vrot.slane %v8737_v62, 2  ;;  %v4316_v2 = vmul.f32 %v6030_v54, %v3750_v20 }
 0x3c3   : > { %v4260_v57 = vadd.f32 %v4259_v3, %v4258_v44  ;;  %v4337_v14 = vmul.f32 %v8226_v50, %v3868_v36  ;;  %v3753_v30 = vsel %vm394_vm0, %v3751_v42, %v3752_v58  ;;  %v4286_v53 = vadd.f32 %v4285_v32, %v4284_v48 }
 0x3c4   : > { %v4294_v22 = vsel %vm3934_vm12, %v4277_v29, 0.0  ;;  %v4255_v9 = vmul.f32 %v6031_v8, %v3853_v63  ;;  %v4278_v31 = vmul.f32 %v8265_v10, %v3853_v63  ;;  %v3869_v56 = vsel %vm394_vm0, %v3752_v58, %v3821_v51  ;;  %v6032_v58 = vld [vmem:[%s9084_s3 + $0x18] sm:$0x1f] }
 0x3c5   : > { %v3601_v7 = vpop.f32.mrb[56].mxu1  ;;  %v4321_v17 = vsel %vm3882_vm10, %v4316_v2, 0.0  ;;  %v4342_v59 = vsel %vm3924_vm11, %v4277_v29, 0.0  ;;  %v4279_v60 = vmul.f32 %v8265_v10, %v3753_v30  ;;  %v4317_v44 = vmul.f32 %v6031_v8, %v3753_v30 }
 0x3c6   : > { %v8762_v24 = vmax.f32 %v3601_v7, 0.0  ;;  %v3603_v0 = vpop.f32.mrb[57].mxu1  ;;  %v4351_v25 = vsel %vm3934_vm12, %v4337_v14, 0.0  ;;  %v4261_v42 = vsel %vm3882_vm10, %v4255_v9, 0.0  ;;  %v4287_v19 = vsel %vm3924_vm11, %v4278_v31, 0.0 }
 0x3c7   : > { %v3604_v28 = vpop.f32.mrb[58].mxu1  ;;  %v4338_v48 = vmul.f32 %v8265_v10, %v3869_v56  ;;  %v4295_v36 = vadd.f32 %v4294_v22, %v4293_v38  ;;  %v4343_v29 = vadd.f32 %v4342_v59, %v4341_v39  ;;  %v4322_v51 = vadd.f32 %v4321_v17, %v4320_v55 }
 0x3c8   : > { %v3678_v50 = vrot.slane %v8762_v24, 1  ;;  %v3754_v49 = vrot.slane %v8762_v24, 7  ;;  %v8772_v23 = vmax.f32 %v3604_v28, 0.0  ;;  %v3606_v37 = vpop.f32.mrb[59].mxu1  ;;  %v4352_v54 = vadd.f32 %v4351_v25, %v4350_v40 }
 0x3c9   : > { %v4296_v2 = vsel %vm3934_vm12, %v4279_v60, 0.0  ;;  %v4323_v7 = vsel %vm3882_vm10, %v4317_v44, 0.0  ;;  %v4262_v14 = vadd.f32 %v4261_v42, %v4260_v57  ;;  %v4288_v30 = vadd.f32 %v4287_v19, %v4286_v53 }
 0x3ca   : > { %v3854_v41 = vsel %vm394_vm0, %v3678_v50, %v3754_v49  ;;  %v3755_v20 = vrot.slane %v8772_v23, 7  ;;  %v3822_v27 = vrot.slane %v8772_v23, 5  ;;  %v4344_v38 = vsel %vm3924_vm11, %v4279_v60, 0.0 }
 0x3cb   : > { %v4256_v3 = vmul.f32 %v6032_v58, %v3854_v41  ;;  %v4280_v32 = vmul.f32 %v8273_v43, %v3854_v41  ;;  %v4353_v39 = vsel %vm3934_vm12, %v4338_v48, 0.0  ;;  %v4297_v55 = vadd.f32 %v4296_v2, %v4295_v36  ;;  %v6033_v48 = vld [vmem:[%s9084_s3 + $0x20] sm:$0x1f] }
 0x3cc   : > { %v3756_v63 = vsel %vm394_vm0, %v3754_v49, %v3755_v20  ;;  %v3870_v10 = vsel %vm394_vm0, %v3755_v20, %v3822_v27  ;;  %v4324_v31 = vadd.f32 %v4323_v7, %v4322_v51  ;;  %v4345_v59 = vadd.f32 %v4344_v38, %v4343_v29 }
 0x3cd   : > { %v4281_v0 = vmul.f32 %v8273_v43, %v3756_v63  ;;  %v4263_v22 = vsel %vm3882_vm10, %v4256_v3, 0.0  ;;  %v4289_v28 = vsel %vm3924_vm11, %v4280_v32, 0.0  ;;  %v4318_v57 = vmul.f32 %v6032_v58, %v3756_v63 }
 0x3ce   : > { %v4339_v56 = vmul.f32 %v8273_v43, %v3870_v10  ;;  %v4354_v60 = vadd.f32 %v4353_v39, %v4352_v54  ;;  %v4264_v44 = vadd.f32 %v4263_v22, %v4262_v14  ;;  %v4290_v41 = vadd.f32 %v4289_v28, %v4288_v30 }
 0x3cf   : > { %v4298_v25 = vsel %vm3934_vm12, %v4281_v0, 0.0  ;;  %v4325_v43 = vsel %vm3882_vm10, %v4318_v57, 0.0  ;;  %v4346_v19 = vsel %vm3924_vm11, %v4281_v0, 0.0 }
 0x3d0   : > { %v3609_v8 = vpop.f32.mrb[60].mxu1  ;;  %v4299_v36 = vadd.f32 %v4298_v25, %v4297_v55  ;;  %v4355_v29 = vsel %vm3934_vm12, %v4339_v56, 0.0  ;;  %v4326_v14 = vadd.f32 %v4325_v43, %v4324_v31 }
 0x3d1   : > { %v8796_v9 = vmax.f32 %v3609_v8, 0.0  ;;  %v3611_v40 = vpop.f32.mrb[61].mxu1  ;;  %v4347_v8 = vadd.f32 %v4346_v19, %v4345_v59 }
 0x3d2   : > { %v3612_v53 = vpop.f32.mrb[62].mxu1  ;;  %v4356_v40 = vadd.f32 %v4355_v29, %v4354_v60  ;;  %v4828_v29 = vld [vmem:[%s9085_s4] ss:$0 sm:$0xff] }
 0x3d3   : > { %v3679_v50 = vrot.slane %v8796_v9, 1  ;;  %v3757_v49 = vrot.slane %v8796_v9, 7  ;;  %v8802_v37 = vmax.f32 %v3612_v53, 0.0  ;;  %v3614_v17 = vpop.f32.mrb[63].mxu1  ;;  %v4194_v53 = vrot.slane %v8753_v1, 1 }
 0x3d5   : > { %v3855_v20 = vsel %vm394_vm0, %v3679_v50, %v3757_v49  ;;  %v3758_v27 = vrot.slane %v8802_v37, 7  ;;  %v3823_v42 = vrot.slane %v8802_v37, 5 }
 0x3d6   : > { %v4257_v58 = vmul.f32 %v6033_v48, %v3855_v20  ;;  %v4282_v3 = vmul.f32 %v8276_v16, %v3855_v20  ;;  %v4153_v20 = vrot.slane %v8748_v34, 1 }
 0x3d7   : > { %v3759_v32 = vsel %vm394_vm0, %v3757_v49, %v3758_v27  ;;  %v3871_v63 = vsel %vm394_vm0, %v3758_v27, %v3823_v42 }
 0x3d8   : > { %v4265_v51 = vsel %vm3882_vm10, %v4257_v58, 0.0  ;;  %v4291_v54 = vsel %vm3924_vm11, %v4282_v3, 0.0  ;;  %v4283_v2 = vmul.f32 %v8276_v16, %v3759_v32  ;;  %v4319_v7 = vmul.f32 %v6033_v48, %v3759_v32 }
 0x3d9   : > { %v4266_v30 = vadd.f32 %v4265_v51, %v4264_v44  ;;  %v4292_v10 = vadd.f32 %v4291_v54, %v4290_v41  ;;  %v4340_v0 = vmul.f32 %v8276_v16, %v3871_v63  ;;  %v4214_v44 = vadd.f32 %v4213_v26, %v8735_v12 }
 0x3da   : > { %v4300_v38 = vsel %vm3934_vm12, %v4283_v2, 0.0  ;;  %v4327_v39 = vsel %vm3882_vm10, %v4319_v7, 0.0  ;;  %v4348_v22 = vsel %vm3924_vm11, %v4283_v2, 0.0  ;;  %v4389_v58 = vmax.f32 %v8712_v33, 0.0 }
 0x3db   : > { %v4267_v55 = vsel %vm3882_vm10, %v4266_v30, 0.0  ;;  %v4301_v28 = vadd.f32 %v4300_v38, %v4299_v36  ;;  %v4328_v57 = vadd.f32 %v4327_v39, %v4326_v14  ;;  %v4349_v31 = vadd.f32 %v4348_v22, %v4347_v8 }
 0x3dc   : > { %v4268_v56 = vrot.slane %v4267_v55, 4  ;;  %v4357_v50 = vsel %vm3934_vm12, %v4340_v0, 0.0  ;;  %v4304_v49 = vrot.slane %v4292_v10, 4  ;;  %v4195_v3 = vadd.f32 %v4194_v53, %v8753_v1 }
 0x3dd   : > { %v4305_v16 = vrot.slane %v4301_v28, 4  ;;  %v4329_v17 = vsel %vm3882_vm10, %v4328_v57, 0.0  ;;  %v4358_v59 = vadd.f32 %v4357_v50, %v4356_v40  ;;  %v4361_v41 = vrot.slane %v4349_v31, 4 }
 0x3de   : > { %v4269_v60 = vadd.f32 %v4268_v56, %v4267_v55  ;;  %v4330_v25 = vrot.slane %v4329_v17, 4  ;;  %v4250_v12 = vadd.f32 %v4249_v46, %v8737_v62  ;;  %v4215_v32 = vrot.slane %v4214_v44, 1 }
 0x3df   : > { %v4306_v27 = vsel %vm3946_vm13, %v4304_v49, %v4305_v16  ;;  %v4362_v42 = vrot.slane %v4358_v59, 4  ;;  %v4154_v33 = vadd.f32 %v4153_v20, %v8748_v34  ;;  %v4398_v30 = vmul.f32 %v4828_v29, %v4389_v58 }
 0x3e0   : > { %v4270_v43 = vrot.slane %v4269_v60, 2  ;;  %v4308_v19 = vsel %vm3882_vm10, %v4306_v27, 0.0  ;;  %v4331_v48 = vadd.f32 %v4330_v25, %v4329_v17  ;;  %v4251_v62 = vrot.slane %v4250_v12, 1 }
 0x3e1   : > { %v4309_v26 = vrot.slane %v4308_v19, 4  ;;  %v4363_v36 = vsel %vm3946_vm13, %v4361_v41, %v4362_v42  ;;  %v4382_v46 = vsel %vm394_vm0, %v4154_v33, %v4195_v3  ;;  %v4216_v8 = vadd.f32 %v4215_v32, %v4214_v44 }
 0x3e2   : > { %v4271_v63 = vadd.f32 %v4270_v43, %v4269_v60  ;;  %v4332_v51 = vrot.slane %v4331_v48, 2  ;;  %v4365_v54 = vsel %vm3882_vm10, %v4363_v36, 0.0  ;;  %v4400_v28 = vsub.f32 0.0, %v4398_v30 }
 0x3e3   : > { %v4310_v2 = vadd.f32 %v4309_v26, %v4308_v19  ;;  %v4366_v1 = vrot.slane %v4365_v54, 4  ;;  %v4383_v22 = vsel %vm4373_vm15, %v4382_v46, %v4216_v8  ;;  %v4252_v57 = vadd.f32 %v4251_v62, %v4250_v12 }
 0x3e4   : > { %v4272_v7 = vrot.slane %v4271_v63, 1  ;;  %v4333_v14 = vadd.f32 %v4332_v51, %v4331_v48  ;;  %v4402_v17 = vmul.f32 1.442695, %v4400_v28  ;;  %vm4500_vm0 = vcmask 31744  }
 0x3e5   : > { %v4311_v10 = vrot.slane %v4310_v2, 2  ;;  %v4367_v0 = vadd.f32 %v4366_v1, %v4365_v54  ;;  %v4384_v56 = vsel %vm4375_vm4, %v4383_v22, %v4252_v57 }
 0x3e6   : > { %v4273_v40 = vadd.f32 %v4272_v7, %v4271_v63  ;;  %v4334_v55 = vrot.slane %v4333_v14, 1  ;;  %6018 = vpow2.f32 %v4402_v17 }
 0x3e7   : > { %v4312_v38 = vadd.f32 %v4311_v10, %v4310_v2  ;;  %v4368_v39 = vrot.slane %v4367_v0, 2 }
 0x3e8   : > { %v4385_v49 = vsel %vm3946_vm13, %v4384_v56, %v4273_v40  ;;  %v4335_v16 = vadd.f32 %v4334_v55, %v4333_v14  ;;  %v4582_v40 = vlaneseq }
 0x3e9   : > { %v4313_v34 = vrot.slane %v4312_v38, 1  ;;  %v4369_v53 = vadd.f32 %v4368_v39, %v4367_v0 }
 0x3ea   : > { %v4583_v55 = vshrl.u32 %v4582_v40, 7 }
 0x3eb   : > { %v4314_v31 = vadd.f32 %v4313_v34, %v4312_v38  ;;  %v4370_v50 = vrot.slane %v4369_v53, 1 }
 0x3ec   : > { %v4584_v28 = vsub.s32 0, %v4583_v55  ;;  %v6040_v55 = vld [vmem:[%s6331_s15 + $0x30] sm:$0xff] }
 0x3ed   : > { %v4371_v59 = vadd.f32 %v4370_v50, %v4369_v53  ;;  %v4386_v44 = vsel %vm4378_vm5, %v4385_v49, %v4314_v31 }
 0x3ee   : > { %v4387_v60 = vsel %vm660_vm2, %v4386_v44, %v4335_v16 }
 0x3ef   : > { %v4388_v25 = vsel %vm584_vm1, %v4387_v60, %v4371_v59  ;;  %v9194_v60 = vld [vmem:[#allocation8_spill] sm:$0xff] }
 0x3f0   : > { %v4390_v41 = vmax.f32 %v4388_v25, 0.0  ;;  %v6019_v43 = vpop.eup %6018 }
 0x3f1   : > { %v4406_v19 = vadd.f32 1.0, %v6019_v43  ;;  %v9199_v43 = vld [vmem:[#allocation13_spill] sm:$0xff] }
 0x3f2   : > { %v4399_v20 = vmul.f32 %v4828_v29, %v4390_v41 }
 0x3f4   : > { %v4401_v27 = vsub.f32 0.0, %v4399_v20  ;;  %v9196_v20 = vld [vmem:[#allocation9_spill] sm:$0xff] }
 0x3f6   : > { %v4404_v42 = vmul.f32 1.442695, %v4401_v27  ;;  %v9197_v27 = vld [vmem:[#allocation11_spill] sm:$0xff] }
 0x3f8   : > { %6020 = vpow2.f32 %v4404_v42  ;;  %v9198_v42 = vld [vmem:[#allocation12_spill] sm:$0xff] }
 0x3f9   : > { %6022 = vrcp.f32 %v4406_v19  ;;  %v9200_v19 = vld [vmem:[#allocation14_spill] sm:$0xff] }
 0x402   : > { %v6021_v48 = vpop.eup %6020 }
 0x403   : > { %v4407_v3 = vadd.f32 1.0, %v6021_v48  ;;  %v6023_v12 = vpop.eup %6022  ;;  %v9201_v48 = vld [vmem:[#allocation15_spill] sm:$0xff] }
 0x404   : > { %v4410_v26 = vmul.f32 %v6023_v12, %v4389_v58 }
 0x405   : > { %6024 = vrcp.f32 %v4407_v3  ;;  %v9202_v3 = vld [vmem:[#allocation16_spill] sm:$0xff] }
 0x406   : > { %v4412_v63 = vsel %vm1426_vm3, %v4410_v26, 0.0  ;;  %v9204_v26 = vld [vmem:[#allocation17_spill] sm:$0xff] }
 0x40f   : > { %v6025_v36 = vpop.eup %6024 }
 0x410   : > { %v4411_v32 = vmul.f32 %v6025_v36, %v4390_v41  ;;  %v9195_v41 = vld [vmem:[#allocation10_spill] sm:$0xff] }
 0x412   : > { %v4413_v51 = vsel %vm1426_vm3, %v4411_v32, 0.0  ;;  %v9205_v32 = vld [vmem:[#allocation20_spill] sm:$0xff] }
 0x413   : > { %v4414_v54 = vadd.f32 %v4413_v51, %v4412_v63  ;;  %v9206_v51 = vld [vmem:[#allocation19_spill] sm:$0xff] }
 0x415   : > { %v4415_v33 = vrot.slane %v4414_v54, 4 }
 0x417   : > { %v4416_v29 = vadd.f32 %v4415_v33, %v4414_v54  ;;  %v9207_v33 = vld [vmem:[#allocation21_spill] sm:$0xff] }
 0x419   : > { %v4417_v2 = vrot.slane %v4416_v29, 2 }
 0x41b   : > { %v4418_v1 = vadd.f32 %v4417_v2, %v4416_v29  ;;  %v9208_v2 = vld [vmem:[#allocation22_spill] sm:$0xff] }
 0x41d   : > { %v4419_v7 = vrot.slane %v4418_v1, 1 }
 0x41f   : > { %v4420_v14 = vadd.f32 %v4419_v7, %v4418_v1 }
 0x421   : > { %v4422_v30 = vmul.f32 0.0625, %v4420_v14 }
 0x423   : > { %4849 = vmatmul.mubr.msk.f32.vlgmr.msra.gmra.mrb[64].mxu0 %vm1426_vm3, %v4422_v30 }
 0x4f6   : > { %v4494_v62 = vpop.f32.mrb[64].mxu0 }
 0x4f7   : > { %v4498_v46 = vmax.f32 %v4494_v62, 0.0  ;;  %v4850_v58 = vpop.f32.mrb[65].mxu0 }
 0x4f9   : > { %4854 = vmatmul.mubr.msk.f32.vlgmr.msra.gmra.mrb[64].mxu1 %vm4500_vm0, %v4498_v46 }
 0x5cc   : > { %v4573_v10 = vpop.f32.mrb[64].mxu1 }
 0x5cd   : > { %v4577_v0 = vsub.f32 0.0, %v4573_v10  ;;  %v4855_v8 = vpop.f32.mrb[65].mxu1 }
 0x5ce   : > { %v6036_v8 = vld [vmem:[%s6331_s15 + $0x10] sm:$0xff] }
 0x5cf   : > { %v4578_v38 = vmul.f32 1.442695, %v4577_v0  ;;  %v6035_v0 = vld [vmem:[%s6331_s15 + $0x8] sm:$0xff] }
 0x5d1   : > { %6026 = vpow2.f32 %v4578_v38  ;;  %v6037_v38 = vld [vmem:[%s6331_s15 + $0x18] sm:$0xff] }
 0x5db   : > { %v6027_v39 = vpop.eup %6026 }
 0x5dc   : > { %v4580_v22 = vadd.f32 1.0, %v6027_v39  ;;  %v6038_v39 = vld [vmem:[%s6331_s15 + $0x20] sm:$0xff] }
 0x5de   : > { %6028 = vrcp.f32 %v4580_v22  ;;  %v6039_v22 = vld [vmem:[%s6331_s15 + $0x28] sm:$0xff] }
 0x5e8   : > { %v6029_v57 = vpop.eup %6028 }
 0x5e9   : > { %v4585_v34 = vrot.slane %v6029_v57, %v4584_v28  ;;  %v6041_v28 = vld [vmem:[%s6331_s15 + $0x38] sm:$0xff] }
 0x5eb   : > { %v4586_v53 = vmul.f32 %v4585_v34, %v8211_v21  ;;  %v4587_v56 = vmul.f32 %v4585_v34, %v8215_v52  ;;  %v4588_v31 = vmul.f32 %v4585_v34, %v8222_v4  ;;  %v4589_v50 = vmul.f32 %v4585_v34, %v8229_v13 }
 0x5ec   : > { %v4590_v49 = vmul.f32 %v4585_v34, %v8270_v15  ;;  %v4591_v16 = vmul.f32 %v4585_v34, %v8281_v47  ;;  %v4592_v17 = vmul.f32 %v4585_v34, %v8286_v45  ;;  %v4593_v59 = vmul.f32 %v4585_v34, %v8291_v18 }
 0x5ed   : > { %v4594_v44 = vmul.f32 %v4585_v34, %v8370_v35  ;;  %v4595_v25 = vmul.f32 %v4585_v34, %v9194_v60  ;;  %v4596_v21 = vmul.f32 %v4585_v34, %v9195_v41  ;;  %v4597_v52 = vmul.f32 %v4585_v34, %v9196_v20  ;;  %v9203_v35 = vld [vmem:[#allocation18_spill] sm:$0xff] }
 0x5ee   : > { %v4598_v4 = vmul.f32 %v4585_v34, %v9197_v27  ;;  %v4599_v13 = vmul.f32 %v4585_v34, %v9198_v42  ;;  %v4600_v15 = vmul.f32 %v4585_v34, %v9199_v43  ;;  %v4601_v47 = vmul.f32 %v4585_v34, %v9200_v19  ;;  %v6050_v27 = vld [vmem:[%s6331_s15 + $0x80] sm:$0xff]  ;;  %v6051_v42 = vld [vmem:[%s6331_s15 + $0x88] sm:$0xff]  ;;  %v6052_v43 = vld [vmem:[%s6331_s15 + $0x90] sm:$0xff] }
 0x5ef   : > { %v4602_v45 = vmul.f32 %v4585_v34, %v9201_v48  ;;  %v4603_v18 = vmul.f32 %v4585_v34, %v9202_v3  ;;  %v4604_v12 = vmul.f32 %v4585_v34, %v9203_v35  ;;  %v8875_v36 = vmul.f32 %v4585_v34, %v9204_v26  ;;  %v6053_v19 = vld [vmem:[%s6331_s15 + $0x98] sm:$0xff]  ;;  %v6054_v48 = vld [vmem:[%s6331_s15 + $0xa0] sm:$0xff]  ;;  %v6055_v3 = vld [vmem:[%s6331_s15 + $0xa8] sm:$0xff] }
 0x5f0   : > { %v8878_v63 = vmul.f32 %v4585_v34, %v9205_v32  ;;  %v8881_v54 = vmul.f32 %v4585_v34, %v9206_v51  ;;  %v8884_v29 = vmul.f32 %v4585_v34, %v9207_v33  ;;  %v8887_v1 = vmul.f32 %v4585_v34, %v9208_v2  ;;  %v6056_v35 = vld [vmem:[%s6331_s15 + $0xb0] sm:$0xff]  ;;  %v6057_v26 = vld [vmem:[%s6331_s15 + $0xb8] sm:$0xff]  ;;  %v6058_v32 = vld [vmem:[%s6331_s15 + $0xc0] sm:$0xff] }
 0x5f1   : > { %v8890_v7 = vmul.f32 %v4585_v34, %v8695_v61  ;;  %v8893_v14 = vmul.f32 %v4585_v34, %v8704_v6  ;;  %v8896_v30 = vmul.f32 %v4585_v34, %v8716_v5  ;;  %v8899_v62 = vmul.f32 %v4585_v34, %v8726_v11  ;;  %v6034_v5 = vld [vmem:[%s6331_s15] sm:$0xff]  ;;  %v6059_v51 = vld [vmem:[%s6331_s15 + $0xc8] sm:$0xff]  ;;  %v6060_v33 = vld [vmem:[%s6331_s15 + $0xd0] sm:$0xff] }
 0x5f2   : > { %v8902_v46 = vmul.f32 %v4585_v34, %v8762_v24  ;;  %v8905_v58 = vmul.f32 %v4585_v34, %v8772_v23  ;;  %v8908_v61 = vmul.f32 %v4585_v34, %v8796_v9  ;;  %v8911_v6 = vmul.f32 %v4585_v34, %v8802_v37  ;;  %v6042_v34 = vld [vmem:[%s6331_s15 + $0x40] sm:$0xff]  ;;  %v6061_v2 = vld [vmem:[%s6331_s15 + $0xd8] sm:$0xff] }
 0x5f3   : > { %v4618_v10 = vadd.f32 %v6034_v5, %v4586_v53  ;;  %v4619_v11 = vadd.f32 %v6035_v0, %v4587_v56  ;;  %v4620_v24 = vadd.f32 %v6036_v8, %v4588_v31  ;;  %v4621_v23 = vadd.f32 %v6037_v38, %v4589_v50  ;;  %v6043_v56 = vld [vmem:[%s6331_s15 + $0x48] sm:$0xff]  ;;  %v6044_v31 = vld [vmem:[%s6331_s15 + $0x50] sm:$0xff]  ;;  %v6045_v50 = vld [vmem:[%s6331_s15 + $0x58] sm:$0xff] }
 0x5f4   : > { %v4622_v9 = vadd.f32 %v6038_v39, %v4590_v49  ;;  %v4623_v40 = vadd.f32 %v6039_v22, %v4591_v16  ;;  %v4624_v37 = vadd.f32 %v6040_v55, %v4592_v17  ;;  %v4625_v57 = vadd.f32 %v6041_v28, %v4593_v59  ;;  %v6046_v49 = vld [vmem:[%s6331_s15 + $0x60] sm:$0xff]  ;;  %v6047_v17 = vld [vmem:[%s6331_s15 + $0x68] sm:$0xff]  ;;  %v6064_v5 = vld [vmem:[%s6331_s15 + $0xf0] sm:$0xff] }
 0x5f5   : > { %v4626_v53 = vadd.f32 %v6042_v34, %v4594_v44  ;;  %v4627_v60 = vadd.f32 %v6043_v56, %v4595_v25  ;;  %v4628_v41 = vadd.f32 %v6044_v31, %v4596_v21  ;;  %v4629_v20 = vadd.f32 %v6045_v50, %v4597_v52  ;;  %4650 = vst.msk [vmem:[%s8927_s11] sm:$0xff] %vm1426_vm3, %v4618_v10  ;;  %v6048_v44 = vld [vmem:[%s6331_s15 + $0x70] sm:$0xff]  ;;  %v6049_v21 = vld [vmem:[%s6331_s15 + $0x78] sm:$0xff] }
 0x5f6   : > { %4651 = vst.msk [vmem:[%s8927_s11 + $0x8] sm:$0xff] %vm1426_vm3, %v4619_v11  ;;  %4652 = vst.msk [vmem:[%s8927_s11 + $0x10] sm:$0xff] %vm1426_vm3, %v4620_v24  ;;  %v4630_v16 = vadd.f32 %v6046_v49, %v4598_v4  ;;  %v4631_v59 = vadd.f32 %v6047_v17, %v4599_v13  ;;  %v4632_v25 = vadd.f32 %v6048_v44, %v4600_v15  ;;  %v6065_v0 = vld [vmem:[%s6331_s15 + $0xf8] sm:$0xff] }
 0x5f7   : > { %4653 = vst.msk [vmem:[%s8927_s11 + $0x18] sm:$0xff] %vm1426_vm3, %v4621_v23  ;;  %v4633_v52 = vadd.f32 %v6049_v21, %v4601_v47  ;;  %4654 = vst.msk [vmem:[%s8927_s11 + $0x20] sm:$0xff] %vm1426_vm3, %v4622_v9  ;;  %v4634_v4 = vadd.f32 %v6050_v27, %v4602_v45  ;;  %v4635_v13 = vadd.f32 %v6051_v42, %v4603_v18 }
 0x5f8   : > { %4655 = vst.msk [vmem:[%s8927_s11 + $0x28] sm:$0xff] %vm1426_vm3, %v4623_v40  ;;  %4656 = vst.msk [vmem:[%s8927_s11 + $0x30] sm:$0xff] %vm1426_vm3, %v4624_v37  ;;  %v4636_v15 = vadd.f32 %v6052_v43, %v4604_v12  ;;  %v4637_v47 = vadd.f32 %v6053_v19, %v8875_v36  ;;  %v4638_v45 = vadd.f32 %v6054_v48, %v8878_v63 }
 0x5f9   : > { %4657 = vst.msk [vmem:[%s8927_s11 + $0x38] sm:$0xff] %vm1426_vm3, %v4625_v57  ;;  %4658 = vst.msk [vmem:[%s8927_s11 + $0x40] sm:$0xff] %vm1426_vm3, %v4626_v53  ;;  %v4639_v18 = vadd.f32 %v6055_v3, %v8881_v54  ;;  %v4640_v12 = vadd.f32 %v6056_v35, %v8884_v29  ;;  %v4641_v36 = vadd.f32 %v6057_v26, %v8887_v1 }
 0x5fa   : > { %4659 = vst.msk [vmem:[%s8927_s11 + $0x48] sm:$0xff] %vm1426_vm3, %v4627_v60  ;;  %4660 = vst.msk [vmem:[%s8927_s11 + $0x50] sm:$0xff] %vm1426_vm3, %v4628_v41  ;;  %v4642_v63 = vadd.f32 %v6058_v32, %v8890_v7  ;;  %v4643_v54 = vadd.f32 %v6059_v51, %v8893_v14  ;;  %v4644_v29 = vadd.f32 %v6060_v33, %v8896_v30  ;;  %v6062_v7 = vld [vmem:[%s6331_s15 + $0xe0] sm:$0xff]  ;;  %v6063_v30 = vld [vmem:[%s6331_s15 + $0xe8] sm:$0xff]  ;;  %s6096_s15 = scalar_lea.vmem %s9005_s23, 4096 }
 0x5fb   : > { %4661 = vst.msk [vmem:[%s8927_s11 + $0x58] sm:$0xff] %vm1426_vm3, %v4629_v20  ;;  %4662 = vst.msk [vmem:[%s8927_s11 + $0x60] sm:$0xff] %vm1426_vm3, %v4630_v16  ;;  %v4645_v1 = vadd.f32 %v6061_v2, %v8899_v62  ;;  %v4646_v14 = vadd.f32 %v6062_v7, %v8902_v46  ;;  %v4647_v62 = vadd.f32 %v6063_v30, %v8905_v58  ;;  %p6097_p6 = scmp.ne.s32.totalorder %s9005_s23, %s6096_s15  ;;  %p6104_p10 = scmp.lt.s32.totalorder %s6102_s20, %s6096_s15 }
 0x5fc   : > { %4663 = vst.msk [vmem:[%s8927_s11 + $0x68] sm:$0xff] %vm1426_vm3, %v4631_v59  ;;  %4664 = vst.msk [vmem:[%s8927_s11 + $0x70] sm:$0xff] %vm1426_vm3, %v4632_v25  ;;  %v4648_v10 = vadd.f32 %v6064_v5, %v8908_v61  ;;  %v4649_v11 = vadd.f32 %v6065_v0, %v8911_v6 }
 0x5fd   : > { %4665 = vst.msk [vmem:[%s8927_s11 + $0x78] sm:$0xff] %vm1426_vm3, %v4633_v52  ;;  %4666 = vst.msk [vmem:[%s8927_s11 + $0x80] sm:$0xff] %vm1426_vm3, %v4634_v4  ;;  %p6098_p12 = pnand %p6097_p6, %p9210_p11  ;;  %p6105_p0 = por %p6104_p10, %p6103_p8 }
 0x5fe   : > { %4667 = vst.msk [vmem:[%s8927_s11 + $0x88] sm:$0xff] %vm1426_vm3, %v4635_v13  ;;  %4668 = vst.msk [vmem:[%s8927_s11 + $0x90] sm:$0xff] %vm1426_vm3, %v4636_v15 }
 0x5ff   : > { %4669 = vst.msk [vmem:[%s8927_s11 + $0x98] sm:$0xff] %vm1426_vm3, %v4637_v47  ;;  %4670 = vst.msk [vmem:[%s8927_s11 + $0xa0] sm:$0xff] %vm1426_vm3, %v4638_v45  ;;  %p6099_p13 = pneg %p6098_p12 }
 0x600   : > { %4671 = vst.msk [vmem:[%s8927_s11 + $0xa8] sm:$0xff] %vm1426_vm3, %v4639_v18  ;;  %4672 = vst.msk [vmem:[%s8927_s11 + $0xb0] sm:$0xff] %vm1426_vm3, %v4640_v12 }
 0x601   : > { %4673 = vst.msk [vmem:[%s8927_s11 + $0xb8] sm:$0xff] %vm1426_vm3, %v4641_v36  ;;  %4674 = vst.msk [vmem:[%s8927_s11 + $0xc0] sm:$0xff] %vm1426_vm3, %v4642_v63  ;;  %p6106_p2 = pnand %p6105_p0, %p6099_p13 }
 0x602   : > { %4675 = vst.msk [vmem:[%s8927_s11 + $0xc8] sm:$0xff] %vm1426_vm3, %v4643_v54  ;;  %4676 = vst.msk [vmem:[%s8927_s11 + $0xd0] sm:$0xff] %vm1426_vm3, %v4644_v29 }
 0x603   : > { %4677 = vst.msk [vmem:[%s8927_s11 + $0xd8] sm:$0xff] %vm1426_vm3, %v4645_v1  ;;  %4678 = vst.msk [vmem:[%s8927_s11 + $0xe0] sm:$0xff] %vm1426_vm3, %v4646_v14 }
 0x604   : > { %4679 = vst.msk [vmem:[%s8927_s11 + $0xe8] sm:$0xff] %vm1426_vm3, %v4647_v62  ;;  %4680 = vst.msk [vmem:[%s8927_s11 + $0xf0] sm:$0xff] %vm1426_vm3, %v4648_v10 }
 0x605   : > { %4681 = vst.msk [vmem:[%s8927_s11 + $0xf8] sm:$0xff] %vm1426_vm3, %v4649_v11 }
 0x606   : > { %6109 = shalt.err (!%p6106_p2)
}
 0x607   : > { %s6110_s12 = scalar_lea.hbm %s9001_s8, 4096  ;;  %s6114_s11 = scalar_lea.hbm %s9088_s7, 8192 }
 0x608   : > { %p6111_p4 = scmp.ne.s32.totalorder %s9001_s8, %s6110_s12  ;;  %p6115_p9 = scmp.lt.u32.totalorder %s9001_s8, %s9088_s7 }
 0x609   : > { %p6116_p1 = scmp.lt.u32.totalorder %s6114_s11, %s6110_s12  ;;  %p6118_p6 = scmp.lt.u32.totalorder %s6110_s12, %s9001_s8 }
 0x60a   : > { %p6112_p5 = pnand %p6111_p4, %p9210_p11 }
 0x60b   : > { %p6117_p3 = por %p6116_p1, %p6115_p9 }
 0x60c   : > { %p6113_p7 = pneg %p6112_p5 }
 0x60d   : > { %p6119_p12 = por %p6118_p6, %p6117_p3 }
 0x60f   : > { %p6120_p13 = pnand %p6119_p12, %p6113_p7 }
 0x611   : > { %6123 = shalt.err (!%p6120_p13)
}
 0x612   : > { %s6179_s17 = smov 128   ;;  %s6180_s15 = smov 8  }
 0x613   : > { %4861 = dma.vmem_to_hbm [thread:$0]  (%p9210_p11), %s9005_s23, 4096, %s9001_s8, %s4683_s28, %s6179_s17, %s6179_s17, %s6180_s15  }
 0x614 PF: > { %s4711_s29 = sand.u32 1, %s6150_s24   ;;  %p9211_p8 = scmp.ne.s32.totalorder %s9126_s14, 0 }
 0x615   : > { %p9212_p10 = scmp.ge.s32.totalorder %s6162_s27, 2  ;;  %s4712_s9 = scalar_lea.sflag [#allocation4], %s4711_s29 }
 0x617   : > { %p4868_p0 = pnand %p9212_p10, %p9211_p8 }
 0x619   : > { %6145 = dma.done.wait (!%p4868_p0), %s4712_s9, 4096  }
 0x61a   : > { %6147 = vsyncadd (!%p4868_p0), %s4712_s9, 4294963200  ;;  %p20_p2 = scmp.ge.s32.totalorder %s6246_s30, 4   ;;  %s9213_s24 = smov %s6154_s25 }
 0x61b   : > { %s9214_s25 = smov %s6158_s26  ;;  %s9215_s26 = smov %s6258_s10 }
 0x61c   : > { %s9216_s27 = smov %s6246_s30  ;;  %22 = sbr.rel (!%p20_p2) target bundleno = 5 (0x5), region = 93 }
 0x623   :  { %4717 = vsyncpa [#allocation3], 1 }
 0x624   :  { %4719 = vsyncpa [#allocation3 + $0x1], 1 }
 0x625   :  { %4720 = vsyncpa [#allocation4], 1 }
 0x626   :  { %4722 = vsyncpa [#allocation4 + $0x1], 1 }

</bundles_post_ra>
